<compile_context>
chip_gen: v7x
topology: tpu7x:2x2x1
jax: 0.10.0
libtpu: 0.0.40
codegen_flags: <defaults>
</compile_context>

<pallas_src>
import math
import functools

import jax
import jax.numpy as jnp
from jax.experimental import pallas as pl
from jax.experimental.pallas import tpu as pltpu  # noqa: F401  (no TPU-specific compiler params needed at this size)

_NEG_INF = -1e9

# Row layout of the packed f32 vector slab (per layer).
(_R_SA_BQKV, _R_SA_BO, _R_CA_BQKV, _R_CA_BO, _R_B1, _R_B2,
 _R_LN1W, _R_LN1B, _R_LN2W, _R_LN2B, _R_LN3W, _R_LN3B) = range(12)
_N_VEC_ROWS = 12


# ----------------------------------------------------------------------------
# Fused Pallas kernel: all decoder layers + fc_out in one call, no grid.
# ----------------------------------------------------------------------------
def _fused_decoder_kernel(bias_ref, x_ref, w_attn_in_ref, w_attn_out_ref,
                          w1_ref, w2_ref, vec_ref, fcw_ref, fcb_ref, out_ref,
                          *, num_layers, num_heads):
    BS, D = x_ref.shape                      # flattened tokens (B*S), model dim
    H = num_heads
    hd = D // H
    Dh = w1_ref.shape[-1]

    # (H*BS, BS) additive score biases, prebuilt host-side (block-diagonal
    # batch mask [+ causal + key padding for self-attn]), tiled over heads.
    bias_self = bias_ref[0]
    bias_cross = bias_ref[1]

    def vec(l, row, width):                  # (1, width) f32, static offsets
        r = l * _N_VEC_ROWS + row
        return vec_ref[r:r + 1, :width]

    def layer_norm(v, w, b):                 # f32 throughout
        mu = jnp.mean(v, axis=-1, keepdims=True)
        d = v - mu
        var = jnp.mean(d * d, axis=-1, keepdims=True)
        return d * jax.lax.rsqrt(var + 1e-5) * w + b

    def softmax(s):                          # one softmax over packed heads
        m = jnp.max(s, axis=-1, keepdims=True)
        e = jnp.exp(s - m)
        return e * pl.reciprocal(jnp.sum(e, axis=-1, keepdims=True), approx=True)

    def attend(q, k, v, wo, bo, bias):
        # q/k/v: (BS, D) f32 (Q already scaled via folded weights).
        # wo: (D, D) bf16, bo: (1, D) f32, bias: (H*BS, BS) f32.
        qb = q.astype(jnp.bfloat16)
        kb = k.astype(jnp.bfloat16)
        vb = v.astype(jnp.bfloat16)
        # One (BS, hd) x (hd, BS) score matmul per head over ALL tokens; the
        # block-diagonal bias removes cross-batch attention.
        scores = [jax.lax.dot_general(
                      qb[:, h * hd:(h + 1) * hd], kb[:, h * hd:(h + 1) * hd],
                      (((1,), (1,)), ((), ())),
                      preferred_element_type=jnp.float32)
                  for h in range(H)]
        s_all = jnp.concatenate(scores, axis=0) + bias          # (H*BS, BS)
        p_all = softmax(s_all).astype(jnp.bfloat16)
        ctx = jnp.concatenate(
            [jnp.dot(p_all[h * BS:(h + 1) * BS, :], vb[:, h * hd:(h + 1) * hd],
                     preferred_element_type=jnp.float32)
             for h in range(H)], axis=-1).astype(jnp.bfloat16)  # (BS, D)
        # Single output projection for all heads.
        return jnp.dot(ctx, wo, preferred_element_type=jnp.float32) + bo

    x = x_ref[...]                            # (BS, D) f32
    for l in range(num_layers):
        # ---- self-attention (tgt_mask + tgt_key_padding_mask), fused QKV ----
        x_bf = x.astype(jnp.bfloat16)
        qkv = jnp.dot(x_bf, w_attn_in_ref[2 * l],
                      preferred_element_type=jnp.float32) + vec(l, _R_SA_BQKV, 3 * D)
        sa = attend(qkv[:, :D], qkv[:, D:2 * D], qkv[:, 2 * D:],
                    w_attn_out_ref[2 * l], vec(l, _R_SA_BO, D), bias_self)
        x1 = layer_norm(x + sa, vec(l, _R_LN1W, D), vec(l, _R_LN1B, D))

        # ---- cross-attention: memory = layer input x, batch-block mask only --
        q = jnp.dot(x1.astype(jnp.bfloat16), w_attn_in_ref[2 * l + 1, :, :D],
                    preferred_element_type=jnp.float32) \
            + vec_ref[l * _N_VEC_ROWS + _R_CA_BQKV:
                      l * _N_VEC_ROWS + _R_CA_BQKV + 1, :D]
        kv = jnp.dot(x_bf, w_attn_in_ref[2 * l + 1, :, D:],
                     preferred_element_type=jnp.float32) \
            + vec_ref[l * _N_VEC_ROWS + _R_CA_BQKV:
                      l * _N_VEC_ROWS + _R_CA_BQKV + 1, D:3 * D]
        ca = attend(q, kv[:, :D], kv[:, D:],
                    w_attn_out_ref[2 * l + 1], vec(l, _R_CA_BO, D), bias_cross)
        x2 = layer_norm(x1 + ca, vec(l, _R_LN2W, D), vec(l, _R_LN2B, D))

        # ---- feed-forward (relu) -------------------------------------------
        h1 = jnp.maximum(
            jnp.dot(x2.astype(jnp.bfloat16), w1_ref[l],
                    preferred_element_type=jnp.float32) + vec(l, _R_B1, Dh), 0.0)
        ff = jnp.dot(h1.astype(jnp.bfloat16), w2_ref[l],
                     preferred_element_type=jnp.float32) + vec(l, _R_B2, D)
        x = layer_norm(x2 + ff, vec(l, _R_LN3W, D), vec(l, _R_LN3B, D))

    # ---- fc_out, lane-dense padded output width (multiple of 128) -----------
    out_ref[...] = (jnp.dot(x.astype(jnp.bfloat16), fcw_ref[...],
                            preferred_element_type=jnp.float32) + fcb_ref[...])


# ----------------------------------------------------------------------------
# Host-side parameter prep / glue
# ----------------------------------------------------------------------------
def positional_encoding(length, d_model):
    pos = jnp.arange(length, dtype=jnp.float32)[:, None]
    div = jnp.exp(jnp.arange(0, d_model, 2, dtype=jnp.float32)
                  * (-math.log(10000.0) / d_model))
    pe = jnp.zeros((length, d_model), jnp.float32)
    pe = pe.at[:, 0::2].set(jnp.sin(pos * div))
    pe = pe.at[:, 1::2].set(jnp.cos(pos * div))
    return pe


def _prepare_inputs(layers, num_heads, c_pad, fc_w, fc_b):
    """Pack weights into a few slabs: transpose to (in, out), fold 1/sqrt(hd)
    into Q weight & bias, cast matmul weights to bf16, pad vectors to a
    lane-aligned f32 slab."""
    D = layers[0]["sa_wo"].shape[0]
    Dh = layers[0]["w1"].shape[0]
    hd = D // num_heads
    scale = 1.0 / math.sqrt(hd)

    def in_proj(w):                                   # (3D, D) -> (D, 3D)
        wt = w.T.astype(jnp.float32)
        wt = wt.at[:, :D].multiply(scale)             # fold q-scale
        return wt.astype(jnp.bfloat16)

    w_attn_in = jnp.stack([in_proj(w) for lp in layers
                           for w in (lp["sa_wqkv"], lp["ca_wqkv"])])   # (2L,D,3D)
    w_attn_out = jnp.stack([w.T for lp in layers
                            for w in (lp["sa_wo"], lp["ca_wo"])]
                           ).astype(jnp.bfloat16)                      # (2L,D,D)
    w1 = jnp.stack([lp["w1"].T for lp in layers]).astype(jnp.bfloat16)  # (L,D,Dh)
    w2 = jnp.stack([lp["w2"].T for lp in layers]).astype(jnp.bfloat16)  # (L,Dh,D)

    vw = 128 * pl.cdiv(max(3 * D, Dh), 128)           # lane-aligned slab width

    def pad_vec(v):
        v = v.astype(jnp.float32)
        return jnp.zeros((vw,), jnp.float32).at[:v.shape[0]].set(v)

    rows = []
    for lp in layers:
        sa_b = lp["sa_bqkv"].astype(jnp.float32).at[:D].multiply(scale)
        ca_b = lp["ca_bqkv"].astype(jnp.float32).at[:D].multiply(scale)
        for v in (sa_b, lp["sa_bo"], ca_b, lp["ca_bo"], lp["b1"], lp["b2"],
                  lp["ln1_w"], lp["ln1_b"], lp["ln2_w"], lp["ln2_b"],
                  lp["ln3_w"], lp["ln3_b"]):
            rows.append(pad_vec(v))
    vec_slab = jnp.stack(rows)                        # (L*12, vw) f32

    C = fc_w.shape[0]
    fcw = jnp.zeros((D, c_pad), jnp.float32).at[:, :C].set(fc_w.T)
    fcb = jnp.zeros((1, c_pad), jnp.float32).at[:, :C].set(fc_b[None, :])
    return w_attn_in, w_attn_out, w1, w2, vec_slab, fcw.astype(jnp.bfloat16), fcb


def forward(tokens, params, attn_mask=None, padding_mask=None, *, num_heads):
    emb, layers, fc_w, fc_b = params
    B, S = tokens.shape
    D = emb.shape[1]
    L = len(layers)
    H = num_heads
    C = fc_w.shape[0]
    c_pad = 128 * pl.cdiv(C, 128)                     # lane-dense output width
    BS = B * S

    x = emb[tokens] + positional_encoding(S, D)[None, :, :]
    x = x.reshape(BS, D).astype(jnp.float32)

    # Additive (BS, BS) score biases on the flattened token axis:
    #   block-diagonal mask kills cross-batch attention; self-attention also
    #   adds the causal mask and key-padding mask.  Tiled over heads so the
    #   kernel's packed (H*BS, BS) softmax uses a single add.
    attn_b = (jnp.where(attn_mask, _NEG_INF, 0.0).astype(jnp.float32)
              if attn_mask is not None else jnp.zeros((S, S), jnp.float32))
    pad_b = (jnp.where(padding_mask, _NEG_INF, 0.0).astype(jnp.float32)
             if padding_mask is not None else jnp.zeros((B, S), jnp.float32))
    bidx = jnp.arange(BS) // S
    block = jnp.where(bidx[:, None] == bidx[None, :], 0.0, _NEG_INF
                      ).astype(jnp.float32)                       # (BS, BS)
    self_bias = block + jnp.tile(attn_b, (B, B)) + pad_b.reshape(1, BS)
    bias_pack = jnp.stack([jnp.tile(self_bias, (H, 1)),
                           jnp.tile(block, (H, 1))])              # (2, H*BS, BS)

    w_attn_in, w_attn_out, w1, w2, vec_slab, fcw, fcb = _prepare_inputs(
        layers, num_heads, c_pad, fc_w, fc_b)

    kernel = functools.partial(_fused_decoder_kernel,
                               num_layers=L, num_heads=H)
    logits = pl.pallas_call(
        kernel,
        out_shape=jax.ShapeDtypeStruct((BS, c_pad), jnp.float32),
    )(bias_pack, x, w_attn_in, w_attn_out, w1, w2, vec_slab, fcw, fcb)
    return logits.reshape(B, S, c_pad)[:, :, :C]


# ----------------------------------------------------------------------------
# Pure-JAX float32 reference (mirrors the PyTorch module in eval mode)
# ----------------------------------------------------------------------------
def reference_forward(tokens, params, attn_mask=None, padding_mask=None, *,
                      num_heads):
    emb, layers, fc_w, fc_b = params
    B, S = tokens.shape
    D = emb.shape[1]
    hd = D // num_heads
    x = emb[tokens] + positional_encoding(S, D)[None, :, :]

    bias = jnp.zeros((B, S, S), jnp.float32)
    if attn_mask is not None:
        bias = bias + jnp.where(attn_mask, _NEG_INF, 0.0)[None, :, :]
    if padding_mask is not None:
        bias = bias + jnp.where(padding_mask, _NEG_INF, 0.0)[:, None, :]

    def layer_norm(v, w, b):
        mu = jnp.mean(v, axis=-1, keepdims=True)
        var = jnp.mean((v - mu) ** 2, axis=-1, keepdims=True)
        return (v - mu) * jax.lax.rsqrt(var + 1e-5) * w + b

    def mha(q_in, kv_in, w_in, b_in, w_out, b_out, b_add):
        q = q_in @ w_in[:D].T + b_in[:D]
        k = kv_in @ w_in[D:2 * D].T + b_in[D:2 * D]
        v = kv_in @ w_in[2 * D:].T + b_in[2 * D:]
        q = q.reshape(B, S, num_heads, hd).transpose(0, 2, 1, 3)
        k = k.reshape(B, S, num_heads, hd).transpose(0, 2, 1, 3)
        v = v.reshape(B, S, num_heads, hd).transpose(0, 2, 1, 3)
        s = jnp.einsum("bhqd,bhkd->bhqk", q, k) / math.sqrt(hd)
        if b_add is not None:
            s = s + b_add[:, None, :, :]
        p = jax.nn.softmax(s, axis=-1)
        o = jnp.einsum("bhqk,bhkd->bhqd", p, v)
        o = o.transpose(0, 2, 1, 3).reshape(B, S, D)
        return o @ w_out.T + b_out

    for lp in layers:
        sa = mha(x, x, lp["sa_wqkv"], lp["sa_bqkv"], lp["sa_wo"], lp["sa_bo"], bias)
        x1 = layer_norm(x + sa, lp["ln1_w"], lp["ln1_b"])
        ca = mha(x1, x, lp["ca_wqkv"], lp["ca_bqkv"], lp["ca_wo"], lp["ca_bo"], None)
        x2 = layer_norm(x1 + ca, lp["ln2_w"], lp["ln2_b"])
        h = jax.nn.relu(x2 @ lp["w1"].T + lp["b1"])
        ff = h @ lp["w2"].T + lp["b2"]
        x = layer_norm(x2 + ff, lp["ln3_w"], lp["ln3_b"])
    return x @ fc_w.T + fc_b


# ----------------------------------------------------------------------------
# Parameter init (PyTorch layouts: Linear weight is (out, in))
# ----------------------------------------------------------------------------
def init_params(key, num_layers, model_dim, hidden_dim, quantized_classes,
                padding_idx):
    keys = jax.random.split(key, 2 + num_layers)

    def nrm(k, shape, scale=0.1):
        return scale * jax.random.normal(k, shape, jnp.float32)

    emb = jax.random.normal(keys[0], (quantized_classes, model_dim), jnp.float32)
    emb = emb.at[padding_idx].set(0.0)

    layers = []
    for l in range(num_layers):
        lk = jax.random.split(keys[1 + l], 8)
        layers.append(dict(
            sa_wqkv=nrm(lk[0], (3 * model_dim, model_dim)),
            sa_bqkv=jnp.zeros((3 * model_dim,), jnp.float32),
            sa_wo=nrm(lk[1], (model_dim, model_dim)),
            sa_bo=jnp.zeros((model_dim,), jnp.float32),
            ca_wqkv=nrm(lk[2], (3 * model_dim, model_dim)),
            ca_bqkv=jnp.zeros((3 * model_dim,), jnp.float32),
            ca_wo=nrm(lk[3], (model_dim, model_dim)),
            ca_bo=jnp.zeros((model_dim,), jnp.float32),
            w1=nrm(lk[4], (hidden_dim, model_dim)),
            b1=nrm(lk[5], (hidden_dim,), 0.01),
            w2=nrm(lk[6], (model_dim, hidden_dim)),
            b2=nrm(lk[7], (model_dim,), 0.01),
            ln1_w=jnp.ones((model_dim,), jnp.float32),
            ln1_b=jnp.zeros((model_dim,), jnp.float32),
            ln2_w=jnp.ones((model_dim,), jnp.float32),
            ln2_b=jnp.zeros((model_dim,), jnp.float32),
            ln3_w=jnp.ones((model_dim,), jnp.float32),
            ln3_b=jnp.zeros((model_dim,), jnp.float32),
        ))

    fc_w = nrm(keys[-1], (quantized_classes, model_dim))
    fc_b = jnp.zeros((quantized_classes,), jnp.float32)
    return emb, layers, fc_w, fc_b


# ----------------------------------------------------------------------------
if __name__ == "__main__":
    NUM_LAYERS, MODEL_DIM, NUM_HEADS, HIDDEN_DIM = 2, 32, 4, 64
    QUANTIZED_CLASSES, PADDING_IDX = 103, 102
    B, S = 2, 8

    key = jax.random.PRNGKey(0)
    pkey, tkey = jax.random.split(key)
    params = init_params(pkey, NUM_LAYERS, MODEL_DIM, HIDDEN_DIM,
                         QUANTIZED_CLASSES, PADDING_IDX)

    tokens = jax.random.randint(tkey, (B, S), 0, QUANTIZED_CLASSES - 1,
                                dtype=jnp.int32)
    tokens = tokens.at[1, -1].set(PADDING_IDX)                 # one PAD token
    attn_mask = jnp.triu(jnp.ones((S, S), dtype=bool), k=1)    # causal mask
    padding_mask = tokens == PADDING_IDX

    out = forward(tokens, params, attn_mask, padding_mask, num_heads=NUM_HEADS)
    out = jax.block_until_ready(out)
    assert out.shape == (B, S, QUANTIZED_CLASSES)

    ref = reference_forward(tokens, params, attn_mask, padding_mask,
                            num_heads=NUM_HEADS)
    err = float(jnp.max(jnp.abs(out - ref)))
    assert err < 5e-2, f"kernel/reference mismatch: max abs err = {err}"

    print("KERNEL_OK")
</pallas_src>

<mosaic_0001>
module attributes {stable_mosaic.version = 11 : i64} {
  func.func @_fused_decoder_kernel(%arg0: memref<2x64x16xf32, #tpu.memory_space<vmem>>, %arg1: memref<16x32xf32, #tpu.memory_space<vmem>>, %arg2: memref<4x32x96xbf16, #tpu.memory_space<vmem>>, %arg3: memref<4x32x32xbf16, #tpu.memory_space<vmem>>, %arg4: memref<2x32x64xbf16, #tpu.memory_space<vmem>>, %arg5: memref<2x64x32xbf16, #tpu.memory_space<vmem>>, %arg6: memref<24x128xf32, #tpu.memory_space<vmem>>, %arg7: memref<32x128xbf16, #tpu.memory_space<vmem>>, %arg8: memref<1x128xf32, #tpu.memory_space<vmem>>, %arg9: memref<16x128xf32, #tpu.memory_space<vmem>>) attributes {dimension_semantics = [], scalar_prefetch = 0 : i64, scratch_operands = 0 : i64, tpu.core_type = #tpu.core_type<tc>} {
    %c0 = arith.constant 0 : index
    %c0_0 = arith.constant 0 : index
    %c0_1 = arith.constant 0 : index
    %0 = vector.load %arg0[%c0, %c0_0, %c0_1] : memref<2x64x16xf32, #tpu.memory_space<vmem>>, vector<1x64x16xf32>
    %1 = vector.shape_cast %0 : vector<1x64x16xf32> to vector<64x16xf32>
    %c1 = arith.constant 1 : index
    %c0_2 = arith.constant 0 : index
    %c0_3 = arith.constant 0 : index
    %2 = vector.load %arg0[%c1, %c0_2, %c0_3] : memref<2x64x16xf32, #tpu.memory_space<vmem>>, vector<1x64x16xf32>
    %3 = vector.shape_cast %2 : vector<1x64x16xf32> to vector<64x16xf32>
    %c0_4 = arith.constant 0 : index
    %c0_5 = arith.constant 0 : index
    %4 = vector.load %arg1[%c0_4, %c0_5] : memref<16x32xf32, #tpu.memory_space<vmem>>, vector<16x32xf32>
    %5 = arith.truncf %4 : vector<16x32xf32> to vector<16x32xbf16>
    %c0_6 = arith.constant 0 : index
    %c0_7 = arith.constant 0 : index
    %c0_8 = arith.constant 0 : index
    %6 = vector.load %arg2[%c0_6, %c0_7, %c0_8] : memref<4x32x96xbf16, #tpu.memory_space<vmem>>, vector<1x32x96xbf16>
    %7 = vector.shape_cast %6 : vector<1x32x96xbf16> to vector<32x96xbf16>
    %cst = arith.constant dense<0.000000e+00> : vector<16x96xf32>
    %8 = tpu.matmul %5, %7, %cst {dimension_numbers = #tpu.dot_dimension_numbers<[1], [0], [0], [1], [0, 0, 1, 1], [], []>} : vector<16x32xbf16>, vector<32x96xbf16>, vector<16x96xf32> -> vector<16x96xf32>
    %c0_9 = arith.constant 0 : index
    %c0_10 = arith.constant 0 : index
    %9 = vector.load %arg6[%c0_9, %c0_10] : memref<24x128xf32, #tpu.memory_space<vmem>>, vector<1x96xf32>
    %10 = vector.broadcast %9 : vector<1x96xf32> to vector<16x96xf32>
    %11 = arith.addf %8, %10 : vector<16x96xf32>
    %12 = vector.extract_strided_slice %11 {offsets = [0, 0], sizes = [16, 32], strides = [1, 1]} : vector<16x96xf32> to vector<16x32xf32>
    %13 = vector.extract_strided_slice %11 {offsets = [0, 32], sizes = [16, 32], strides = [1, 1]} : vector<16x96xf32> to vector<16x32xf32>
    %14 = vector.extract_strided_slice %11 {offsets = [0, 64], sizes = [16, 32], strides = [1, 1]} : vector<16x96xf32> to vector<16x32xf32>
    %c0_11 = arith.constant 0 : index
    %c0_12 = arith.constant 0 : index
    %c0_13 = arith.constant 0 : index
    %15 = vector.load %arg3[%c0_11, %c0_12, %c0_13] : memref<4x32x32xbf16, #tpu.memory_space<vmem>>, vector<1x32x32xbf16>
    %16 = vector.shape_cast %15 : vector<1x32x32xbf16> to vector<32x32xbf16>
    %c1_14 = arith.constant 1 : index
    %c0_15 = arith.constant 0 : index
    %17 = vector.load %arg6[%c1_14, %c0_15] : memref<24x128xf32, #tpu.memory_space<vmem>>, vector<1x32xf32>
    %18 = arith.truncf %12 : vector<16x32xf32> to vector<16x32xbf16>
    %19 = arith.truncf %13 : vector<16x32xf32> to vector<16x32xbf16>
    %20 = arith.truncf %14 : vector<16x32xf32> to vector<16x32xbf16>
    %21 = vector.extract_strided_slice %18 {offsets = [0, 0], sizes = [16, 8], strides = [1, 1]} : vector<16x32xbf16> to vector<16x8xbf16>
    %22 = vector.extract_strided_slice %19 {offsets = [0, 0], sizes = [16, 8], strides = [1, 1]} : vector<16x32xbf16> to vector<16x8xbf16>
    %cst_16 = arith.constant dense<0.000000e+00> : vector<16x16xf32>
    %23 = tpu.matmul %21, %22, %cst_16 {dimension_numbers = #tpu.dot_dimension_numbers<[1], [1], [0], [0], [0, 0, 1, 0], [], []>} : vector<16x8xbf16>, vector<16x8xbf16>, vector<16x16xf32> -> vector<16x16xf32>
    %24 = vector.extract_strided_slice %18 {offsets = [0, 8], sizes = [16, 8], strides = [1, 1]} : vector<16x32xbf16> to vector<16x8xbf16>
    %25 = vector.extract_strided_slice %19 {offsets = [0, 8], sizes = [16, 8], strides = [1, 1]} : vector<16x32xbf16> to vector<16x8xbf16>
    %cst_17 = arith.constant dense<0.000000e+00> : vector<16x16xf32>
    %26 = tpu.matmul %24, %25, %cst_17 {dimension_numbers = #tpu.dot_dimension_numbers<[1], [1], [0], [0], [0, 0, 1, 0], [], []>} : vector<16x8xbf16>, vector<16x8xbf16>, vector<16x16xf32> -> vector<16x16xf32>
    %27 = vector.extract_strided_slice %18 {offsets = [0, 16], sizes = [16, 8], strides = [1, 1]} : vector<16x32xbf16> to vector<16x8xbf16>
    %28 = vector.extract_strided_slice %19 {offsets = [0, 16], sizes = [16, 8], strides = [1, 1]} : vector<16x32xbf16> to vector<16x8xbf16>
    %cst_18 = arith.constant dense<0.000000e+00> : vector<16x16xf32>
    %29 = tpu.matmul %27, %28, %cst_18 {dimension_numbers = #tpu.dot_dimension_numbers<[1], [1], [0], [0], [0, 0, 1, 0], [], []>} : vector<16x8xbf16>, vector<16x8xbf16>, vector<16x16xf32> -> vector<16x16xf32>
    %30 = vector.extract_strided_slice %18 {offsets = [0, 24], sizes = [16, 8], strides = [1, 1]} : vector<16x32xbf16> to vector<16x8xbf16>
    %31 = vector.extract_strided_slice %19 {offsets = [0, 24], sizes = [16, 8], strides = [1, 1]} : vector<16x32xbf16> to vector<16x8xbf16>
    %cst_19 = arith.constant dense<0.000000e+00> : vector<16x16xf32>
    %32 = tpu.matmul %30, %31, %cst_19 {dimension_numbers = #tpu.dot_dimension_numbers<[1], [1], [0], [0], [0, 0, 1, 0], [], []>} : vector<16x8xbf16>, vector<16x8xbf16>, vector<16x16xf32> -> vector<16x16xf32>
    %33 = tpu.concatenate %23, %26, %29, %32 in 0 : vector<16x16xf32>, vector<16x16xf32>, vector<16x16xf32>, vector<16x16xf32> -> vector<64x16xf32>
    %34 = arith.addf %33, %1 : vector<64x16xf32>
    %cst_20 = arith.constant dense<0xFF800000> : vector<64xf32>
    %35 = vector.multi_reduction <maximumf>, %34, %cst_20 [1] : vector<64x16xf32> to vector<64xf32>
    %36 = vector.shape_cast %35 : vector<64xf32> to vector<64x1xf32>
    %37 = vector.broadcast %36 : vector<64x1xf32> to vector<64x16xf32>
    %38 = arith.subf %34, %37 : vector<64x16xf32>
    %39 = math.exp %38 : vector<64x16xf32>
    %cst_21 = arith.constant dense<0.000000e+00> : vector<64xf32>
    %40 = vector.multi_reduction <add>, %39, %cst_21 [1] : vector<64x16xf32> to vector<64xf32>
    %41 = vector.shape_cast %40 : vector<64xf32> to vector<64x1xf32>
    %42 = tpu.reciprocal %41 {approx = true} : vector<64x1xf32> -> vector<64x1xf32>
    %43 = vector.broadcast %42 : vector<64x1xf32> to vector<64x16xf32>
    %44 = arith.mulf %39, %43 : vector<64x16xf32>
    %45 = arith.truncf %44 : vector<64x16xf32> to vector<64x16xbf16>
    %46 = vector.extract_strided_slice %45 {offsets = [0, 0], sizes = [16, 16], strides = [1, 1]} : vector<64x16xbf16> to vector<16x16xbf16>
    %47 = vector.extract_strided_slice %20 {offsets = [0, 0], sizes = [16, 8], strides = [1, 1]} : vector<16x32xbf16> to vector<16x8xbf16>
    %cst_22 = arith.constant dense<0.000000e+00> : vector<16x8xf32>
    %48 = tpu.matmul %46, %47, %cst_22 {dimension_numbers = #tpu.dot_dimension_numbers<[1], [0], [0], [1], [0, 0, 1, 1], [], []>} : vector<16x16xbf16>, vector<16x8xbf16>, vector<16x8xf32> -> vector<16x8xf32>
    %49 = vector.extract_strided_slice %45 {offsets = [16, 0], sizes = [16, 16], strides = [1, 1]} : vector<64x16xbf16> to vector<16x16xbf16>
    %50 = vector.extract_strided_slice %20 {offsets = [0, 8], sizes = [16, 8], strides = [1, 1]} : vector<16x32xbf16> to vector<16x8xbf16>
    %cst_23 = arith.constant dense<0.000000e+00> : vector<16x8xf32>
    %51 = tpu.matmul %49, %50, %cst_23 {dimension_numbers = #tpu.dot_dimension_numbers<[1], [0], [0], [1], [0, 0, 1, 1], [], []>} : vector<16x16xbf16>, vector<16x8xbf16>, vector<16x8xf32> -> vector<16x8xf32>
    %52 = vector.extract_strided_slice %45 {offsets = [32, 0], sizes = [16, 16], strides = [1, 1]} : vector<64x16xbf16> to vector<16x16xbf16>
    %53 = vector.extract_strided_slice %20 {offsets = [0, 16], sizes = [16, 8], strides = [1, 1]} : vector<16x32xbf16> to vector<16x8xbf16>
    %cst_24 = arith.constant dense<0.000000e+00> : vector<16x8xf32>
    %54 = tpu.matmul %52, %53, %cst_24 {dimension_numbers = #tpu.dot_dimension_numbers<[1], [0], [0], [1], [0, 0, 1, 1], [], []>} : vector<16x16xbf16>, vector<16x8xbf16>, vector<16x8xf32> -> vector<16x8xf32>
    %55 = vector.extract_strided_slice %45 {offsets = [48, 0], sizes = [16, 16], strides = [1, 1]} : vector<64x16xbf16> to vector<16x16xbf16>
    %56 = vector.extract_strided_slice %20 {offsets = [0, 24], sizes = [16, 8], strides = [1, 1]} : vector<16x32xbf16> to vector<16x8xbf16>
    %cst_25 = arith.constant dense<0.000000e+00> : vector<16x8xf32>
    %57 = tpu.matmul %55, %56, %cst_25 {dimension_numbers = #tpu.dot_dimension_numbers<[1], [0], [0], [1], [0, 0, 1, 1], [], []>} : vector<16x16xbf16>, vector<16x8xbf16>, vector<16x8xf32> -> vector<16x8xf32>
    %58 = tpu.concatenate %48, %51, %54, %57 in 1 : vector<16x8xf32>, vector<16x8xf32>, vector<16x8xf32>, vector<16x8xf32> -> vector<16x32xf32>
    %59 = arith.truncf %58 : vector<16x32xf32> to vector<16x32xbf16>
    %cst_26 = arith.constant dense<0.000000e+00> : vector<16x32xf32>
    %60 = tpu.matmul %59, %16, %cst_26 {dimension_numbers = #tpu.dot_dimension_numbers<[1], [0], [0], [1], [0, 0, 1, 1], [], []>} : vector<16x32xbf16>, vector<32x32xbf16>, vector<16x32xf32> -> vector<16x32xf32>
    %61 = vector.broadcast %17 : vector<1x32xf32> to vector<16x32xf32>
    %62 = arith.addf %60, %61 : vector<16x32xf32>
    %63 = arith.addf %4, %62 : vector<16x32xf32>
    %c6 = arith.constant 6 : index
    %c0_27 = arith.constant 0 : index
    %64 = vector.load %arg6[%c6, %c0_27] : memref<24x128xf32, #tpu.memory_space<vmem>>, vector<1x32xf32>
    %c7 = arith.constant 7 : index
    %c0_28 = arith.constant 0 : index
    %65 = vector.load %arg6[%c7, %c0_28] : memref<24x128xf32, #tpu.memory_space<vmem>>, vector<1x32xf32>
    %cst_29 = arith.constant dense<0.000000e+00> : vector<16xf32>
    %66 = vector.multi_reduction <add>, %63, %cst_29 [1] : vector<16x32xf32> to vector<16xf32>
    %67 = vector.shape_cast %66 : vector<16xf32> to vector<16x1xf32>
    %cst_30 = arith.constant 3.200000e+01 : f32
    %68 = vector.broadcast %cst_30 : f32 to vector<16x1xf32>
    %69 = arith.divf %67, %68 : vector<16x1xf32>
    %70 = vector.broadcast %69 : vector<16x1xf32> to vector<16x32xf32>
    %71 = arith.subf %63, %70 : vector<16x32xf32>
    %72 = arith.mulf %71, %71 : vector<16x32xf32>
    %cst_31 = arith.constant dense<0.000000e+00> : vector<16xf32>
    %73 = vector.multi_reduction <add>, %72, %cst_31 [1] : vector<16x32xf32> to vector<16xf32>
    %74 = vector.shape_cast %73 : vector<16xf32> to vector<16x1xf32>
    %cst_32 = arith.constant 3.200000e+01 : f32
    %75 = vector.broadcast %cst_32 : f32 to vector<16x1xf32>
    %76 = arith.divf %74, %75 : vector<16x1xf32>
    %cst_33 = arith.constant 9.99999974E-6 : f32
    %77 = vector.broadcast %cst_33 : f32 to vector<16x1xf32>
    %78 = arith.addf %76, %77 : vector<16x1xf32>
    %79 = math.rsqrt %78 : vector<16x1xf32>
    %80 = vector.broadcast %79 : vector<16x1xf32> to vector<16x32xf32>
    %81 = arith.mulf %71, %80 : vector<16x32xf32>
    %82 = vector.broadcast %64 : vector<1x32xf32> to vector<16x32xf32>
    %83 = arith.mulf %81, %82 : vector<16x32xf32>
    %84 = vector.broadcast %65 : vector<1x32xf32> to vector<16x32xf32>
    %85 = arith.addf %83, %84 : vector<16x32xf32>
    %86 = arith.truncf %85 : vector<16x32xf32> to vector<16x32xbf16>
    %c1_34 = arith.constant 1 : index
    %c0_35 = arith.constant 0 : index
    %c0_36 = arith.constant 0 : index
    %87 = vector.load %arg2[%c1_34, %c0_35, %c0_36] : memref<4x32x96xbf16, #tpu.memory_space<vmem>>, vector<1x32x32xbf16>
    %88 = vector.shape_cast %87 : vector<1x32x32xbf16> to vector<32x32xbf16>
    %cst_37 = arith.constant dense<0.000000e+00> : vector<16x32xf32>
    %89 = tpu.matmul %86, %88, %cst_37 {dimension_numbers = #tpu.dot_dimension_numbers<[1], [0], [0], [1], [0, 0, 1, 1], [], []>} : vector<16x32xbf16>, vector<32x32xbf16>, vector<16x32xf32> -> vector<16x32xf32>
    %c2 = arith.constant 2 : index
    %c0_38 = arith.constant 0 : index
    %90 = vector.load %arg6[%c2, %c0_38] : memref<24x128xf32, #tpu.memory_space<vmem>>, vector<1x32xf32>
    %91 = vector.broadcast %90 : vector<1x32xf32> to vector<16x32xf32>
    %92 = arith.addf %89, %91 : vector<16x32xf32>
    %c1_39 = arith.constant 1 : index
    %c0_40 = arith.constant 0 : index
    %c32 = arith.constant 32 : index
    %93 = vector.load %arg2[%c1_39, %c0_40, %c32] : memref<4x32x96xbf16, #tpu.memory_space<vmem>>, vector<1x32x64xbf16>
    %94 = vector.shape_cast %93 : vector<1x32x64xbf16> to vector<32x64xbf16>
    %cst_41 = arith.constant dense<0.000000e+00> : vector<16x64xf32>
    %95 = tpu.matmul %5, %94, %cst_41 {dimension_numbers = #tpu.dot_dimension_numbers<[1], [0], [0], [1], [0, 0, 1, 1], [], []>} : vector<16x32xbf16>, vector<32x64xbf16>, vector<16x64xf32> -> vector<16x64xf32>
    %c2_42 = arith.constant 2 : index
    %c32_43 = arith.constant 32 : index
    %96 = vector.load %arg6[%c2_42, %c32_43] : memref<24x128xf32, #tpu.memory_space<vmem>>, vector<1x64xf32>
    %97 = vector.broadcast %96 : vector<1x64xf32> to vector<16x64xf32>
    %98 = arith.addf %95, %97 : vector<16x64xf32>
    %99 = vector.extract_strided_slice %98 {offsets = [0, 0], sizes = [16, 32], strides = [1, 1]} : vector<16x64xf32> to vector<16x32xf32>
    %100 = vector.extract_strided_slice %98 {offsets = [0, 32], sizes = [16, 32], strides = [1, 1]} : vector<16x64xf32> to vector<16x32xf32>
    %c1_44 = arith.constant 1 : index
    %c0_45 = arith.constant 0 : index
    %c0_46 = arith.constant 0 : index
    %101 = vector.load %arg3[%c1_44, %c0_45, %c0_46] : memref<4x32x32xbf16, #tpu.memory_space<vmem>>, vector<1x32x32xbf16>
    %102 = vector.shape_cast %101 : vector<1x32x32xbf16> to vector<32x32xbf16>
    %c3 = arith.constant 3 : index
    %c0_47 = arith.constant 0 : index
    %103 = vector.load %arg6[%c3, %c0_47] : memref<24x128xf32, #tpu.memory_space<vmem>>, vector<1x32xf32>
    %104 = arith.truncf %92 : vector<16x32xf32> to vector<16x32xbf16>
    %105 = arith.truncf %99 : vector<16x32xf32> to vector<16x32xbf16>
    %106 = arith.truncf %100 : vector<16x32xf32> to vector<16x32xbf16>
    %107 = vector.extract_strided_slice %104 {offsets = [0, 0], sizes = [16, 8], strides = [1, 1]} : vector<16x32xbf16> to vector<16x8xbf16>
    %108 = vector.extract_strided_slice %105 {offsets = [0, 0], sizes = [16, 8], strides = [1, 1]} : vector<16x32xbf16> to vector<16x8xbf16>
    %cst_48 = arith.constant dense<0.000000e+00> : vector<16x16xf32>
    %109 = tpu.matmul %107, %108, %cst_48 {dimension_numbers = #tpu.dot_dimension_numbers<[1], [1], [0], [0], [0, 0, 1, 0], [], []>} : vector<16x8xbf16>, vector<16x8xbf16>, vector<16x16xf32> -> vector<16x16xf32>
    %110 = vector.extract_strided_slice %104 {offsets = [0, 8], sizes = [16, 8], strides = [1, 1]} : vector<16x32xbf16> to vector<16x8xbf16>
    %111 = vector.extract_strided_slice %105 {offsets = [0, 8], sizes = [16, 8], strides = [1, 1]} : vector<16x32xbf16> to vector<16x8xbf16>
    %cst_49 = arith.constant dense<0.000000e+00> : vector<16x16xf32>
    %112 = tpu.matmul %110, %111, %cst_49 {dimension_numbers = #tpu.dot_dimension_numbers<[1], [1], [0], [0], [0, 0, 1, 0], [], []>} : vector<16x8xbf16>, vector<16x8xbf16>, vector<16x16xf32> -> vector<16x16xf32>
    %113 = vector.extract_strided_slice %104 {offsets = [0, 16], sizes = [16, 8], strides = [1, 1]} : vector<16x32xbf16> to vector<16x8xbf16>
    %114 = vector.extract_strided_slice %105 {offsets = [0, 16], sizes = [16, 8], strides = [1, 1]} : vector<16x32xbf16> to vector<16x8xbf16>
    %cst_50 = arith.constant dense<0.000000e+00> : vector<16x16xf32>
    %115 = tpu.matmul %113, %114, %cst_50 {dimension_numbers = #tpu.dot_dimension_numbers<[1], [1], [0], [0], [0, 0, 1, 0], [], []>} : vector<16x8xbf16>, vector<16x8xbf16>, vector<16x16xf32> -> vector<16x16xf32>
    %116 = vector.extract_strided_slice %104 {offsets = [0, 24], sizes = [16, 8], strides = [1, 1]} : vector<16x32xbf16> to vector<16x8xbf16>
    %117 = vector.extract_strided_slice %105 {offsets = [0, 24], sizes = [16, 8], strides = [1, 1]} : vector<16x32xbf16> to vector<16x8xbf16>
    %cst_51 = arith.constant dense<0.000000e+00> : vector<16x16xf32>
    %118 = tpu.matmul %116, %117, %cst_51 {dimension_numbers = #tpu.dot_dimension_numbers<[1], [1], [0], [0], [0, 0, 1, 0], [], []>} : vector<16x8xbf16>, vector<16x8xbf16>, vector<16x16xf32> -> vector<16x16xf32>
    %119 = tpu.concatenate %109, %112, %115, %118 in 0 : vector<16x16xf32>, vector<16x16xf32>, vector<16x16xf32>, vector<16x16xf32> -> vector<64x16xf32>
    %120 = arith.addf %119, %3 : vector<64x16xf32>
    %cst_52 = arith.constant dense<0xFF800000> : vector<64xf32>
    %121 = vector.multi_reduction <maximumf>, %120, %cst_52 [1] : vector<64x16xf32> to vector<64xf32>
    %122 = vector.shape_cast %121 : vector<64xf32> to vector<64x1xf32>
    %123 = vector.broadcast %122 : vector<64x1xf32> to vector<64x16xf32>
    %124 = arith.subf %120, %123 : vector<64x16xf32>
    %125 = math.exp %124 : vector<64x16xf32>
    %cst_53 = arith.constant dense<0.000000e+00> : vector<64xf32>
    %126 = vector.multi_reduction <add>, %125, %cst_53 [1] : vector<64x16xf32> to vector<64xf32>
    %127 = vector.shape_cast %126 : vector<64xf32> to vector<64x1xf32>
    %128 = tpu.reciprocal %127 {approx = true} : vector<64x1xf32> -> vector<64x1xf32>
    %129 = vector.broadcast %128 : vector<64x1xf32> to vector<64x16xf32>
    %130 = arith.mulf %125, %129 : vector<64x16xf32>
    %131 = arith.truncf %130 : vector<64x16xf32> to vector<64x16xbf16>
    %132 = vector.extract_strided_slice %131 {offsets = [0, 0], sizes = [16, 16], strides = [1, 1]} : vector<64x16xbf16> to vector<16x16xbf16>
    %133 = vector.extract_strided_slice %106 {offsets = [0, 0], sizes = [16, 8], strides = [1, 1]} : vector<16x32xbf16> to vector<16x8xbf16>
    %cst_54 = arith.constant dense<0.000000e+00> : vector<16x8xf32>
    %134 = tpu.matmul %132, %133, %cst_54 {dimension_numbers = #tpu.dot_dimension_numbers<[1], [0], [0], [1], [0, 0, 1, 1], [], []>} : vector<16x16xbf16>, vector<16x8xbf16>, vector<16x8xf32> -> vector<16x8xf32>
    %135 = vector.extract_strided_slice %131 {offsets = [16, 0], sizes = [16, 16], strides = [1, 1]} : vector<64x16xbf16> to vector<16x16xbf16>
    %136 = vector.extract_strided_slice %106 {offsets = [0, 8], sizes = [16, 8], strides = [1, 1]} : vector<16x32xbf16> to vector<16x8xbf16>
    %cst_55 = arith.constant dense<0.000000e+00> : vector<16x8xf32>
    %137 = tpu.matmul %135, %136, %cst_55 {dimension_numbers = #tpu.dot_dimension_numbers<[1], [0], [0], [1], [0, 0, 1, 1], [], []>} : vector<16x16xbf16>, vector<16x8xbf16>, vector<16x8xf32> -> vector<16x8xf32>
    %138 = vector.extract_strided_slice %131 {offsets = [32, 0], sizes = [16, 16], strides = [1, 1]} : vector<64x16xbf16> to vector<16x16xbf16>
    %139 = vector.extract_strided_slice %106 {offsets = [0, 16], sizes = [16, 8], strides = [1, 1]} : vector<16x32xbf16> to vector<16x8xbf16>
    %cst_56 = arith.constant dense<0.000000e+00> : vector<16x8xf32>
    %140 = tpu.matmul %138, %139, %cst_56 {dimension_numbers = #tpu.dot_dimension_numbers<[1], [0], [0], [1], [0, 0, 1, 1], [], []>} : vector<16x16xbf16>, vector<16x8xbf16>, vector<16x8xf32> -> vector<16x8xf32>
    %141 = vector.extract_strided_slice %131 {offsets = [48, 0], sizes = [16, 16], strides = [1, 1]} : vector<64x16xbf16> to vector<16x16xbf16>
    %142 = vector.extract_strided_slice %106 {offsets = [0, 24], sizes = [16, 8], strides = [1, 1]} : vector<16x32xbf16> to vector<16x8xbf16>
    %cst_57 = arith.constant dense<0.000000e+00> : vector<16x8xf32>
    %143 = tpu.matmul %141, %142, %cst_57 {dimension_numbers = #tpu.dot_dimension_numbers<[1], [0], [0], [1], [0, 0, 1, 1], [], []>} : vector<16x16xbf16>, vector<16x8xbf16>, vector<16x8xf32> -> vector<16x8xf32>
    %144 = tpu.concatenate %134, %137, %140, %143 in 1 : vector<16x8xf32>, vector<16x8xf32>, vector<16x8xf32>, vector<16x8xf32> -> vector<16x32xf32>
    %145 = arith.truncf %144 : vector<16x32xf32> to vector<16x32xbf16>
    %cst_58 = arith.constant dense<0.000000e+00> : vector<16x32xf32>
    %146 = tpu.matmul %145, %102, %cst_58 {dimension_numbers = #tpu.dot_dimension_numbers<[1], [0], [0], [1], [0, 0, 1, 1], [], []>} : vector<16x32xbf16>, vector<32x32xbf16>, vector<16x32xf32> -> vector<16x32xf32>
    %147 = vector.broadcast %103 : vector<1x32xf32> to vector<16x32xf32>
    %148 = arith.addf %146, %147 : vector<16x32xf32>
    %149 = arith.addf %85, %148 : vector<16x32xf32>
    %c8 = arith.constant 8 : index
    %c0_59 = arith.constant 0 : index
    %150 = vector.load %arg6[%c8, %c0_59] : memref<24x128xf32, #tpu.memory_space<vmem>>, vector<1x32xf32>
    %c9 = arith.constant 9 : index
    %c0_60 = arith.constant 0 : index
    %151 = vector.load %arg6[%c9, %c0_60] : memref<24x128xf32, #tpu.memory_space<vmem>>, vector<1x32xf32>
    %cst_61 = arith.constant dense<0.000000e+00> : vector<16xf32>
    %152 = vector.multi_reduction <add>, %149, %cst_61 [1] : vector<16x32xf32> to vector<16xf32>
    %153 = vector.shape_cast %152 : vector<16xf32> to vector<16x1xf32>
    %cst_62 = arith.constant 3.200000e+01 : f32
    %154 = vector.broadcast %cst_62 : f32 to vector<16x1xf32>
    %155 = arith.divf %153, %154 : vector<16x1xf32>
    %156 = vector.broadcast %155 : vector<16x1xf32> to vector<16x32xf32>
    %157 = arith.subf %149, %156 : vector<16x32xf32>
    %158 = arith.mulf %157, %157 : vector<16x32xf32>
    %cst_63 = arith.constant dense<0.000000e+00> : vector<16xf32>
    %159 = vector.multi_reduction <add>, %158, %cst_63 [1] : vector<16x32xf32> to vector<16xf32>
    %160 = vector.shape_cast %159 : vector<16xf32> to vector<16x1xf32>
    %cst_64 = arith.constant 3.200000e+01 : f32
    %161 = vector.broadcast %cst_64 : f32 to vector<16x1xf32>
    %162 = arith.divf %160, %161 : vector<16x1xf32>
    %cst_65 = arith.constant 9.99999974E-6 : f32
    %163 = vector.broadcast %cst_65 : f32 to vector<16x1xf32>
    %164 = arith.addf %162, %163 : vector<16x1xf32>
    %165 = math.rsqrt %164 : vector<16x1xf32>
    %166 = vector.broadcast %165 : vector<16x1xf32> to vector<16x32xf32>
    %167 = arith.mulf %157, %166 : vector<16x32xf32>
    %168 = vector.broadcast %150 : vector<1x32xf32> to vector<16x32xf32>
    %169 = arith.mulf %167, %168 : vector<16x32xf32>
    %170 = vector.broadcast %151 : vector<1x32xf32> to vector<16x32xf32>
    %171 = arith.addf %169, %170 : vector<16x32xf32>
    %172 = arith.truncf %171 : vector<16x32xf32> to vector<16x32xbf16>
    %c0_66 = arith.constant 0 : index
    %c0_67 = arith.constant 0 : index
    %c0_68 = arith.constant 0 : index
    %173 = vector.load %arg4[%c0_66, %c0_67, %c0_68] : memref<2x32x64xbf16, #tpu.memory_space<vmem>>, vector<1x32x64xbf16>
    %174 = vector.shape_cast %173 : vector<1x32x64xbf16> to vector<32x64xbf16>
    %cst_69 = arith.constant dense<0.000000e+00> : vector<16x64xf32>
    %175 = tpu.matmul %172, %174, %cst_69 {dimension_numbers = #tpu.dot_dimension_numbers<[1], [0], [0], [1], [0, 0, 1, 1], [], []>} : vector<16x32xbf16>, vector<32x64xbf16>, vector<16x64xf32> -> vector<16x64xf32>
    %c4 = arith.constant 4 : index
    %c0_70 = arith.constant 0 : index
    %176 = vector.load %arg6[%c4, %c0_70] : memref<24x128xf32, #tpu.memory_space<vmem>>, vector<1x64xf32>
    %177 = vector.broadcast %176 : vector<1x64xf32> to vector<16x64xf32>
    %178 = arith.addf %175, %177 : vector<16x64xf32>
    %cst_71 = arith.constant 0.000000e+00 : f32
    %179 = vector.broadcast %cst_71 : f32 to vector<16x64xf32>
    %180 = arith.maximumf %178, %179 : vector<16x64xf32>
    %181 = arith.truncf %180 : vector<16x64xf32> to vector<16x64xbf16>
    %c0_72 = arith.constant 0 : index
    %c0_73 = arith.constant 0 : index
    %c0_74 = arith.constant 0 : index
    %182 = vector.load %arg5[%c0_72, %c0_73, %c0_74] : memref<2x64x32xbf16, #tpu.memory_space<vmem>>, vector<1x64x32xbf16>
    %183 = vector.shape_cast %182 : vector<1x64x32xbf16> to vector<64x32xbf16>
    %cst_75 = arith.constant dense<0.000000e+00> : vector<16x32xf32>
    %184 = tpu.matmul %181, %183, %cst_75 {dimension_numbers = #tpu.dot_dimension_numbers<[1], [0], [0], [1], [0, 0, 1, 1], [], []>} : vector<16x64xbf16>, vector<64x32xbf16>, vector<16x32xf32> -> vector<16x32xf32>
    %c5 = arith.constant 5 : index
    %c0_76 = arith.constant 0 : index
    %185 = vector.load %arg6[%c5, %c0_76] : memref<24x128xf32, #tpu.memory_space<vmem>>, vector<1x32xf32>
    %186 = vector.broadcast %185 : vector<1x32xf32> to vector<16x32xf32>
    %187 = arith.addf %184, %186 : vector<16x32xf32>
    %188 = arith.addf %171, %187 : vector<16x32xf32>
    %c10 = arith.constant 10 : index
    %c0_77 = arith.constant 0 : index
    %189 = vector.load %arg6[%c10, %c0_77] : memref<24x128xf32, #tpu.memory_space<vmem>>, vector<1x32xf32>
    %c11 = arith.constant 11 : index
    %c0_78 = arith.constant 0 : index
    %190 = vector.load %arg6[%c11, %c0_78] : memref<24x128xf32, #tpu.memory_space<vmem>>, vector<1x32xf32>
    %cst_79 = arith.constant dense<0.000000e+00> : vector<16xf32>
    %191 = vector.multi_reduction <add>, %188, %cst_79 [1] : vector<16x32xf32> to vector<16xf32>
    %192 = vector.shape_cast %191 : vector<16xf32> to vector<16x1xf32>
    %cst_80 = arith.constant 3.200000e+01 : f32
    %193 = vector.broadcast %cst_80 : f32 to vector<16x1xf32>
    %194 = arith.divf %192, %193 : vector<16x1xf32>
    %195 = vector.broadcast %194 : vector<16x1xf32> to vector<16x32xf32>
    %196 = arith.subf %188, %195 : vector<16x32xf32>
    %197 = arith.mulf %196, %196 : vector<16x32xf32>
    %cst_81 = arith.constant dense<0.000000e+00> : vector<16xf32>
    %198 = vector.multi_reduction <add>, %197, %cst_81 [1] : vector<16x32xf32> to vector<16xf32>
    %199 = vector.shape_cast %198 : vector<16xf32> to vector<16x1xf32>
    %cst_82 = arith.constant 3.200000e+01 : f32
    %200 = vector.broadcast %cst_82 : f32 to vector<16x1xf32>
    %201 = arith.divf %199, %200 : vector<16x1xf32>
    %cst_83 = arith.constant 9.99999974E-6 : f32
    %202 = vector.broadcast %cst_83 : f32 to vector<16x1xf32>
    %203 = arith.addf %201, %202 : vector<16x1xf32>
    %204 = math.rsqrt %203 : vector<16x1xf32>
    %205 = vector.broadcast %204 : vector<16x1xf32> to vector<16x32xf32>
    %206 = arith.mulf %196, %205 : vector<16x32xf32>
    %207 = vector.broadcast %189 : vector<1x32xf32> to vector<16x32xf32>
    %208 = arith.mulf %206, %207 : vector<16x32xf32>
    %209 = vector.broadcast %190 : vector<1x32xf32> to vector<16x32xf32>
    %210 = arith.addf %208, %209 : vector<16x32xf32>
    %211 = arith.truncf %210 : vector<16x32xf32> to vector<16x32xbf16>
    %c2_84 = arith.constant 2 : index
    %c0_85 = arith.constant 0 : index
    %c0_86 = arith.constant 0 : index
    %212 = vector.load %arg2[%c2_84, %c0_85, %c0_86] : memref<4x32x96xbf16, #tpu.memory_space<vmem>>, vector<1x32x96xbf16>
    %213 = vector.shape_cast %212 : vector<1x32x96xbf16> to vector<32x96xbf16>
    %cst_87 = arith.constant dense<0.000000e+00> : vector<16x96xf32>
    %214 = tpu.matmul %211, %213, %cst_87 {dimension_numbers = #tpu.dot_dimension_numbers<[1], [0], [0], [1], [0, 0, 1, 1], [], []>} : vector<16x32xbf16>, vector<32x96xbf16>, vector<16x96xf32> -> vector<16x96xf32>
    %c12 = arith.constant 12 : index
    %c0_88 = arith.constant 0 : index
    %215 = vector.load %arg6[%c12, %c0_88] : memref<24x128xf32, #tpu.memory_space<vmem>>, vector<1x96xf32>
    %216 = vector.broadcast %215 : vector<1x96xf32> to vector<16x96xf32>
    %217 = arith.addf %214, %216 : vector<16x96xf32>
    %218 = vector.extract_strided_slice %217 {offsets = [0, 0], sizes = [16, 32], strides = [1, 1]} : vector<16x96xf32> to vector<16x32xf32>
    %219 = vector.extract_strided_slice %217 {offsets = [0, 32], sizes = [16, 32], strides = [1, 1]} : vector<16x96xf32> to vector<16x32xf32>
    %220 = vector.extract_strided_slice %217 {offsets = [0, 64], sizes = [16, 32], strides = [1, 1]} : vector<16x96xf32> to vector<16x32xf32>
    %c2_89 = arith.constant 2 : index
    %c0_90 = arith.constant 0 : index
    %c0_91 = arith.constant 0 : index
    %221 = vector.load %arg3[%c2_89, %c0_90, %c0_91] : memref<4x32x32xbf16, #tpu.memory_space<vmem>>, vector<1x32x32xbf16>
    %222 = vector.shape_cast %221 : vector<1x32x32xbf16> to vector<32x32xbf16>
    %c13 = arith.constant 13 : index
    %c0_92 = arith.constant 0 : index
    %223 = vector.load %arg6[%c13, %c0_92] : memref<24x128xf32, #tpu.memory_space<vmem>>, vector<1x32xf32>
    %224 = arith.truncf %218 : vector<16x32xf32> to vector<16x32xbf16>
    %225 = arith.truncf %219 : vector<16x32xf32> to vector<16x32xbf16>
    %226 = arith.truncf %220 : vector<16x32xf32> to vector<16x32xbf16>
    %227 = vector.extract_strided_slice %224 {offsets = [0, 0], sizes = [16, 8], strides = [1, 1]} : vector<16x32xbf16> to vector<16x8xbf16>
    %228 = vector.extract_strided_slice %225 {offsets = [0, 0], sizes = [16, 8], strides = [1, 1]} : vector<16x32xbf16> to vector<16x8xbf16>
    %cst_93 = arith.constant dense<0.000000e+00> : vector<16x16xf32>
    %229 = tpu.matmul %227, %228, %cst_93 {dimension_numbers = #tpu.dot_dimension_numbers<[1], [1], [0], [0], [0, 0, 1, 0], [], []>} : vector<16x8xbf16>, vector<16x8xbf16>, vector<16x16xf32> -> vector<16x16xf32>
    %230 = vector.extract_strided_slice %224 {offsets = [0, 8], sizes = [16, 8], strides = [1, 1]} : vector<16x32xbf16> to vector<16x8xbf16>
    %231 = vector.extract_strided_slice %225 {offsets = [0, 8], sizes = [16, 8], strides = [1, 1]} : vector<16x32xbf16> to vector<16x8xbf16>
    %cst_94 = arith.constant dense<0.000000e+00> : vector<16x16xf32>
    %232 = tpu.matmul %230, %231, %cst_94 {dimension_numbers = #tpu.dot_dimension_numbers<[1], [1], [0], [0], [0, 0, 1, 0], [], []>} : vector<16x8xbf16>, vector<16x8xbf16>, vector<16x16xf32> -> vector<16x16xf32>
    %233 = vector.extract_strided_slice %224 {offsets = [0, 16], sizes = [16, 8], strides = [1, 1]} : vector<16x32xbf16> to vector<16x8xbf16>
    %234 = vector.extract_strided_slice %225 {offsets = [0, 16], sizes = [16, 8], strides = [1, 1]} : vector<16x32xbf16> to vector<16x8xbf16>
    %cst_95 = arith.constant dense<0.000000e+00> : vector<16x16xf32>
    %235 = tpu.matmul %233, %234, %cst_95 {dimension_numbers = #tpu.dot_dimension_numbers<[1], [1], [0], [0], [0, 0, 1, 0], [], []>} : vector<16x8xbf16>, vector<16x8xbf16>, vector<16x16xf32> -> vector<16x16xf32>
    %236 = vector.extract_strided_slice %224 {offsets = [0, 24], sizes = [16, 8], strides = [1, 1]} : vector<16x32xbf16> to vector<16x8xbf16>
    %237 = vector.extract_strided_slice %225 {offsets = [0, 24], sizes = [16, 8], strides = [1, 1]} : vector<16x32xbf16> to vector<16x8xbf16>
    %cst_96 = arith.constant dense<0.000000e+00> : vector<16x16xf32>
    %238 = tpu.matmul %236, %237, %cst_96 {dimension_numbers = #tpu.dot_dimension_numbers<[1], [1], [0], [0], [0, 0, 1, 0], [], []>} : vector<16x8xbf16>, vector<16x8xbf16>, vector<16x16xf32> -> vector<16x16xf32>
    %239 = tpu.concatenate %229, %232, %235, %238 in 0 : vector<16x16xf32>, vector<16x16xf32>, vector<16x16xf32>, vector<16x16xf32> -> vector<64x16xf32>
    %240 = arith.addf %239, %1 : vector<64x16xf32>
    %cst_97 = arith.constant dense<0xFF800000> : vector<64xf32>
    %241 = vector.multi_reduction <maximumf>, %240, %cst_97 [1] : vector<64x16xf32> to vector<64xf32>
    %242 = vector.shape_cast %241 : vector<64xf32> to vector<64x1xf32>
    %243 = vector.broadcast %242 : vector<64x1xf32> to vector<64x16xf32>
    %244 = arith.subf %240, %243 : vector<64x16xf32>
    %245 = math.exp %244 : vector<64x16xf32>
    %cst_98 = arith.constant dense<0.000000e+00> : vector<64xf32>
    %246 = vector.multi_reduction <add>, %245, %cst_98 [1] : vector<64x16xf32> to vector<64xf32>
    %247 = vector.shape_cast %246 : vector<64xf32> to vector<64x1xf32>
    %248 = tpu.reciprocal %247 {approx = true} : vector<64x1xf32> -> vector<64x1xf32>
    %249 = vector.broadcast %248 : vector<64x1xf32> to vector<64x16xf32>
    %250 = arith.mulf %245, %249 : vector<64x16xf32>
    %251 = arith.truncf %250 : vector<64x16xf32> to vector<64x16xbf16>
    %252 = vector.extract_strided_slice %251 {offsets = [0, 0], sizes = [16, 16], strides = [1, 1]} : vector<64x16xbf16> to vector<16x16xbf16>
    %253 = vector.extract_strided_slice %226 {offsets = [0, 0], sizes = [16, 8], strides = [1, 1]} : vector<16x32xbf16> to vector<16x8xbf16>
    %cst_99 = arith.constant dense<0.000000e+00> : vector<16x8xf32>
    %254 = tpu.matmul %252, %253, %cst_99 {dimension_numbers = #tpu.dot_dimension_numbers<[1], [0], [0], [1], [0, 0, 1, 1], [], []>} : vector<16x16xbf16>, vector<16x8xbf16>, vector<16x8xf32> -> vector<16x8xf32>
    %255 = vector.extract_strided_slice %251 {offsets = [16, 0], sizes = [16, 16], strides = [1, 1]} : vector<64x16xbf16> to vector<16x16xbf16>
    %256 = vector.extract_strided_slice %226 {offsets = [0, 8], sizes = [16, 8], strides = [1, 1]} : vector<16x32xbf16> to vector<16x8xbf16>
    %cst_100 = arith.constant dense<0.000000e+00> : vector<16x8xf32>
    %257 = tpu.matmul %255, %256, %cst_100 {dimension_numbers = #tpu.dot_dimension_numbers<[1], [0], [0], [1], [0, 0, 1, 1], [], []>} : vector<16x16xbf16>, vector<16x8xbf16>, vector<16x8xf32> -> vector<16x8xf32>
    %258 = vector.extract_strided_slice %251 {offsets = [32, 0], sizes = [16, 16], strides = [1, 1]} : vector<64x16xbf16> to vector<16x16xbf16>
    %259 = vector.extract_strided_slice %226 {offsets = [0, 16], sizes = [16, 8], strides = [1, 1]} : vector<16x32xbf16> to vector<16x8xbf16>
    %cst_101 = arith.constant dense<0.000000e+00> : vector<16x8xf32>
    %260 = tpu.matmul %258, %259, %cst_101 {dimension_numbers = #tpu.dot_dimension_numbers<[1], [0], [0], [1], [0, 0, 1, 1], [], []>} : vector<16x16xbf16>, vector<16x8xbf16>, vector<16x8xf32> -> vector<16x8xf32>
    %261 = vector.extract_strided_slice %251 {offsets = [48, 0], sizes = [16, 16], strides = [1, 1]} : vector<64x16xbf16> to vector<16x16xbf16>
    %262 = vector.extract_strided_slice %226 {offsets = [0, 24], sizes = [16, 8], strides = [1, 1]} : vector<16x32xbf16> to vector<16x8xbf16>
    %cst_102 = arith.constant dense<0.000000e+00> : vector<16x8xf32>
    %263 = tpu.matmul %261, %262, %cst_102 {dimension_numbers = #tpu.dot_dimension_numbers<[1], [0], [0], [1], [0, 0, 1, 1], [], []>} : vector<16x16xbf16>, vector<16x8xbf16>, vector<16x8xf32> -> vector<16x8xf32>
    %264 = tpu.concatenate %254, %257, %260, %263 in 1 : vector<16x8xf32>, vector<16x8xf32>, vector<16x8xf32>, vector<16x8xf32> -> vector<16x32xf32>
    %265 = arith.truncf %264 : vector<16x32xf32> to vector<16x32xbf16>
    %cst_103 = arith.constant dense<0.000000e+00> : vector<16x32xf32>
    %266 = tpu.matmul %265, %222, %cst_103 {dimension_numbers = #tpu.dot_dimension_numbers<[1], [0], [0], [1], [0, 0, 1, 1], [], []>} : vector<16x32xbf16>, vector<32x32xbf16>, vector<16x32xf32> -> vector<16x32xf32>
    %267 = vector.broadcast %223 : vector<1x32xf32> to vector<16x32xf32>
    %268 = arith.addf %266, %267 : vector<16x32xf32>
    %269 = arith.addf %210, %268 : vector<16x32xf32>
    %c18 = arith.constant 18 : index
    %c0_104 = arith.constant 0 : index
    %270 = vector.load %arg6[%c18, %c0_104] : memref<24x128xf32, #tpu.memory_space<vmem>>, vector<1x32xf32>
    %c19 = arith.constant 19 : index
    %c0_105 = arith.constant 0 : index
    %271 = vector.load %arg6[%c19, %c0_105] : memref<24x128xf32, #tpu.memory_space<vmem>>, vector<1x32xf32>
    %cst_106 = arith.constant dense<0.000000e+00> : vector<16xf32>
    %272 = vector.multi_reduction <add>, %269, %cst_106 [1] : vector<16x32xf32> to vector<16xf32>
    %273 = vector.shape_cast %272 : vector<16xf32> to vector<16x1xf32>
    %cst_107 = arith.constant 3.200000e+01 : f32
    %274 = vector.broadcast %cst_107 : f32 to vector<16x1xf32>
    %275 = arith.divf %273, %274 : vector<16x1xf32>
    %276 = vector.broadcast %275 : vector<16x1xf32> to vector<16x32xf32>
    %277 = arith.subf %269, %276 : vector<16x32xf32>
    %278 = arith.mulf %277, %277 : vector<16x32xf32>
    %cst_108 = arith.constant dense<0.000000e+00> : vector<16xf32>
    %279 = vector.multi_reduction <add>, %278, %cst_108 [1] : vector<16x32xf32> to vector<16xf32>
    %280 = vector.shape_cast %279 : vector<16xf32> to vector<16x1xf32>
    %cst_109 = arith.constant 3.200000e+01 : f32
    %281 = vector.broadcast %cst_109 : f32 to vector<16x1xf32>
    %282 = arith.divf %280, %281 : vector<16x1xf32>
    %cst_110 = arith.constant 9.99999974E-6 : f32
    %283 = vector.broadcast %cst_110 : f32 to vector<16x1xf32>
    %284 = arith.addf %282, %283 : vector<16x1xf32>
    %285 = math.rsqrt %284 : vector<16x1xf32>
    %286 = vector.broadcast %285 : vector<16x1xf32> to vector<16x32xf32>
    %287 = arith.mulf %277, %286 : vector<16x32xf32>
    %288 = vector.broadcast %270 : vector<1x32xf32> to vector<16x32xf32>
    %289 = arith.mulf %287, %288 : vector<16x32xf32>
    %290 = vector.broadcast %271 : vector<1x32xf32> to vector<16x32xf32>
    %291 = arith.addf %289, %290 : vector<16x32xf32>
    %292 = arith.truncf %291 : vector<16x32xf32> to vector<16x32xbf16>
    %c3_111 = arith.constant 3 : index
    %c0_112 = arith.constant 0 : index
    %c0_113 = arith.constant 0 : index
    %293 = vector.load %arg2[%c3_111, %c0_112, %c0_113] : memref<4x32x96xbf16, #tpu.memory_space<vmem>>, vector<1x32x32xbf16>
    %294 = vector.shape_cast %293 : vector<1x32x32xbf16> to vector<32x32xbf16>
    %cst_114 = arith.constant dense<0.000000e+00> : vector<16x32xf32>
    %295 = tpu.matmul %292, %294, %cst_114 {dimension_numbers = #tpu.dot_dimension_numbers<[1], [0], [0], [1], [0, 0, 1, 1], [], []>} : vector<16x32xbf16>, vector<32x32xbf16>, vector<16x32xf32> -> vector<16x32xf32>
    %c14 = arith.constant 14 : index
    %c0_115 = arith.constant 0 : index
    %296 = vector.load %arg6[%c14, %c0_115] : memref<24x128xf32, #tpu.memory_space<vmem>>, vector<1x32xf32>
    %297 = vector.broadcast %296 : vector<1x32xf32> to vector<16x32xf32>
    %298 = arith.addf %295, %297 : vector<16x32xf32>
    %c3_116 = arith.constant 3 : index
    %c0_117 = arith.constant 0 : index
    %c32_118 = arith.constant 32 : index
    %299 = vector.load %arg2[%c3_116, %c0_117, %c32_118] : memref<4x32x96xbf16, #tpu.memory_space<vmem>>, vector<1x32x64xbf16>
    %300 = vector.shape_cast %299 : vector<1x32x64xbf16> to vector<32x64xbf16>
    %cst_119 = arith.constant dense<0.000000e+00> : vector<16x64xf32>
    %301 = tpu.matmul %211, %300, %cst_119 {dimension_numbers = #tpu.dot_dimension_numbers<[1], [0], [0], [1], [0, 0, 1, 1], [], []>} : vector<16x32xbf16>, vector<32x64xbf16>, vector<16x64xf32> -> vector<16x64xf32>
    %c14_120 = arith.constant 14 : index
    %c32_121 = arith.constant 32 : index
    %302 = vector.load %arg6[%c14_120, %c32_121] : memref<24x128xf32, #tpu.memory_space<vmem>>, vector<1x64xf32>
    %303 = vector.broadcast %302 : vector<1x64xf32> to vector<16x64xf32>
    %304 = arith.addf %301, %303 : vector<16x64xf32>
    %305 = vector.extract_strided_slice %304 {offsets = [0, 0], sizes = [16, 32], strides = [1, 1]} : vector<16x64xf32> to vector<16x32xf32>
    %306 = vector.extract_strided_slice %304 {offsets = [0, 32], sizes = [16, 32], strides = [1, 1]} : vector<16x64xf32> to vector<16x32xf32>
    %c3_122 = arith.constant 3 : index
    %c0_123 = arith.constant 0 : index
    %c0_124 = arith.constant 0 : index
    %307 = vector.load %arg3[%c3_122, %c0_123, %c0_124] : memref<4x32x32xbf16, #tpu.memory_space<vmem>>, vector<1x32x32xbf16>
    %308 = vector.shape_cast %307 : vector<1x32x32xbf16> to vector<32x32xbf16>
    %c15 = arith.constant 15 : index
    %c0_125 = arith.constant 0 : index
    %309 = vector.load %arg6[%c15, %c0_125] : memref<24x128xf32, #tpu.memory_space<vmem>>, vector<1x32xf32>
    %310 = arith.truncf %298 : vector<16x32xf32> to vector<16x32xbf16>
    %311 = arith.truncf %305 : vector<16x32xf32> to vector<16x32xbf16>
    %312 = arith.truncf %306 : vector<16x32xf32> to vector<16x32xbf16>
    %313 = vector.extract_strided_slice %310 {offsets = [0, 0], sizes = [16, 8], strides = [1, 1]} : vector<16x32xbf16> to vector<16x8xbf16>
    %314 = vector.extract_strided_slice %311 {offsets = [0, 0], sizes = [16, 8], strides = [1, 1]} : vector<16x32xbf16> to vector<16x8xbf16>
    %cst_126 = arith.constant dense<0.000000e+00> : vector<16x16xf32>
    %315 = tpu.matmul %313, %314, %cst_126 {dimension_numbers = #tpu.dot_dimension_numbers<[1], [1], [0], [0], [0, 0, 1, 0], [], []>} : vector<16x8xbf16>, vector<16x8xbf16>, vector<16x16xf32> -> vector<16x16xf32>
    %316 = vector.extract_strided_slice %310 {offsets = [0, 8], sizes = [16, 8], strides = [1, 1]} : vector<16x32xbf16> to vector<16x8xbf16>
    %317 = vector.extract_strided_slice %311 {offsets = [0, 8], sizes = [16, 8], strides = [1, 1]} : vector<16x32xbf16> to vector<16x8xbf16>
    %cst_127 = arith.constant dense<0.000000e+00> : vector<16x16xf32>
    %318 = tpu.matmul %316, %317, %cst_127 {dimension_numbers = #tpu.dot_dimension_numbers<[1], [1], [0], [0], [0, 0, 1, 0], [], []>} : vector<16x8xbf16>, vector<16x8xbf16>, vector<16x16xf32> -> vector<16x16xf32>
    %319 = vector.extract_strided_slice %310 {offsets = [0, 16], sizes = [16, 8], strides = [1, 1]} : vector<16x32xbf16> to vector<16x8xbf16>
    %320 = vector.extract_strided_slice %311 {offsets = [0, 16], sizes = [16, 8], strides = [1, 1]} : vector<16x32xbf16> to vector<16x8xbf16>
    %cst_128 = arith.constant dense<0.000000e+00> : vector<16x16xf32>
    %321 = tpu.matmul %319, %320, %cst_128 {dimension_numbers = #tpu.dot_dimension_numbers<[1], [1], [0], [0], [0, 0, 1, 0], [], []>} : vector<16x8xbf16>, vector<16x8xbf16>, vector<16x16xf32> -> vector<16x16xf32>
    %322 = vector.extract_strided_slice %310 {offsets = [0, 24], sizes = [16, 8], strides = [1, 1]} : vector<16x32xbf16> to vector<16x8xbf16>
    %323 = vector.extract_strided_slice %311 {offsets = [0, 24], sizes = [16, 8], strides = [1, 1]} : vector<16x32xbf16> to vector<16x8xbf16>
    %cst_129 = arith.constant dense<0.000000e+00> : vector<16x16xf32>
    %324 = tpu.matmul %322, %323, %cst_129 {dimension_numbers = #tpu.dot_dimension_numbers<[1], [1], [0], [0], [0, 0, 1, 0], [], []>} : vector<16x8xbf16>, vector<16x8xbf16>, vector<16x16xf32> -> vector<16x16xf32>
    %325 = tpu.concatenate %315, %318, %321, %324 in 0 : vector<16x16xf32>, vector<16x16xf32>, vector<16x16xf32>, vector<16x16xf32> -> vector<64x16xf32>
    %326 = arith.addf %325, %3 : vector<64x16xf32>
    %cst_130 = arith.constant dense<0xFF800000> : vector<64xf32>
    %327 = vector.multi_reduction <maximumf>, %326, %cst_130 [1] : vector<64x16xf32> to vector<64xf32>
    %328 = vector.shape_cast %327 : vector<64xf32> to vector<64x1xf32>
    %329 = vector.broadcast %328 : vector<64x1xf32> to vector<64x16xf32>
    %330 = arith.subf %326, %329 : vector<64x16xf32>
    %331 = math.exp %330 : vector<64x16xf32>
    %cst_131 = arith.constant dense<0.000000e+00> : vector<64xf32>
    %332 = vector.multi_reduction <add>, %331, %cst_131 [1] : vector<64x16xf32> to vector<64xf32>
    %333 = vector.shape_cast %332 : vector<64xf32> to vector<64x1xf32>
    %334 = tpu.reciprocal %333 {approx = true} : vector<64x1xf32> -> vector<64x1xf32>
    %335 = vector.broadcast %334 : vector<64x1xf32> to vector<64x16xf32>
    %336 = arith.mulf %331, %335 : vector<64x16xf32>
    %337 = arith.truncf %336 : vector<64x16xf32> to vector<64x16xbf16>
    %338 = vector.extract_strided_slice %337 {offsets = [0, 0], sizes = [16, 16], strides = [1, 1]} : vector<64x16xbf16> to vector<16x16xbf16>
    %339 = vector.extract_strided_slice %312 {offsets = [0, 0], sizes = [16, 8], strides = [1, 1]} : vector<16x32xbf16> to vector<16x8xbf16>
    %cst_132 = arith.constant dense<0.000000e+00> : vector<16x8xf32>
    %340 = tpu.matmul %338, %339, %cst_132 {dimension_numbers = #tpu.dot_dimension_numbers<[1], [0], [0], [1], [0, 0, 1, 1], [], []>} : vector<16x16xbf16>, vector<16x8xbf16>, vector<16x8xf32> -> vector<16x8xf32>
    %341 = vector.extract_strided_slice %337 {offsets = [16, 0], sizes = [16, 16], strides = [1, 1]} : vector<64x16xbf16> to vector<16x16xbf16>
    %342 = vector.extract_strided_slice %312 {offsets = [0, 8], sizes = [16, 8], strides = [1, 1]} : vector<16x32xbf16> to vector<16x8xbf16>
    %cst_133 = arith.constant dense<0.000000e+00> : vector<16x8xf32>
    %343 = tpu.matmul %341, %342, %cst_133 {dimension_numbers = #tpu.dot_dimension_numbers<[1], [0], [0], [1], [0, 0, 1, 1], [], []>} : vector<16x16xbf16>, vector<16x8xbf16>, vector<16x8xf32> -> vector<16x8xf32>
    %344 = vector.extract_strided_slice %337 {offsets = [32, 0], sizes = [16, 16], strides = [1, 1]} : vector<64x16xbf16> to vector<16x16xbf16>
    %345 = vector.extract_strided_slice %312 {offsets = [0, 16], sizes = [16, 8], strides = [1, 1]} : vector<16x32xbf16> to vector<16x8xbf16>
    %cst_134 = arith.constant dense<0.000000e+00> : vector<16x8xf32>
    %346 = tpu.matmul %344, %345, %cst_134 {dimension_numbers = #tpu.dot_dimension_numbers<[1], [0], [0], [1], [0, 0, 1, 1], [], []>} : vector<16x16xbf16>, vector<16x8xbf16>, vector<16x8xf32> -> vector<16x8xf32>
    %347 = vector.extract_strided_slice %337 {offsets = [48, 0], sizes = [16, 16], strides = [1, 1]} : vector<64x16xbf16> to vector<16x16xbf16>
    %348 = vector.extract_strided_slice %312 {offsets = [0, 24], sizes = [16, 8], strides = [1, 1]} : vector<16x32xbf16> to vector<16x8xbf16>
    %cst_135 = arith.constant dense<0.000000e+00> : vector<16x8xf32>
    %349 = tpu.matmul %347, %348, %cst_135 {dimension_numbers = #tpu.dot_dimension_numbers<[1], [0], [0], [1], [0, 0, 1, 1], [], []>} : vector<16x16xbf16>, vector<16x8xbf16>, vector<16x8xf32> -> vector<16x8xf32>
    %350 = tpu.concatenate %340, %343, %346, %349 in 1 : vector<16x8xf32>, vector<16x8xf32>, vector<16x8xf32>, vector<16x8xf32> -> vector<16x32xf32>
    %351 = arith.truncf %350 : vector<16x32xf32> to vector<16x32xbf16>
    %cst_136 = arith.constant dense<0.000000e+00> : vector<16x32xf32>
    %352 = tpu.matmul %351, %308, %cst_136 {dimension_numbers = #tpu.dot_dimension_numbers<[1], [0], [0], [1], [0, 0, 1, 1], [], []>} : vector<16x32xbf16>, vector<32x32xbf16>, vector<16x32xf32> -> vector<16x32xf32>
    %353 = vector.broadcast %309 : vector<1x32xf32> to vector<16x32xf32>
    %354 = arith.addf %352, %353 : vector<16x32xf32>
    %355 = arith.addf %291, %354 : vector<16x32xf32>
    %c20 = arith.constant 20 : index
    %c0_137 = arith.constant 0 : index
    %356 = vector.load %arg6[%c20, %c0_137] : memref<24x128xf32, #tpu.memory_space<vmem>>, vector<1x32xf32>
    %c21 = arith.constant 21 : index
    %c0_138 = arith.constant 0 : index
    %357 = vector.load %arg6[%c21, %c0_138] : memref<24x128xf32, #tpu.memory_space<vmem>>, vector<1x32xf32>
    %cst_139 = arith.constant dense<0.000000e+00> : vector<16xf32>
    %358 = vector.multi_reduction <add>, %355, %cst_139 [1] : vector<16x32xf32> to vector<16xf32>
    %359 = vector.shape_cast %358 : vector<16xf32> to vector<16x1xf32>
    %cst_140 = arith.constant 3.200000e+01 : f32
    %360 = vector.broadcast %cst_140 : f32 to vector<16x1xf32>
    %361 = arith.divf %359, %360 : vector<16x1xf32>
    %362 = vector.broadcast %361 : vector<16x1xf32> to vector<16x32xf32>
    %363 = arith.subf %355, %362 : vector<16x32xf32>
    %364 = arith.mulf %363, %363 : vector<16x32xf32>
    %cst_141 = arith.constant dense<0.000000e+00> : vector<16xf32>
    %365 = vector.multi_reduction <add>, %364, %cst_141 [1] : vector<16x32xf32> to vector<16xf32>
    %366 = vector.shape_cast %365 : vector<16xf32> to vector<16x1xf32>
    %cst_142 = arith.constant 3.200000e+01 : f32
    %367 = vector.broadcast %cst_142 : f32 to vector<16x1xf32>
    %368 = arith.divf %366, %367 : vector<16x1xf32>
    %cst_143 = arith.constant 9.99999974E-6 : f32
    %369 = vector.broadcast %cst_143 : f32 to vector<16x1xf32>
    %370 = arith.addf %368, %369 : vector<16x1xf32>
    %371 = math.rsqrt %370 : vector<16x1xf32>
    %372 = vector.broadcast %371 : vector<16x1xf32> to vector<16x32xf32>
    %373 = arith.mulf %363, %372 : vector<16x32xf32>
    %374 = vector.broadcast %356 : vector<1x32xf32> to vector<16x32xf32>
    %375 = arith.mulf %373, %374 : vector<16x32xf32>
    %376 = vector.broadcast %357 : vector<1x32xf32> to vector<16x32xf32>
    %377 = arith.addf %375, %376 : vector<16x32xf32>
    %378 = arith.truncf %377 : vector<16x32xf32> to vector<16x32xbf16>
    %c1_144 = arith.constant 1 : index
    %c0_145 = arith.constant 0 : index
    %c0_146 = arith.constant 0 : index
    %379 = vector.load %arg4[%c1_144, %c0_145, %c0_146] : memref<2x32x64xbf16, #tpu.memory_space<vmem>>, vector<1x32x64xbf16>
    %380 = vector.shape_cast %379 : vector<1x32x64xbf16> to vector<32x64xbf16>
    %cst_147 = arith.constant dense<0.000000e+00> : vector<16x64xf32>
    %381 = tpu.matmul %378, %380, %cst_147 {dimension_numbers = #tpu.dot_dimension_numbers<[1], [0], [0], [1], [0, 0, 1, 1], [], []>} : vector<16x32xbf16>, vector<32x64xbf16>, vector<16x64xf32> -> vector<16x64xf32>
    %c16 = arith.constant 16 : index
    %c0_148 = arith.constant 0 : index
    %382 = vector.load %arg6[%c16, %c0_148] : memref<24x128xf32, #tpu.memory_space<vmem>>, vector<1x64xf32>
    %383 = vector.broadcast %382 : vector<1x64xf32> to vector<16x64xf32>
    %384 = arith.addf %381, %383 : vector<16x64xf32>
    %cst_149 = arith.constant 0.000000e+00 : f32
    %385 = vector.broadcast %cst_149 : f32 to vector<16x64xf32>
    %386 = arith.maximumf %384, %385 : vector<16x64xf32>
    %387 = arith.truncf %386 : vector<16x64xf32> to vector<16x64xbf16>
    %c1_150 = arith.constant 1 : index
    %c0_151 = arith.constant 0 : index
    %c0_152 = arith.constant 0 : index
    %388 = vector.load %arg5[%c1_150, %c0_151, %c0_152] : memref<2x64x32xbf16, #tpu.memory_space<vmem>>, vector<1x64x32xbf16>
    %389 = vector.shape_cast %388 : vector<1x64x32xbf16> to vector<64x32xbf16>
    %cst_153 = arith.constant dense<0.000000e+00> : vector<16x32xf32>
    %390 = tpu.matmul %387, %389, %cst_153 {dimension_numbers = #tpu.dot_dimension_numbers<[1], [0], [0], [1], [0, 0, 1, 1], [], []>} : vector<16x64xbf16>, vector<64x32xbf16>, vector<16x32xf32> -> vector<16x32xf32>
    %c17 = arith.constant 17 : index
    %c0_154 = arith.constant 0 : index
    %391 = vector.load %arg6[%c17, %c0_154] : memref<24x128xf32, #tpu.memory_space<vmem>>, vector<1x32xf32>
    %392 = vector.broadcast %391 : vector<1x32xf32> to vector<16x32xf32>
    %393 = arith.addf %390, %392 : vector<16x32xf32>
    %394 = arith.addf %377, %393 : vector<16x32xf32>
    %c22 = arith.constant 22 : index
    %c0_155 = arith.constant 0 : index
    %395 = vector.load %arg6[%c22, %c0_155] : memref<24x128xf32, #tpu.memory_space<vmem>>, vector<1x32xf32>
    %c23 = arith.constant 23 : index
    %c0_156 = arith.constant 0 : index
    %396 = vector.load %arg6[%c23, %c0_156] : memref<24x128xf32, #tpu.memory_space<vmem>>, vector<1x32xf32>
    %cst_157 = arith.constant dense<0.000000e+00> : vector<16xf32>
    %397 = vector.multi_reduction <add>, %394, %cst_157 [1] : vector<16x32xf32> to vector<16xf32>
    %398 = vector.shape_cast %397 : vector<16xf32> to vector<16x1xf32>
    %cst_158 = arith.constant 3.200000e+01 : f32
    %399 = vector.broadcast %cst_158 : f32 to vector<16x1xf32>
    %400 = arith.divf %398, %399 : vector<16x1xf32>
    %401 = vector.broadcast %400 : vector<16x1xf32> to vector<16x32xf32>
    %402 = arith.subf %394, %401 : vector<16x32xf32>
    %403 = arith.mulf %402, %402 : vector<16x32xf32>
    %cst_159 = arith.constant dense<0.000000e+00> : vector<16xf32>
    %404 = vector.multi_reduction <add>, %403, %cst_159 [1] : vector<16x32xf32> to vector<16xf32>
    %405 = vector.shape_cast %404 : vector<16xf32> to vector<16x1xf32>
    %cst_160 = arith.constant 3.200000e+01 : f32
    %406 = vector.broadcast %cst_160 : f32 to vector<16x1xf32>
    %407 = arith.divf %405, %406 : vector<16x1xf32>
    %cst_161 = arith.constant 9.99999974E-6 : f32
    %408 = vector.broadcast %cst_161 : f32 to vector<16x1xf32>
    %409 = arith.addf %407, %408 : vector<16x1xf32>
    %410 = math.rsqrt %409 : vector<16x1xf32>
    %411 = vector.broadcast %410 : vector<16x1xf32> to vector<16x32xf32>
    %412 = arith.mulf %402, %411 : vector<16x32xf32>
    %413 = vector.broadcast %395 : vector<1x32xf32> to vector<16x32xf32>
    %414 = arith.mulf %412, %413 : vector<16x32xf32>
    %415 = vector.broadcast %396 : vector<1x32xf32> to vector<16x32xf32>
    %416 = arith.addf %414, %415 : vector<16x32xf32>
    %417 = arith.truncf %416 : vector<16x32xf32> to vector<16x32xbf16>
    %c0_162 = arith.constant 0 : index
    %c0_163 = arith.constant 0 : index
    %418 = vector.load %arg7[%c0_162, %c0_163] : memref<32x128xbf16, #tpu.memory_space<vmem>>, vector<32x128xbf16>
    %cst_164 = arith.constant dense<0.000000e+00> : vector<16x128xf32>
    %419 = tpu.matmul %417, %418, %cst_164 {dimension_numbers = #tpu.dot_dimension_numbers<[1], [0], [0], [1], [0, 0, 1, 1], [], []>} : vector<16x32xbf16>, vector<32x128xbf16>, vector<16x128xf32> -> vector<16x128xf32>
    %c0_165 = arith.constant 0 : index
    %c0_166 = arith.constant 0 : index
    %420 = vector.load %arg8[%c0_165, %c0_166] : memref<1x128xf32, #tpu.memory_space<vmem>>, vector<1x128xf32>
    %421 = vector.broadcast %420 : vector<1x128xf32> to vector<16x128xf32>
    %422 = arith.addf %419, %421 : vector<16x128xf32>
    %c0_167 = arith.constant 0 : index
    %c0_168 = arith.constant 0 : index
    %423 = vector.load %arg9[%c0_167, %c0_168] : memref<16x128xf32, #tpu.memory_space<vmem>>, vector<16x128xf32>
    tpu.vector_store %arg9[%c0_167, %c0_168], %422 {strides = array<i32>} : memref<16x128xf32, #tpu.memory_space<vmem>>, vector<16x128xf32>,
    return
  }
}

</mosaic_0001>

<bundles_post_ra>
// kernel: tpu_custom_call.1
= control target key start
LH: loop header
LB: loop body
LE: loop exit
PB: predicated region body
PF: predicated region fallthrough
CT: control target
= control target key end

     0   :  { %v4302_v1 = vmov 0.0   ;;  %vm4303_vm0 = vmmov 0   ;;  %vm75_vm1 = vcmask 261120   ;;  %s5133_s0 = inlined_call_operand.vmem [shape: f32[2,64,16], index: 0, kind: input, shape index: {}]   ;;  %s5134_s1 = inlined_call_operand.vmem [shape: f32[16,32], index: 1, kind: input, shape index: {}]   ;;  %s5135_s2 = inlined_call_operand.vmem [shape: bf16[4,32,96], index: 2, kind: input, shape index: {}]   ;;  %s5136_s3 = inlined_call_operand.vmem [shape: bf16[4,32,32], index: 3, kind: input, shape index: {}]   ;;  %s5137_s4 = inlined_call_operand.vmem [shape: bf16[2,32,64], index: 4, kind: input, shape index: {}]   ;;  %s5138_s5 = inlined_call_operand.vmem [shape: bf16[2,64,32], index: 5, kind: input, shape index: {}]   ;;  %s5139_s6 = inlined_call_operand.vmem [shape: f32[24,128], index: 6, kind: input, shape index: {}]   ;;  %s5140_s7 = inlined_call_operand.vmem [shape: bf16[32,128], index: 7, kind: input, shape index: {}]   ;;  %s5141_s8 = inlined_call_operand.vmem [shape: f32[1,128], index: 8, kind: input, shape index: {}]   ;;  %s5142_s9 = inlined_call_operand.hbm [shape: f32[16,128], index: 9, kind: output, shape index: {}]  }
   0x1   :  { %v4080_v0 = vld [vmem:[%s5135_s2] sm:$0xff]   ;;  %3682 = vmatprep.subr.bf16.mxu0 %v4302_v1  ;;  %3690 = vmatprep.subr.bf16.mxu1 %v4302_v1  ;;  %v4081_v2 = vld [vmem:[%s5135_s2 + $0x8] sm:$0xff]  }
   0x2   :  { %3683 = vmatpush3.bf16.msra.mxu0 %v4080_v0  ;;  %3686 = vmatprep.mubr.msk.bf16.mxu0 %vm4303_vm0, %v4302_v1  ;;  %v4383_v3 = vld [vmem:[%s5134_s1] sm:$0xff]  ;;  %v4388_v4 = vld [vmem:[%s5134_s1 + $0x8] sm:$0xff] }
   0x3   :  { %3684 = vmatprep.subr.bf16.mxu0 %v4302_v1  ;;  %3692 = vmatprep.mubr.msk.bf16.mxu1 %vm4303_vm0, %v4302_v1  ;;  %v4395_v5 = vpack.c.bf16 %v4388_v4, %v4383_v3 }
   0x6   :  { %3685 = vmatpush3.bf16.msra.mxu0 %v4081_v2 }
   0x7   :  { %3696 = vmatprep.subr.bf16.mxu0 %v4302_v1 }
   0x9   :  { %3687 = vmatmul.mubr.msk.bf16.vlgmr.msra.gmra.mrb[0].mxu0 %vm75_vm1, %v4395_v5 }
   0xa   :  { %3698 = vmatprep.mubr.msk.bf16.mxu0 %vm4303_vm0, %v4302_v1 }
   0xb   :  { %14 = vsyncpa [#allocation3], 0  ;;  %v3431_v6 = vld [vmem:[%s5139_s6] ss:$0 sm:$0xff]  ;;  %s4304_s18 = smov 80   ;;  %s4305_s19 = smov 96  }
   0xc   :  { %s4306_s20 = smov 120   ;;  %s4307_s21 = smov 88   ;;  %vm129_vm2 = vcmask 64512   ;;  %v34_v25 = vld [vmem:[%s5133_s0] sm:$0xff]  ;;  %v35_v27 = vld [vmem:[%s5133_s0 + $0x8] sm:$0xff]  ;;  %vm338_vm3 = vcmask 130048  }
   0xd   :  { %s4308_s22 = smov 112   ;;  %s4309_s23 = smov 72   ;;  %v36_v31 = vld [vmem:[%s5133_s0 + $0x10] sm:$0xff]  ;;  %v37_v36 = vld [vmem:[%s5133_s0 + $0x18] sm:$0xff]  ;;  %v38_v41 = vld [vmem:[%s5133_s0 + $0x20] sm:$0xff]  ;;  %vm647_vm4 = vcmask 195584  }
   0xe   :  { %s4310_s24 = smov 104   ;;  %v39_v45 = vld [vmem:[%s5133_s0 + $0x28] sm:$0xff]  ;;  %v40_v51 = vld [vmem:[%s5133_s0 + $0x30] sm:$0xff]  ;;  %v41_v55 = vld [vmem:[%s5133_s0 + $0x38] sm:$0xff]  ;;  %s4311_s26 = smov 56   ;;  %vm1609_vm5 = vcmask 523264  }
   0xf   :  { %s4312_s27 = smov 64   ;;  %s4313_s28 = smov 48  }
  0x10   :  { %s4314_s29 = smov 40   ;;  %s4315_s13 = smov 8  }
  0x11   :  { %s4316_s14 = smov 16   ;;  %s4317_s15 = smov 24  }
  0xdc   :  { %v113_v7 = vpop.f32.mrb[0].mxu0 }
  0xdd   :  { %v3688_v8 = vpop.f32.mrb[1].mxu0  ;;  %v114_v10 = vadd.f32 %v3431_v6, %v113_v7 }
  0xde   :  { %v116_v9 = vpop.f32.mrb[2].mxu0 }
  0xdf   :  { %v117_v11 = vadd.f32 %v3431_v6, %v116_v9  ;;  %v3689_v12 = vpop.f32.mrb[3].mxu0 }
  0xe1   :  { %v4405_v13 = vpack.c.bf16 %v117_v11, %v114_v10 }
  0xe3   :  { %230 = vrot.lane.b32.xlu1 %v4405_v13, %s4304_s18  ;;  %127 = vrot.lane.b32.xlu0 %v4405_v13, %s4305_s19 }
  0xe7   :  { %177 = vrot.lane.b32.xlu1 %v4405_v13, %s4306_s20  ;;  %179 = vrot.lane.b32.xlu0 %v4405_v13, %s4307_s21 }
  0xeb   :  { %228 = vrot.lane.b32.xlu1 %v4405_v13, %s4308_s22  ;;  %281 = vrot.lane.b32.xlu0 %v4405_v13, %s4309_s23 }
  0xef   :  { %279 = vrot.lane.b32.xlu0 %v4405_v13, %s4310_s24 }
 0x155   :  { %v128_v14 = vpop.permute.xlu0 %127  ;;  %v231_v16 = vpop.permute.xlu1 %230 }
 0x156   :  { %v134_v15 = vsel %vm129_vm2, %v128_v14, 0  ;;  %v236_v19 = vsel %vm129_vm2, %v231_v16, 0 }
 0x157   :  { %3691 = vmatpush3.bf16.xpose.msra.mxu1 %v134_v15 }
 0x158   :  { %3702 = vmatprep.subr.bf16.mxu1 %v4302_v1 }
 0x159   :  { %v180_v17 = vpop.permute.xlu0 %179  ;;  %v178_v20 = vpop.permute.xlu1 %177 }
 0x15a   :  { %v185_v18 = vsel %vm129_vm2, %v180_v17, 0 }
 0x15b   :  { %3697 = vmatpush3.bf16.xpose.msra.mxu0 %v185_v18 }
 0x15c   :  { %3708 = vmatprep.subr.bf16.mxu0 %v4302_v1 }
 0x15d   :  { %v282_v21 = vpop.permute.xlu0 %281  ;;  %v229_v23 = vpop.permute.xlu1 %228 }
 0x15e   :  { %3693 = vmatmul.mubr.msk.bf16.vlgmr.msra.gmra.mrb[0].mxu1 %vm129_vm2, %v4405_v13  ;;  %v287_v22 = vsel %vm129_vm2, %v282_v21, 0 }
 0x15f   :  { %3703 = vmatpush3.bf16.xpose.msra.mxu1 %v236_v19  ;;  %3704 = vmatprep.mubr.msk.bf16.mxu1 %vm4303_vm0, %v4302_v1 }
 0x160   :  { %3714 = vmatprep.subr.bf16.mxu1 %v4302_v1 }
 0x161   :  { %v280_v24 = vpop.permute.xlu0 %279 }
 0x162   :  { %3699 = vmatmul.mubr.msk.bf16.vlgmr.msra.gmra.mrb[4].mxu0 %vm129_vm2, %v178_v20 }
 0x163   :  { %3709 = vmatpush3.bf16.xpose.msra.mxu0 %v287_v22  ;;  %3710 = vmatprep.mubr.msk.bf16.mxu0 %vm4303_vm0, %v4302_v1 }
 0x164   :  { %3720 = vmatprep.subr.bf16.mxu0 %v4302_v1 }
 0x166   :  { %3705 = vmatmul.mubr.msk.bf16.vlgmr.msra.gmra.mrb[4].mxu1 %vm129_vm2, %v229_v23 }
 0x167   :  { %3716 = vmatprep.mubr.msk.bf16.mxu1 %vm4303_vm0, %v4302_v1 }
 0x16a   :  { %3711 = vmatmul.mubr.msk.bf16.vlgmr.msra.gmra.mrb[8].mxu0 %vm129_vm2, %v280_v24 }
 0x16b   :  { %3722 = vmatprep.mubr.msk.bf16.mxu0 %vm4303_vm0, %v4302_v1 }
 0x231   :  { %v170_v26 = vpop.f32.mrb[0].mxu1 }
 0x232   :  { %v330_v28 = vadd.f32 %v170_v26, %v34_v25  ;;  %v3694_v29 = vpop.f32.mrb[1].mxu1 }
 0x233   :  { %v173_v30 = vpop.f32.mrb[2].mxu1 }
 0x234   :  { %v331_v32 = vadd.f32 %v173_v30, %v35_v27  ;;  %v3695_v33 = vpop.f32.mrb[3].mxu1  ;;  %v339_v34 = vsel %vm338_vm3, %v330_v28, -inf }
 0x235   :  { %v221_v35 = vpop.f32.mrb[4].mxu0  ;;  %340 = vmax.xlane.f32.xlu1 %v339_v34 }
 0x236   :  { %v332_v37 = vadd.f32 %v221_v35, %v36_v31  ;;  %v3700_v38 = vpop.f32.mrb[5].mxu0  ;;  %v342_v39 = vsel %vm338_vm3, %v331_v32, -inf }
 0x237   :  { %v224_v40 = vpop.f32.mrb[6].mxu0  ;;  %343 = vmax.xlane.f32.xlu0 %v342_v39 }
 0x238   :  { %v333_v42 = vadd.f32 %v224_v40, %v37_v36  ;;  %v3701_v43 = vpop.f32.mrb[7].mxu0  ;;  %v345_v48 = vsel %vm338_vm3, %v332_v37, -inf }
 0x239   :  { %v272_v44 = vpop.f32.mrb[4].mxu1 }
 0x23a   :  { %v334_v46 = vadd.f32 %v272_v44, %v38_v41  ;;  %v3706_v47 = vpop.f32.mrb[5].mxu1  ;;  %v348_v49 = vsel %vm338_vm3, %v333_v42, -inf }
 0x23b   :  { %v275_v50 = vpop.f32.mrb[6].mxu1  ;;  %346 = vmax.xlane.f32.xlu0 %v345_v48  ;;  %349 = vmax.xlane.f32.xlu1 %v348_v49 }
 0x23c   :  { %v335_v52 = vadd.f32 %v275_v50, %v39_v45  ;;  %v3707_v53 = vpop.f32.mrb[7].mxu1  ;;  %v351_v58 = vsel %vm338_vm3, %v334_v46, -inf }
 0x23d   :  { %v323_v54 = vpop.f32.mrb[8].mxu0 }
 0x23e   :  { %v336_v56 = vadd.f32 %v323_v54, %v40_v51  ;;  %v3712_v57 = vpop.f32.mrb[9].mxu0  ;;  %v354_v59 = vsel %vm338_vm3, %v335_v52, -inf }
 0x23f   :  { %v326_v60 = vpop.f32.mrb[10].mxu0  ;;  %352 = vmax.xlane.f32.xlu0 %v351_v58  ;;  %355 = vmax.xlane.f32.xlu1 %v354_v59 }
 0x240   :  { %v337_v61 = vadd.f32 %v326_v60, %v41_v55  ;;  %v3713_v62 = vpop.f32.mrb[11].mxu0  ;;  %v357_v63 = vsel %vm338_vm3, %v336_v56, -inf }
 0x242   :  { %v360_v0 = vsel %vm338_vm3, %v337_v61, -inf }
 0x243   :  { %358 = vmax.xlane.f32.xlu0 %v357_v63  ;;  %361 = vmax.xlane.f32.xlu1 %v360_v0 }
 0x254   :  { %478 = vrot.lane.b32.xlu1 %v4405_v13, %s4311_s26 }
 0x259   :  { %431 = vrot.lane.b32.xlu0 %v4405_v13, %s4312_s27 }
 0x2c2   :  { %v341_v2 = vpop.xlane.xlu1 %340 }
 0x2c3   :  { %v363_v6 = vsub.f32 %v330_v28, %v341_v2 }
 0x2c4   :  { %v344_v7 = vpop.xlane.xlu0 %343 }
 0x2c5   :  { %v371_v8 = vmul.f32 1.442695, %v363_v6  ;;  %v364_v9 = vsub.f32 %v331_v32, %v344_v7 }
 0x2c7   :  { %4110 = vpow2.f32 %v371_v8  ;;  %v373_v10 = vmul.f32 1.442695, %v364_v9 }
 0x2c8   :  { %v347_v11 = vpop.xlane.xlu0 %346  ;;  %v350_v12 = vpop.xlane.xlu1 %349 }
 0x2c9   :  { %4112 = vpow2.f32 %v373_v10  ;;  %v365_v14 = vsub.f32 %v332_v37, %v347_v11  ;;  %v366_v15 = vsub.f32 %v333_v42, %v350_v12 }
 0x2cb   :  { %v375_v16 = vmul.f32 1.442695, %v365_v14  ;;  %v377_v17 = vmul.f32 1.442695, %v366_v15 }
 0x2cc   :  { %v353_v18 = vpop.xlane.xlu0 %352  ;;  %v356_v19 = vpop.xlane.xlu1 %355 }
 0x2cd   :  { %4114 = vpow2.f32 %v375_v16  ;;  %v367_v20 = vsub.f32 %v334_v46, %v353_v18  ;;  %v368_v21 = vsub.f32 %v335_v52, %v356_v19 }
 0x2ce   :  { %4116 = vpow2.f32 %v377_v17 }
 0x2cf   :  { %v379_v22 = vmul.f32 1.442695, %v367_v20  ;;  %v381_v23 = vmul.f32 1.442695, %v368_v21  ;;  %v4082_v21 = vld [vmem:[%s5136_s3] sm:$0xff]  }
 0x2d0   :  { %v359_v24 = vpop.xlane.xlu0 %358  ;;  %v362_v25 = vpop.xlane.xlu1 %361 }
 0x2d1   :  { %v4111_v26 = vpop.eup %4110  ;;  %4118 = vpow2.f32 %v379_v22  ;;  %v369_v27 = vsub.f32 %v336_v56, %v359_v24  ;;  %v370_v28 = vsub.f32 %v337_v61, %v362_v25  ;;  %v4083_v25 = vld [vmem:[%s5136_s3 + $0x8] sm:$0xff]  }
 0x2d2   :  { %4120 = vpow2.f32 %v381_v23  ;;  %v387_v29 = vsel %vm338_vm3, %v4111_v26, 0.0 }
 0x2d3   :  { %v4113_v30 = vpop.eup %4112  ;;  %v383_v31 = vmul.f32 1.442695, %v369_v27  ;;  %v385_v32 = vmul.f32 1.442695, %v370_v28  ;;  %388 = vadd.xlane.f32.xlu0 %v387_v29 }
 0x2d4   :  { %v432_v33 = vpop.permute.xlu0 %431  ;;  %v479_v34 = vpop.permute.xlu1 %478  ;;  %v390_v35 = vsel %vm338_vm3, %v4113_v30, 0.0 }
 0x2d5   :  { %4122 = vpow2.f32 %v383_v31  ;;  %3715 = vmatpush3.bf16.msra.mxu1 %v432_v33  ;;  %391 = vadd.xlane.f32.xlu1 %v390_v35 }
 0x2d6   :  { %4124 = vpow2.f32 %v385_v32  ;;  %3721 = vmatpush3.bf16.msra.mxu0 %v479_v34  ;;  %3726 = vmatprep.subr.bf16.mxu1 %v4302_v1 }
 0x2d7   :  { %v4115_v36 = vpop.eup %4114  ;;  %3732 = vmatprep.subr.bf16.mxu0 %v4302_v1 }
 0x2d8   :  { %v4117_v37 = vpop.eup %4116  ;;  %v393_v38 = vsel %vm338_vm3, %v4115_v36, 0.0 }
 0x2d9   :  { %394 = vadd.xlane.f32.xlu0 %v393_v38  ;;  %v396_v39 = vsel %vm338_vm3, %v4117_v37, 0.0 }
 0x2da   :  { %397 = vadd.xlane.f32.xlu1 %v396_v39 }
 0x2db   :  { %v4119_v40 = vpop.eup %4118 }
 0x2dc   :  { %v4121_v41 = vpop.eup %4120  ;;  %v399_v42 = vsel %vm338_vm3, %v4119_v40, 0.0 }
 0x2dd   :  { %400 = vadd.xlane.f32.xlu0 %v399_v42  ;;  %v402_v43 = vsel %vm338_vm3, %v4121_v41, 0.0 }
 0x2de   :  { %403 = vadd.xlane.f32.xlu1 %v402_v43 }
 0x2df   :  { %v4123_v44 = vpop.eup %4122 }
 0x2e0   :  { %v4125_v45 = vpop.eup %4124  ;;  %v405_v46 = vsel %vm338_vm3, %v4123_v44, 0.0 }
 0x2e1   :  { %406 = vadd.xlane.f32.xlu0 %v405_v46  ;;  %v408_v47 = vsel %vm338_vm3, %v4125_v45, 0.0 }
 0x2e2   :  { %409 = vadd.xlane.f32.xlu1 %v408_v47 }
 0x2f3   :  { %525 = vrot.lane.b32.xlu1 %v4405_v13, %s4313_s28 }
 0x2f7   :  { %572 = vrot.lane.b32.xlu0 %v4405_v13, %s4314_s29 }
 0x360   :  { %v389_v48 = vpop.xlane.xlu0 %388 }
 0x361   :  { %4126 = vrcp.f32 %v389_v48 }
 0x362   :  { %v392_v49 = vpop.xlane.xlu1 %391 }
 0x363   :  { %4128 = vrcp.f32 %v392_v49 }
 0x366   :  { %v395_v50 = vpop.xlane.xlu0 %394 }
 0x367   :  { %4130 = vrcp.f32 %v395_v50  ;;  %v398_v51 = vpop.xlane.xlu1 %397 }
 0x368   :  { %4132 = vrcp.f32 %v398_v51 }
 0x36a   :  { %v401_v52 = vpop.xlane.xlu0 %400 }
 0x36b   :  { %v4127_v53 = vpop.eup %4126  ;;  %4134 = vrcp.f32 %v401_v52  ;;  %v404_v54 = vpop.xlane.xlu1 %403 }
 0x36c   :  { %4136 = vrcp.f32 %v404_v54  ;;  %v419_v56 = vmul.f32 %v4127_v53, %v4111_v26 }
 0x36d   :  { %v4129_v55 = vpop.eup %4128 }
 0x36e   :  { %v420_v57 = vmul.f32 %v4129_v55, %v4113_v30  ;;  %v407_v58 = vpop.xlane.xlu0 %406  ;;  %v3443_v55 = vld [vmem:[%s5139_s6 + $0x1] ss:$0 sm:$0xff] }
 0x36f   :  { %4138 = vrcp.f32 %v407_v58  ;;  %v410_v59 = vpop.xlane.xlu1 %409 }
 0x370   :  { %4140 = vrcp.f32 %v410_v59  ;;  %v427_v13 = vpack.c.bf16 %v420_v57, %v419_v56 }
 0x371   :  { %v4131_v60 = vpop.eup %4130 }
 0x372   :  { %v4133_v61 = vpop.eup %4132  ;;  %v421_v62 = vmul.f32 %v4131_v60, %v4115_v36  ;;  %3717 = vmatmul.mubr.msk.bf16.vlgmr.msra.gmra.mrb[8].mxu1 %vm338_vm3, %v427_v13  ;;  %v573_v10 = vpop.permute.xlu0 %572 }
 0x373   :  { %v422_v63 = vmul.f32 %v4133_v61, %v4117_v37  ;;  %v526_v0 = vpop.permute.xlu1 %525  ;;  %3728 = vmatprep.mubr.msk.bf16.mxu1 %vm4303_vm0, %v4302_v1 }
 0x374   :  { %3727 = vmatpush3.bf16.msra.mxu1 %v526_v0 }
 0x375   :  { %v4135_v2 = vpop.eup %4134  ;;  %v428_v6 = vpack.c.bf16 %v422_v63, %v421_v62  ;;  %3738 = vmatprep.subr.bf16.mxu1 %v4302_v1 }
 0x376   :  { %v4137_v7 = vpop.eup %4136  ;;  %v423_v8 = vmul.f32 %v4135_v2, %v4119_v40  ;;  %v4084_v2 = vld [vmem:[%s5135_s2 + $0x10] sm:$0xff]  }
 0x377   :  { %v424_v9 = vmul.f32 %v4137_v7, %v4121_v41  ;;  %3723 = vmatmul.mubr.msk.bf16.vlgmr.msra.gmra.mrb[12].mxu0 %vm338_vm3, %v428_v6 }
 0x378   :  { %3733 = vmatpush3.bf16.msra.mxu0 %v573_v10  ;;  %3734 = vmatprep.mubr.msk.bf16.mxu0 %vm4303_vm0, %v4302_v1 }
 0x379   :  { %v4139_v11 = vpop.eup %4138  ;;  %v429_v12 = vpack.c.bf16 %v424_v9, %v423_v8  ;;  %3746 = vmatprep.subr.bf16.mxu0 %v4302_v1 }
 0x37a   :  { %v4141_v14 = vpop.eup %4140  ;;  %v425_v15 = vmul.f32 %v4139_v11, %v4123_v44 }
 0x37b   :  { %v426_v16 = vmul.f32 %v4141_v14, %v4125_v45  ;;  %3729 = vmatmul.mubr.msk.bf16.vlgmr.msra.gmra.mrb[12].mxu1 %vm338_vm3, %v429_v12 }
 0x37c   :  { %3742 = vmatprep.mubr.msk.bf16.mxu1 %vm4303_vm0, %v4302_v1  ;;  %3739 = vmatpush3.bf16.msra.mxu1 %v4082_v21 }
 0x37d   :  { %v430_v17 = vpack.c.bf16 %v426_v16, %v425_v15  ;;  %3740 = vmatprep.subr.bf16.mxu1 %v4302_v1 }
 0x37f   :  { %3735 = vmatmul.mubr.msk.bf16.vlgmr.msra.gmra.mrb[16].mxu0 %vm338_vm3, %v430_v17  ;;  %v3453_v17 = vld [vmem:[%s5139_s6 + $0x2] ss:$0 sm:$0xff] }
 0x380   :  { %3750 = vmatprep.mubr.msk.bf16.mxu0 %vm4303_vm0, %v4302_v1  ;;  %3741 = vmatpush3.bf16.msra.mxu1 %v4083_v25 }
 0x381   :  { %3754 = vmatprep.subr.bf16.mxu1 %v4302_v1  ;;  %3747 = vmatpush3.bf16.msra.mxu0 %v4084_v2 }
 0x382   :  { %3748 = vmatprep.subr.bf16.mxu0 %v4302_v1 }
 0x445   :  { %v471_v18 = vpop.f32.mrb[8].mxu1 }
 0x446   :  { %v3718_v19 = vpop.f32.mrb[9].mxu1 }
 0x447   :  { %v474_v20 = vpop.f32.mrb[10].mxu1 }
 0x448   :  { %v3719_v22 = vpop.f32.mrb[11].mxu1 }
 0x44a   :  { %v518_v23 = vpop.f32.mrb[12].mxu0 }
 0x44b   :  { %v3724_v24 = vpop.f32.mrb[13].mxu0 }
 0x44c   :  { %v521_v26 = vpop.f32.mrb[14].mxu0 }
 0x44d   :  { %v4020_v27 = vpack.i.bf16 %v521_v26, %v518_v23  ;;  %v3725_v28 = vpop.f32.mrb[15].mxu0 }
 0x44e   :  { %v565_v29 = vpop.f32.mrb[12].mxu1 }
 0x44f   :  { %4021 = vrot.lane.b32.xlu1 %v4020_v27, %s4315_s13  ;;  %v3730_v30 = vpop.f32.mrb[13].mxu1  ;;  %v3447_v27 = vld [vmem:[%s5139_s6 + $0x6] ss:$0 sm:$0xff] }
 0x450   :  { %v568_v31 = vpop.f32.mrb[14].mxu1 }
 0x451   :  { %v4025_v32 = vpack.i.bf16 %v568_v31, %v565_v29  ;;  %v3731_v33 = vpop.f32.mrb[15].mxu1  ;;  %v3448_v31 = vld [vmem:[%s5139_s6 + $0x7] ss:$0 sm:$0xff] }
 0x452   :  { %v612_v34 = vpop.f32.mrb[16].mxu0 }
 0x453   :  { %v3736_v35 = vpop.f32.mrb[17].mxu0  ;;  %4026 = vrot.lane.b32.xlu0 %v4025_v32, %s4316_s14 }
 0x454   :  { %v615_v36 = vpop.f32.mrb[18].mxu0 }
 0x455   :  { %v4030_v37 = vpack.i.bf16 %v615_v36, %v612_v34  ;;  %v3737_v38 = vpop.f32.mrb[19].mxu0 }
 0x457   :  { %4031 = vrot.lane.b32.xlu1 %v4030_v37, %s4317_s15 }
 0x4c1   :  { %v4022_v39 = vpop.permute.xlu1 %4021 }
 0x4c2   :  { %v4024_v41 = vunpack.i.h.bf16 %v4022_v39  ;;  %v4023_v42 = vunpack.i.l.bf16 %v4022_v39 }
 0x4c4   :  { %v644_v46 = vsel %vm129_vm2, %v474_v20, %v4024_v41  ;;  %v643_v47 = vsel %vm129_vm2, %v471_v18, %v4023_v42 }
 0x4c5   :  { %v4027_v40 = vpop.permute.xlu0 %4026 }
 0x4c6   :  { %v4029_v43 = vunpack.i.h.bf16 %v4027_v40  ;;  %v4028_v44 = vunpack.i.l.bf16 %v4027_v40 }
 0x4c8   :  { %v645_v50 = vsel %vm338_vm3, %v643_v47, %v4028_v44  ;;  %v646_v51 = vsel %vm338_vm3, %v644_v46, %v4029_v43 }
 0x4c9   :  { %v4032_v45 = vpop.permute.xlu1 %4031 }
 0x4ca   :  { %v4034_v48 = vunpack.i.h.bf16 %v4032_v45  ;;  %v4033_v49 = vunpack.i.l.bf16 %v4032_v45 }
 0x4cc   :  { %v648_v52 = vsel %vm647_vm4, %v645_v50, %v4033_v49  ;;  %v649_v53 = vsel %vm647_vm4, %v646_v51, %v4034_v48 }
 0x4cd   :  { %v650_v54 = vpack.c.bf16 %v649_v53, %v648_v52 }
 0x4cf   :  { %3743 = vmatmul.mubr.msk.bf16.vlgmr.msra.gmra.mrb[16].mxu1 %vm75_vm1, %v650_v54 }
 0x4d0   :  { %3758 = vmatprep.mubr.msk.bf16.mxu1 %vm4303_vm0, %v4302_v1 }
 0x5a2   :  { %v704_v56 = vpop.f32.mrb[16].mxu1 }
 0x5a3   :  { %v705_v57 = vadd.f32 %v3443_v55, %v704_v56  ;;  %v3744_v58 = vpop.f32.mrb[17].mxu1 }
 0x5a4   :  { %v707_v59 = vpop.f32.mrb[18].mxu1 }
 0x5a5   :  { %v708_v13 = vadd.f32 %v3443_v55, %v707_v59  ;;  %v3745_v60 = vpop.f32.mrb[19].mxu1  ;;  %v711_v61 = vadd.f32 %v705_v57, %v4383_v3  ;;  %v4085_v3 = vld [vmem:[%s5135_s2 + $0x18] sm:$0xff]  }
 0x5a6   :  { %3749 = vmatpush3.bf16.msra.mxu0 %v4085_v3 }
 0x5a7   :  { %v715_v62 = vsel %vm75_vm1, %v711_v61, 0.0  ;;  %v712_v63 = vadd.f32 %v708_v13, %v4388_v4  ;;  %3762 = vmatprep.subr.bf16.mxu0 %v4302_v1  ;;  %v3423_v13 = vld [vmem:[%s5133_s0 + $0x40] sm:$0xff] }
 0x5a8   :  { %716 = vadd.xlane.f32.xlu0 %v715_v62 }
 0x5a9   :  { %v718_v0 = vsel %vm75_vm1, %v712_v63, 0.0 }
 0x5aa   :  { %719 = vadd.xlane.f32.xlu1 %v718_v0 }
 0x5bb   :  { %821 = vrot.lane.b32.xlu1 %v4084_v2, %s4305_s19 }
 0x5bf   :  { %828 = vrot.lane.b32.xlu1 %v3453_v17, %s4305_s19 }
 0x635   :  { %v717_v4 = vpop.xlane.xlu0 %716 }
 0x636   :  { %v722_v6 = vmul.f32 0.03125, %v717_v4 }
 0x637   :  { %v720_v7 = vpop.xlane.xlu1 %719 }
 0x638   :  { %v724_v8 = vsub.f32 %v711_v61, %v722_v6  ;;  %v723_v9 = vmul.f32 0.03125, %v720_v7  ;;  %v3424_v61 = vld [vmem:[%s5133_s0 + $0x48] sm:$0xff]  ;;  %v3425_v7 = vld [vmem:[%s5133_s0 + $0x50] sm:$0xff] }
 0x63a   :  { %v725_v10 = vsub.f32 %v712_v63, %v723_v9  ;;  %v726_v11 = vmul.f32 %v724_v8, %v724_v8  ;;  %v3426_v9 = vld [vmem:[%s5133_s0 + $0x58] sm:$0xff] }
 0x63b   :  { %v822_v16 = vpop.permute.xlu1 %821 }
 0x63c   :  { %v728_v12 = vsel %vm75_vm1, %v726_v11, 0.0  ;;  %v727_v14 = vmul.f32 %v725_v10, %v725_v10  ;;  %3755 = vmatpush3.bf16.msra.mxu1 %v822_v16 }
 0x63d   :  { %729 = vadd.xlane.f32.xlu0 %v728_v12  ;;  %3756 = vmatprep.subr.bf16.mxu1 %v4302_v1 }
 0x63e   :  { %v731_v15 = vsel %vm75_vm1, %v727_v14, 0.0  ;;  %v3427_v14 = vld [vmem:[%s5133_s0 + $0x60] sm:$0xff] }
 0x63f   :  { %v829_v35 = vpop.permute.xlu1 %828 }
 0x641   :  { %732 = vadd.xlane.f32.xlu0 %v731_v15 }
 0x657   :  { %823 = vrot.lane.b32.xlu0 %v4085_v3, %s4305_s19 }
 0x6ca   :  { %v730_v18 = vpop.xlane.xlu0 %729 }
 0x6cb   :  { %v734_v19 = vmul.f32 0.03125, %v730_v18 }
 0x6cd   :  { %v736_v20 = vadd.f32 1e-05, %v734_v19  ;;  %v3428_v19 = vld [vmem:[%s5133_s0 + $0x68] sm:$0xff] }
 0x6ce   :  { %v733_v21 = vpop.xlane.xlu0 %732 }
 0x6cf   :  { %4142 = vrsqrt.f32 %v736_v20  ;;  %v735_v22 = vmul.f32 0.03125, %v733_v21 }
 0x6d1   :  { %v737_v23 = vadd.f32 1e-05, %v735_v22 }
 0x6d2   :  { %v824_v24 = vpop.permute.xlu0 %823 }
 0x6d3   :  { %4144 = vrsqrt.f32 %v737_v23  ;;  %3757 = vmatpush3.bf16.msra.mxu1 %v824_v24  ;;  %v3429_v24 = vld [vmem:[%s5133_s0 + $0x70] sm:$0xff] }
 0x6d4   :  { %3768 = vmatprep.subr.bf16.mxu1 %v4302_v1 }
 0x6d6   :  { %3759 = vmatmul.mubr.msk.bf16.vlgmr.msra.gmra.mrb[20].mxu1 %vm75_vm1, %v4395_v5 }
 0x6d7   :  { %3770 = vmatprep.mubr.msk.bf16.mxu1 %vm4303_vm0, %v4302_v1 }
 0x6d9   :  { %v4143_v25 = vpop.eup %4142 }
 0x6da   :  { %v740_v26 = vmul.f32 %v4143_v25, %v724_v8 }
 0x6dc   :  { %v746_v29 = vmul.f32 %v3447_v27, %v740_v26 }
 0x6dd   :  { %v4145_v28 = vpop.eup %4144 }
 0x6de   :  { %v741_v30 = vmul.f32 %v4145_v28, %v725_v10  ;;  %v4561_v33 = vadd.f32 %v3448_v31, %v746_v29  ;;  %v3430_v29 = vld [vmem:[%s5133_s0 + $0x78] sm:$0xff] }
 0x6e0   :  { %v747_v32 = vmul.f32 %v3447_v27, %v741_v30 }
 0x6e2   :  { %v4563_v5 = vadd.f32 %v3448_v31, %v747_v32 }
 0x6e4   :  { %v754_v34 = vpack.c.bf16 %v4563_v5, %v4561_v33 }
 0x6e6   :  { %3751 = vmatmul.mubr.msk.bf16.vlgmr.msra.gmra.mrb[20].mxu0 %vm75_vm1, %v754_v34 }
 0x6e7   :  { %3764 = vmatprep.mubr.msk.bf16.mxu0 %vm4303_vm0, %v4302_v1 }
 0x7a9   :  { %v865_v36 = vpop.f32.mrb[20].mxu1 }
 0x7aa   :  { %v3760_v37 = vpop.f32.mrb[21].mxu1  ;;  %v866_v38 = vadd.f32 %v865_v36, %v829_v35 }
 0x7ab   :  { %v868_v39 = vpop.f32.mrb[22].mxu1 }
 0x7ac   :  { %v869_v40 = vadd.f32 %v868_v39, %v829_v35  ;;  %v3761_v41 = vpop.f32.mrb[23].mxu1 }
 0x7ae   :  { %v4570_v42 = vpack.c.bf16 %v869_v40, %v866_v38 }
 0x7b0   :  { %982 = vrot.lane.b32.xlu0 %v4570_v42, %s4308_s22  ;;  %931 = vrot.lane.b32.xlu1 %v4570_v42, %s4306_s20  ;;  %v884_v43 = vsel %vm129_vm2, %v4570_v42, 0 }
 0x7b1   :  { %3763 = vmatpush3.bf16.xpose.msra.mxu0 %v884_v43 }
 0x7b2   :  { %3774 = vmatprep.subr.bf16.mxu0 %v4302_v1 }
 0x7b4   :  { %1033 = vrot.lane.b32.xlu0 %v4570_v42, %s4310_s24 }
 0x7b9   :  { %v814_v44 = vpop.f32.mrb[20].mxu0 }
 0x7ba   :  { %v3752_v45 = vpop.f32.mrb[21].mxu0  ;;  %v815_v47 = vadd.f32 %v3453_v17, %v814_v44 }
 0x7bb   :  { %v817_v46 = vpop.f32.mrb[22].mxu0 }
 0x7bc   :  { %v818_v48 = vadd.f32 %v3453_v17, %v817_v46  ;;  %v3753_v49 = vpop.f32.mrb[23].mxu0 }
 0x7be   :  { %v878_v50 = vpack.c.bf16 %v818_v48, %v815_v47 }
 0x7c0   :  { %1031 = vrot.lane.b32.xlu0 %v878_v50, %s4310_s24  ;;  %928 = vrot.lane.b32.xlu1 %v878_v50, %s4306_s20 }
 0x7c1   :  { %3765 = vmatmul.mubr.msk.bf16.vlgmr.msra.gmra.mrb[24].mxu0 %vm129_vm2, %v878_v50 }
 0x7c2   :  { %3776 = vmatprep.mubr.msk.bf16.mxu0 %vm4303_vm0, %v4302_v1 }
 0x7c4   :  { %980 = vrot.lane.b32.xlu1 %v878_v50, %s4308_s22 }
 0x822   :  { %v983_v51 = vpop.permute.xlu0 %982  ;;  %v932_v52 = vpop.permute.xlu1 %931 }
 0x823   :  { %v988_v53 = vsel %vm129_vm2, %v983_v51, 0  ;;  %v937_v54 = vsel %vm129_vm2, %v932_v52, 0 }
 0x824   :  { %3769 = vmatpush3.bf16.xpose.msra.mxu1 %v937_v54  ;;  %3775 = vmatpush3.bf16.xpose.msra.mxu0 %v988_v53 }
 0x825   :  { %3780 = vmatprep.subr.bf16.mxu1 %v4302_v1  ;;  %3786 = vmatprep.subr.bf16.mxu0 %v4302_v1 }
 0x826   :  { %v1034_v55 = vpop.permute.xlu0 %1033 }
 0x827   :  { %v1039_v57 = vsel %vm129_vm2, %v1034_v55, 0 }
 0x832   :  { %v929_v56 = vpop.permute.xlu1 %928  ;;  %v1032_v59 = vpop.permute.xlu0 %1031 }
 0x833   :  { %3771 = vmatmul.mubr.msk.bf16.vlgmr.msra.gmra.mrb[24].mxu1 %vm129_vm2, %v929_v56 }
 0x834   :  { %3781 = vmatpush3.bf16.xpose.msra.mxu1 %v1039_v57  ;;  %3782 = vmatprep.mubr.msk.bf16.mxu1 %vm4303_vm0, %v4302_v1 }
 0x835   :  { %3792 = vmatprep.subr.bf16.mxu1 %v4302_v1 }
 0x836   :  { %v981_v58 = vpop.permute.xlu1 %980 }
 0x837   :  { %3777 = vmatmul.mubr.msk.bf16.vlgmr.msra.gmra.mrb[28].mxu0 %vm129_vm2, %v981_v58 }
 0x838   :  { %3788 = vmatprep.mubr.msk.bf16.mxu0 %vm4303_vm0, %v4302_v1 }
 0x83b   :  { %3783 = vmatmul.mubr.msk.bf16.vlgmr.msra.gmra.mrb[28].mxu1 %vm129_vm2, %v1032_v59 }
 0x83c   :  { %3794 = vmatprep.mubr.msk.bf16.mxu1 %vm4303_vm0, %v4302_v1 }
 0x894   :  { %v920_v60 = vpop.f32.mrb[24].mxu0 }
 0x895   :  { %v1082_v62 = vadd.f32 %v3423_v13, %v920_v60  ;;  %v3766_v63 = vpop.f32.mrb[25].mxu0 }
 0x896   :  { %v923_v0 = vpop.f32.mrb[26].mxu0 }
 0x897   :  { %v1083_v2 = vadd.f32 %v3424_v61, %v923_v0  ;;  %v3767_v3 = vpop.f32.mrb[27].mxu0  ;;  %v1090_v4 = vsel %vm338_vm3, %v1082_v62, -inf }
 0x898   :  { %1091 = vmax.xlane.f32.xlu1 %v1090_v4 }
 0x899   :  { %v1093_v6 = vsel %vm338_vm3, %v1083_v2, -inf }
 0x89a   :  { %1094 = vmax.xlane.f32.xlu0 %v1093_v6 }
 0x906   :  { %v973_v8 = vpop.f32.mrb[24].mxu1 }
 0x907   :  { %v1084_v10 = vadd.f32 %v3425_v7, %v973_v8  ;;  %v3772_v11 = vpop.f32.mrb[25].mxu1 }
 0x908   :  { %v976_v12 = vpop.f32.mrb[26].mxu1 }
 0x909   :  { %v1085_v15 = vadd.f32 %v3426_v9, %v976_v12  ;;  %v3773_v16 = vpop.f32.mrb[27].mxu1  ;;  %v1096_v17 = vsel %vm338_vm3, %v1084_v10, -inf }
 0x90a   :  { %v1024_v18 = vpop.f32.mrb[28].mxu0  ;;  %1097 = vmax.xlane.f32.xlu0 %v1096_v17 }
 0x90b   :  { %v1086_v20 = vadd.f32 %v3427_v14, %v1024_v18  ;;  %v3778_v21 = vpop.f32.mrb[29].mxu0  ;;  %v1099_v22 = vsel %vm338_vm3, %v1085_v15, -inf }
 0x90c   :  { %v1027_v23 = vpop.f32.mrb[30].mxu0  ;;  %1100 = vmax.xlane.f32.xlu1 %v1099_v22 }
 0x90d   :  { %v1087_v25 = vadd.f32 %v3428_v19, %v1027_v23  ;;  %v3779_v26 = vpop.f32.mrb[31].mxu0  ;;  %v1102_v27 = vsel %vm338_vm3, %v1086_v20, -inf }
 0x90e   :  { %1103 = vmax.xlane.f32.xlu0 %v1102_v27  ;;  %v1075_v28 = vpop.f32.mrb[28].mxu1 }
 0x90f   :  { %v1088_v30 = vadd.f32 %v3429_v24, %v1075_v28  ;;  %v3784_v31 = vpop.f32.mrb[29].mxu1  ;;  %v1105_v32 = vsel %vm338_vm3, %v1087_v25, -inf }
 0x910   :  { %1106 = vmax.xlane.f32.xlu1 %v1105_v32  ;;  %v1078_v34 = vpop.f32.mrb[30].mxu1 }
 0x911   :  { %v1089_v35 = vadd.f32 %v3430_v29, %v1078_v34  ;;  %v3785_v36 = vpop.f32.mrb[31].mxu1  ;;  %v1108_v37 = vsel %vm338_vm3, %v1088_v30, -inf }
 0x912   :  { %1109 = vmax.xlane.f32.xlu0 %v1108_v37 }
 0x913   :  { %v1111_v38 = vsel %vm338_vm3, %v1089_v35, -inf }
 0x914   :  { %1112 = vmax.xlane.f32.xlu1 %v1111_v38 }
 0x925   :  { %1229 = vrot.lane.b32.xlu1 %v4570_v42, %s4307_s21  ;;  %v1092_v39 = vpop.xlane.xlu1 %1091 }
 0x926   :  { %v1114_v41 = vsub.f32 %v1082_v62, %v1092_v39 }
 0x927   :  { %v1095_v40 = vpop.xlane.xlu0 %1094 }
 0x928   :  { %1182 = vrot.lane.b32.xlu0 %v4570_v42, %s4305_s19  ;;  %v1115_v43 = vsub.f32 %v1083_v2, %v1095_v40  ;;  %v1122_v44 = vmul.f32 1.442695, %v1114_v41 }
 0x92a   :  { %v1124_v45 = vmul.f32 1.442695, %v1115_v43  ;;  %4146 = vpow2.f32 %v1122_v44 }
 0x92c   :  { %4148 = vpow2.f32 %v1124_v45 }
 0x934   :  { %v4147_v46 = vpop.eup %4146 }
 0x935   :  { %v1138_v48 = vsel %vm338_vm3, %v4147_v46, 0.0 }
 0x936   :  { %v4149_v47 = vpop.eup %4148 }
 0x937   :  { %v1141_v49 = vsel %vm338_vm3, %v4149_v47, 0.0 }
 0x947   :  { %1139 = vadd.xlane.f32.xlu0 %v1138_v48 }
 0x949   :  { %1142 = vadd.xlane.f32.xlu1 %v1141_v49 }
 0x997   :  { %v1098_v50 = vpop.xlane.xlu0 %1097 }
 0x998   :  { %v1116_v51 = vsub.f32 %v1084_v10, %v1098_v50 }
 0x999   :  { %v1101_v52 = vpop.xlane.xlu1 %1100 }
 0x99a   :  { %v1126_v53 = vmul.f32 1.442695, %v1116_v51  ;;  %v1117_v54 = vsub.f32 %v1085_v15, %v1101_v52 }
 0x99b   :  { %v1104_v55 = vpop.xlane.xlu0 %1103 }
 0x99c   :  { %4150 = vpow2.f32 %v1126_v53  ;;  %v1128_v56 = vmul.f32 1.442695, %v1117_v54  ;;  %v1118_v57 = vsub.f32 %v1086_v20, %v1104_v55  ;;  %v4086_v55 = vld [vmem:[%s5136_s3 + $0x10] sm:$0xff]  }
 0x99d   :  { %v1107_v58 = vpop.xlane.xlu1 %1106 }
 0x99e   :  { %4152 = vpow2.f32 %v1128_v56  ;;  %v1130_v59 = vmul.f32 1.442695, %v1118_v57  ;;  %v1119_v13 = vsub.f32 %v1087_v25, %v1107_v58  ;;  %v4087_v58 = vld [vmem:[%s5136_s3 + $0x18] sm:$0xff]  }
 0x99f   :  { %v1110_v60 = vpop.xlane.xlu0 %1109 }
 0x9a0   :  { %4154 = vpow2.f32 %v1130_v59  ;;  %v1132_v61 = vmul.f32 1.442695, %v1119_v13  ;;  %v1120_v62 = vsub.f32 %v1088_v30, %v1110_v60 }
 0x9a1   :  { %v1113_v63 = vpop.xlane.xlu1 %1112 }
 0x9a2   :  { %4156 = vpow2.f32 %v1132_v61  ;;  %v1134_v0 = vmul.f32 1.442695, %v1120_v62  ;;  %v1121_v2 = vsub.f32 %v1089_v35, %v1113_v63 }
 0x9a3   :  { %v1183_v3 = vpop.permute.xlu0 %1182 }
 0x9a4   :  { %4158 = vpow2.f32 %v1134_v0  ;;  %v1136_v4 = vmul.f32 1.442695, %v1121_v2  ;;  %3787 = vmatpush3.bf16.msra.mxu0 %v1183_v3 }
 0x9a5   :  { %v1230_v6 = vpop.permute.xlu1 %1229  ;;  %3798 = vmatprep.subr.bf16.mxu0 %v4302_v1 }
 0x9a6   :  { %v4151_v7 = vpop.eup %4150  ;;  %4160 = vpow2.f32 %v1136_v4  ;;  %3793 = vmatpush3.bf16.msra.mxu1 %v1230_v6 }
 0x9a7   :  { %v1144_v8 = vsel %vm338_vm3, %v4151_v7, 0.0  ;;  %3804 = vmatprep.subr.bf16.mxu1 %v4302_v1 }
 0x9a8   :  { %v4153_v9 = vpop.eup %4152  ;;  %1145 = vadd.xlane.f32.xlu0 %v1144_v8 }
 0x9a9   :  { %v1147_v10 = vsel %vm338_vm3, %v4153_v9, 0.0 }
 0x9aa   :  { %v4155_v11 = vpop.eup %4154  ;;  %1148 = vadd.xlane.f32.xlu1 %v1147_v10 }
 0x9ab   :  { %v1150_v12 = vsel %vm338_vm3, %v4155_v11, 0.0 }
 0x9ac   :  { %v4157_v14 = vpop.eup %4156  ;;  %1151 = vadd.xlane.f32.xlu0 %v1150_v12 }
 0x9ad   :  { %v1153_v15 = vsel %vm338_vm3, %v4157_v14, 0.0 }
 0x9ae   :  { %v4159_v16 = vpop.eup %4158  ;;  %1154 = vadd.xlane.f32.xlu1 %v1153_v15 }
 0x9af   :  { %v1156_v17 = vsel %vm338_vm3, %v4159_v16, 0.0 }
 0x9b0   :  { %v4161_v18 = vpop.eup %4160  ;;  %1157 = vadd.xlane.f32.xlu0 %v1156_v17 }
 0x9b1   :  { %v1159_v19 = vsel %vm338_vm3, %v4161_v18, 0.0 }
 0x9b2   :  { %1160 = vadd.xlane.f32.xlu1 %v1159_v19 }
 0x9c3   :  { %1276 = vrot.lane.b32.xlu1 %v4570_v42, %s4304_s18 }
 0x9c6   :  { %1323 = vrot.lane.b32.xlu0 %v4570_v42, %s4309_s23 }
 0x9d4   :  { %v1140_v20 = vpop.xlane.xlu0 %1139 }
 0x9d5   :  { %4162 = vrcp.f32 %v1140_v20 }
 0x9d6   :  { %v1143_v21 = vpop.xlane.xlu1 %1142 }
 0x9d7   :  { %4164 = vrcp.f32 %v1143_v21 }
 0x9df   :  { %v4163_v22 = vpop.eup %4162 }
 0x9e0   :  { %v1170_v24 = vmul.f32 %v4163_v22, %v4147_v46 }
 0x9e1   :  { %v4165_v23 = vpop.eup %4164 }
 0x9e2   :  { %v1171_v25 = vmul.f32 %v4165_v23, %v4149_v47 }
 0x9e4   :  { %v1178_v26 = vpack.c.bf16 %v1171_v25, %v1170_v24 }
 0x9e6   :  { %3789 = vmatmul.mubr.msk.bf16.vlgmr.msra.gmra.mrb[32].mxu0 %vm338_vm3, %v1178_v26  ;;  %v3470_v26 = vld [vmem:[%s5139_s6 + $0x3] ss:$0 sm:$0xff] }
 0x9e7   :  { %3800 = vmatprep.mubr.msk.bf16.mxu0 %vm4303_vm0, %v4302_v1 }
 0xa35   :  { %v1146_v27 = vpop.xlane.xlu0 %1145 }
 0xa36   :  { %4166 = vrcp.f32 %v1146_v27 }
 0xa37   :  { %v1149_v28 = vpop.xlane.xlu1 %1148 }
 0xa38   :  { %4168 = vrcp.f32 %v1149_v28 }
 0xa39   :  { %v1152_v29 = vpop.xlane.xlu0 %1151 }
 0xa3a   :  { %4170 = vrcp.f32 %v1152_v29 }
 0xa3b   :  { %v1155_v42 = vpop.xlane.xlu1 %1154 }
 0xa3c   :  { %4172 = vrcp.f32 %v1155_v42 }
 0xa3d   :  { %v1158_v30 = vpop.xlane.xlu0 %1157 }
 0xa3e   :  { %4174 = vrcp.f32 %v1158_v30 }
 0xa3f   :  { %v1161_v31 = vpop.xlane.xlu1 %1160 }
 0xa40   :  { %v4167_v32 = vpop.eup %4166  ;;  %4176 = vrcp.f32 %v1161_v31 }
 0xa41   :  { %v1172_v35 = vmul.f32 %v4167_v32, %v4151_v7  ;;  %v1324_v44 = vpop.permute.xlu0 %1323 }
 0xa42   :  { %v4169_v34 = vpop.eup %4168 }
 0xa43   :  { %v1173_v36 = vmul.f32 %v4169_v34, %v4153_v9  ;;  %v1277_v37 = vpop.permute.xlu1 %1276 }
 0xa44   :  { %v4171_v38 = vpop.eup %4170  ;;  %3799 = vmatpush3.bf16.msra.mxu0 %v1277_v37 }
 0xa45   :  { %v1179_v39 = vpack.c.bf16 %v1173_v36, %v1172_v35  ;;  %3810 = vmatprep.subr.bf16.mxu0 %v4302_v1  ;;  %v1174_v41 = vmul.f32 %v4171_v38, %v4155_v11 }
 0xa46   :  { %v4173_v40 = vpop.eup %4172 }
 0xa47   :  { %v1175_v43 = vmul.f32 %v4173_v40, %v4157_v14  ;;  %3795 = vmatmul.mubr.msk.bf16.vlgmr.msra.gmra.mrb[32].mxu1 %vm338_vm3, %v1179_v39 }
 0xa48   :  { %v4175_v45 = vpop.eup %4174  ;;  %3805 = vmatpush3.bf16.msra.mxu1 %v1324_v44  ;;  %3806 = vmatprep.mubr.msk.bf16.mxu1 %vm4303_vm0, %v4302_v1 }
 0xa49   :  { %v1180_v46 = vpack.c.bf16 %v1175_v43, %v1174_v41  ;;  %3818 = vmatprep.subr.bf16.mxu1 %v4302_v1  ;;  %v1176_v48 = vmul.f32 %v4175_v45, %v4159_v16 }
 0xa4a   :  { %v4177_v47 = vpop.eup %4176 }
 0xa4b   :  { %v1177_v49 = vmul.f32 %v4177_v47, %v4161_v18  ;;  %3801 = vmatmul.mubr.msk.bf16.vlgmr.msra.gmra.mrb[36].mxu0 %vm338_vm3, %v1180_v46  ;;  %v4089_v47 = vld [vmem:[%s5137_s4 + $0x8] sm:$0xff]  }
 0xa4c   :  { %3814 = vmatprep.mubr.msk.bf16.mxu0 %vm4303_vm0, %v4302_v1  ;;  %3811 = vmatpush3.bf16.msra.mxu0 %v4086_v55 }
 0xa4d   :  { %v1181_v50 = vpack.c.bf16 %v1177_v49, %v1176_v48  ;;  %3812 = vmatprep.subr.bf16.mxu0 %v4302_v1  ;;  %v4090_v48 = vld [vmem:[%s5138_s5] sm:$0xff]   ;;  %v4091_v49 = vld [vmem:[%s5138_s5 + $0x8] sm:$0xff]  }
 0xa4f   :  { %3807 = vmatmul.mubr.msk.bf16.vlgmr.msra.gmra.mrb[36].mxu1 %vm338_vm3, %v1181_v50 }
 0xa50   :  { %3822 = vmatprep.mubr.msk.bf16.mxu1 %vm4303_vm0, %v4302_v1  ;;  %3813 = vmatpush3.bf16.msra.mxu0 %v4087_v58  ;;  %v3474_v58 = vld [vmem:[%s5139_s6 + $0x8] ss:$0 sm:$0xff] }
 0xa51   :  { %3826 = vmatprep.subr.bf16.mxu0 %v4302_v1 }
 0xab9   :  { %v1222_v51 = vpop.f32.mrb[32].mxu0 }
 0xaba   :  { %v3790_v52 = vpop.f32.mrb[33].mxu0 }
 0xabb   :  { %v1225_v53 = vpop.f32.mrb[34].mxu0 }
 0xabc   :  { %v3791_v54 = vpop.f32.mrb[35].mxu0 }
 0xb1a   :  { %v1269_v56 = vpop.f32.mrb[32].mxu1 }
 0xb1b   :  { %v3796_v57 = vpop.f32.mrb[33].mxu1 }
 0xb1c   :  { %v1272_v59 = vpop.f32.mrb[34].mxu1 }
 0xb1d   :  { %v4035_v13 = vpack.i.bf16 %v1272_v59, %v1269_v56  ;;  %v3797_v60 = vpop.f32.mrb[35].mxu1 }
 0xb1e   :  { %v1316_v61 = vpop.f32.mrb[36].mxu0 }
 0xb1f   :  { %v3802_v62 = vpop.f32.mrb[37].mxu0  ;;  %4036 = vrot.lane.b32.xlu1 %v4035_v13, %s4315_s13 }
 0xb20   :  { %v1319_v63 = vpop.f32.mrb[38].mxu0 }
 0xb21   :  { %v4040_v0 = vpack.i.bf16 %v1319_v63, %v1316_v61  ;;  %v3803_v2 = vpop.f32.mrb[39].mxu0  ;;  %v3475_v61 = vld [vmem:[%s5139_s6 + $0x9] ss:$0 sm:$0xff] }
 0xb22   :  { %v1363_v3 = vpop.f32.mrb[36].mxu1 }
 0xb23   :  { %4041 = vrot.lane.b32.xlu0 %v4040_v0, %s4316_s14  ;;  %v3808_v4 = vpop.f32.mrb[37].mxu1 }
 0xb24   :  { %v1366_v6 = vpop.f32.mrb[38].mxu1  ;;  %v4093_v4 = vld [vmem:[%s5138_s5 + $0x18] sm:$0xff]  }
 0xb25   :  { %v4045_v7 = vpack.i.bf16 %v1366_v6, %v1363_v3  ;;  %v3809_v8 = vpop.f32.mrb[39].mxu1  ;;  %v4092_v3 = vld [vmem:[%s5138_s5 + $0x10] sm:$0xff]   ;;  %v3476_v6 = vld [vmem:[%s5139_s6 + $0x4] ss:$0 sm:$0xff] }
 0xb27   :  { %4046 = vrot.lane.b32.xlu1 %v4045_v7, %s4317_s15 }
 0xb91   :  { %v4037_v9 = vpop.permute.xlu1 %4036 }
 0xb92   :  { %v4039_v11 = vunpack.i.h.bf16 %v4037_v9  ;;  %v4038_v12 = vunpack.i.l.bf16 %v4037_v9 }
 0xb94   :  { %v1395_v17 = vsel %vm129_vm2, %v1225_v53, %v4039_v11  ;;  %v1394_v18 = vsel %vm129_vm2, %v1222_v51, %v4038_v12 }
 0xb95   :  { %v4042_v10 = vpop.permute.xlu0 %4041 }
 0xb96   :  { %v4044_v14 = vunpack.i.h.bf16 %v4042_v10  ;;  %v4043_v15 = vunpack.i.l.bf16 %v4042_v10 }
 0xb98   :  { %v1396_v21 = vsel %vm338_vm3, %v1394_v18, %v4043_v15  ;;  %v1397_v22 = vsel %vm338_vm3, %v1395_v17, %v4044_v14  ;;  %v3480_v17 = vld [vmem:[%s5139_s6 + $0x5] ss:$0 sm:$0xff] }
 0xb99   :  { %v4047_v16 = vpop.permute.xlu1 %4046 }
 0xb9a   :  { %v4049_v19 = vunpack.i.h.bf16 %v4047_v16  ;;  %v4048_v20 = vunpack.i.l.bf16 %v4047_v16 }
 0xb9c   :  { %v1399_v23 = vsel %vm647_vm4, %v1397_v22, %v4049_v19  ;;  %v1398_v24 = vsel %vm647_vm4, %v1396_v21, %v4048_v20 }
 0xb9d   :  { %v1400_v25 = vpack.c.bf16 %v1399_v23, %v1398_v24 }
 0xb9f   :  { %3815 = vmatmul.mubr.msk.bf16.vlgmr.msra.gmra.mrb[40].mxu0 %vm75_vm1, %v1400_v25 }
 0xba0   :  { %3834 = vmatprep.mubr.msk.bf16.mxu0 %vm4303_vm0, %v4302_v1  ;;  %3827 = vmatpush3.bf16.msra.mxu0 %v4090_v48 }
 0xba1   :  { %3828 = vmatprep.subr.bf16.mxu0 %v4302_v1 }
 0xba4   :  { %3829 = vmatpush3.bf16.msra.mxu0 %v4091_v49 }
 0xba5   :  { %3830 = vmatprep.subr.bf16.mxu0 %v4302_v1 }
 0xba8   :  { %3831 = vmatpush3.bf16.msra.mxu0 %v4092_v3 }
 0xba9   :  { %3832 = vmatprep.subr.bf16.mxu0 %v4302_v1 }
 0xbac   :  { %3833 = vmatpush3.bf16.msra.mxu0 %v4093_v4 }
 0xbad   :  { %3852 = vmatprep.subr.bf16.mxu0 %v4302_v1 }
 0xc72   :  { %v1454_v27 = vpop.f32.mrb[40].mxu0 }
 0xc73   :  { %v1455_v28 = vadd.f32 %v3470_v26, %v1454_v27  ;;  %v3816_v29 = vpop.f32.mrb[41].mxu0 }
 0xc74   :  { %v1457_v42 = vpop.f32.mrb[42].mxu0 }
 0xc75   :  { %v1458_v30 = vadd.f32 %v3470_v26, %v1457_v42  ;;  %v3817_v31 = vpop.f32.mrb[43].mxu0  ;;  %v1461_v32 = vadd.f32 %v1455_v28, %v4561_v33 }
 0xc77   :  { %v1465_v34 = vsel %vm75_vm1, %v1461_v32, 0.0  ;;  %v1462_v35 = vadd.f32 %v1458_v30, %v4563_v5  ;;  %v4088_v5 = vld [vmem:[%s5137_s4] sm:$0xff]  }
 0xc78   :  { %1466 = vadd.xlane.f32.xlu0 %v1465_v34  ;;  %3819 = vmatpush3.bf16.msra.mxu1 %v4088_v5  ;;  %v3486_v5 = vld [vmem:[%s5139_s6 + $0xa] ss:$0 sm:$0xff] }
 0xc79   :  { %v1468_v36 = vsel %vm75_vm1, %v1462_v35, 0.0  ;;  %3820 = vmatprep.subr.bf16.mxu1 %v4302_v1 }
 0xc7a   :  { %1469 = vadd.xlane.f32.xlu1 %v1468_v36 }
 0xc7c   :  { %3821 = vmatpush3.bf16.msra.mxu1 %v4089_v47 }
 0xc7d   :  { %3838 = vmatprep.subr.bf16.mxu1 %v4302_v1 }
 0xd05   :  { %v1467_v37 = vpop.xlane.xlu0 %1466 }
 0xd06   :  { %v1471_v38 = vmul.f32 0.03125, %v1467_v37 }
 0xd07   :  { %v1470_v39 = vpop.xlane.xlu1 %1469 }
 0xd08   :  { %v1473_v40 = vsub.f32 %v1461_v32, %v1471_v38  ;;  %v1472_v41 = vmul.f32 0.03125, %v1470_v39  ;;  %v4094_v38 = vld [vmem:[%s5135_s2 + $0x20] sm:$0xff]   ;;  %v4095_v39 = vld [vmem:[%s5135_s2 + $0x28] sm:$0xff]  }
 0xd0a   :  { %v1474_v43 = vsub.f32 %v1462_v35, %v1472_v41  ;;  %v1475_v44 = vmul.f32 %v1473_v40, %v1473_v40 }
 0xd0c   :  { %v1477_v45 = vsel %vm75_vm1, %v1475_v44, 0.0  ;;  %v1476_v46 = vmul.f32 %v1474_v43, %v1474_v43 }
 0xd0d   :  { %1478 = vadd.xlane.f32.xlu0 %v1477_v45 }
 0xd0e   :  { %v1480_v33 = vsel %vm75_vm1, %v1476_v46, 0.0 }
 0xd11   :  { %1481 = vadd.xlane.f32.xlu0 %v1480_v33 }
 0xd9a   :  { %v1479_v50 = vpop.xlane.xlu0 %1478 }
 0xd9b   :  { %v1483_v51 = vmul.f32 0.03125, %v1479_v50 }
 0xd9d   :  { %v1485_v52 = vadd.f32 1e-05, %v1483_v51  ;;  %v3487_v51 = vld [vmem:[%s5139_s6 + $0xb] ss:$0 sm:$0xff] }
 0xd9e   :  { %v1482_v53 = vpop.xlane.xlu0 %1481 }
 0xd9f   :  { %4178 = vrsqrt.f32 %v1485_v52  ;;  %v1484_v54 = vmul.f32 0.03125, %v1482_v53 }
 0xda1   :  { %v1486_v55 = vadd.f32 1e-05, %v1484_v54 }
 0xda3   :  { %4180 = vrsqrt.f32 %v1486_v55 }
 0xda9   :  { %v4179_v56 = vpop.eup %4178 }
 0xdaa   :  { %v1489_v57 = vmul.f32 %v4179_v56, %v1473_v40  ;;  %v3492_v56 = vld [vmem:[%s5139_s6 + $0xc] ss:$0 sm:$0xff] }
 0xdac   :  { %v1495_v13 = vmul.f32 %v3474_v58, %v1489_v57 }
 0xdad   :  { %v4181_v59 = vpop.eup %4180 }
 0xdae   :  { %v1490_v60 = vmul.f32 %v4181_v59, %v1474_v43  ;;  %v1501_v63 = vadd.f32 %v3475_v61, %v1495_v13 }
 0xdb0   :  { %v1496_v62 = vmul.f32 %v3474_v58, %v1490_v60 }
 0xdb2   :  { %v1502_v0 = vadd.f32 %v3475_v61, %v1496_v62 }
 0xdb4   :  { %v1503_v2 = vpack.c.bf16 %v1502_v0, %v1501_v63 }
 0xdb6   :  { %3823 = vmatmul.mubr.msk.bf16.vlgmr.msra.gmra.mrb[40].mxu1 %vm75_vm1, %v1503_v2 }
 0xdb7   :  { %3842 = vmatprep.mubr.msk.bf16.mxu1 %vm4303_vm0, %v4302_v1  ;;  %3839 = vmatpush3.bf16.msra.mxu1 %v4094_v38 }
 0xdb8   :  { %3840 = vmatprep.subr.bf16.mxu1 %v4302_v1 }
 0xdbb   :  { %3841 = vmatpush3.bf16.msra.mxu1 %v4095_v39 }
 0xdbc   :  { %3846 = vmatprep.subr.bf16.mxu1 %v4302_v1 }
 0xe89   :  { %v1562_v7 = vpop.f32.mrb[40].mxu1 }
 0xe8a   :  { %v1563_v8 = vadd.f32 %v3476_v6, %v1562_v7  ;;  %v3824_v9 = vpop.f32.mrb[41].mxu1 }
 0xe8b   :  { %v1565_v10 = vpop.f32.mrb[42].mxu1 }
 0xe8c   :  { %v1566_v11 = vadd.f32 %v3476_v6, %v1565_v10  ;;  %v3825_v12 = vpop.f32.mrb[43].mxu1  ;;  %v1569_v14 = vmax.f32 %v1563_v8, 0.0 }
 0xe8e   :  { %v1570_v15 = vmax.f32 %v1566_v11, 0.0 }
 0xe90   :  { %v1571_v16 = vpack.c.bf16 %v1570_v15, %v1569_v14  ;;  %v4262_v15 = vld [vmem:[%s5133_s0] sm:$0xff] }
 0xe92   :  { %3835 = vmatmul.mubr.msk.bf16.vlgmr.msra.gmra.mrb[44].mxu0 %vm1609_vm5, %v1571_v16 }
 0xe93   :  { %3854 = vmatprep.mubr.msk.bf16.mxu0 %vm4303_vm0, %v4302_v1 }
 0xf65   :  { %v1647_v18 = vpop.f32.mrb[44].mxu0 }
 0xf66   :  { %v1648_v19 = vadd.f32 %v3480_v17, %v1647_v18  ;;  %v3836_v20 = vpop.f32.mrb[45].mxu0 }
 0xf67   :  { %v1650_v21 = vpop.f32.mrb[46].mxu0 }
 0xf68   :  { %v1651_v22 = vadd.f32 %v3480_v17, %v1650_v21  ;;  %v3837_v23 = vpop.f32.mrb[47].mxu0  ;;  %v1654_v24 = vadd.f32 %v1648_v19, %v1501_v63  ;;  %v4263_v21 = vld [vmem:[%s5133_s0 + $0x8] sm:$0xff] }
 0xf69   :  { %v4264_v23 = vld [vmem:[%s5133_s0 + $0x18] sm:$0xff] }
 0xf6a   :  { %v1658_v25 = vsel %vm75_vm1, %v1654_v24, 0.0  ;;  %v1655_v26 = vadd.f32 %v1651_v22, %v1502_v0 }
 0xf6b   :  { %1659 = vadd.xlane.f32.xlu1 %v1658_v25 }
 0xf6c   :  { %v1661_v27 = vsel %vm75_vm1, %v1655_v26, 0.0 }
 0xf6d   :  { %1662 = vadd.xlane.f32.xlu0 %v1661_v27 }
 0xff8   :  { %v1660_v28 = vpop.xlane.xlu1 %1659 }
 0xff9   :  { %v1664_v29 = vmul.f32 0.03125, %v1660_v28  ;;  %v4265_v28 = vld [vmem:[%s5133_s0 + $0x10] sm:$0xff] }
 0xffa   :  { %v1663_v42 = vpop.xlane.xlu0 %1662 }
 0xffb   :  { %v1666_v30 = vsub.f32 %v1654_v24, %v1664_v29  ;;  %v1665_v31 = vmul.f32 0.03125, %v1663_v42 }
 0xffd   :  { %v1667_v32 = vsub.f32 %v1655_v26, %v1665_v31  ;;  %v1668_v34 = vmul.f32 %v1666_v30, %v1666_v30 }
 0xfff   :  { %v1670_v35 = vsel %vm75_vm1, %v1668_v34, 0.0  ;;  %v1669_v36 = vmul.f32 %v1667_v32, %v1667_v32  ;;  %v4266_v34 = vld [vmem:[%s5133_s0 + $0x20] sm:$0xff] }
0x1000   :  { %1671 = vadd.xlane.f32.xlu1 %v1670_v35 }
0x1001   :  { %v1673_v37 = vsel %vm75_vm1, %v1669_v36, 0.0 }
0x1002   :  { %1674 = vadd.xlane.f32.xlu0 %v1673_v37 }
0x108d   :  { %v1672_v40 = vpop.xlane.xlu1 %1671 }
0x108e   :  { %v1676_v41 = vmul.f32 0.03125, %v1672_v40 }
0x108f   :  { %v1675_v43 = vpop.xlane.xlu0 %1674 }
0x1090   :  { %v1678_v44 = vadd.f32 1e-05, %v1676_v41  ;;  %v1677_v45 = vmul.f32 0.03125, %v1675_v43  ;;  %v4267_v41 = vld [vmem:[%s5133_s0 + $0x28] sm:$0xff] }
0x1092   :  { %4182 = vrsqrt.f32 %v1678_v44  ;;  %v1679_v46 = vadd.f32 1e-05, %v1677_v45 }
0x1094   :  { %4184 = vrsqrt.f32 %v1679_v46  ;;  %v4268_v46 = vld [vmem:[%s5133_s0 + $0x30] sm:$0xff] }
0x109c   :  { %v4183_v33 = vpop.eup %4182 }
0x109d   :  { %v1682_v47 = vmul.f32 %v4183_v33, %v1666_v30 }
0x109e   :  { %v4185_v48 = vpop.eup %4184 }
0x109f   :  { %v1688_v49 = vmul.f32 %v3486_v5, %v1682_v47  ;;  %v1683_v50 = vmul.f32 %v4185_v48, %v1667_v32 }
0x10a1   :  { %v1689_v52 = vmul.f32 %v3486_v5, %v1683_v50  ;;  %v4755_v53 = vadd.f32 %v3487_v51, %v1688_v49  ;;  %v4269_v5 = vld [vmem:[%s5133_s0 + $0x38] sm:$0xff] }
0x10a3   :  { %v4757_v54 = vadd.f32 %v3487_v51, %v1689_v52 }
0x10a5   :  { %v4761_v55 = vpack.c.bf16 %v4757_v54, %v4755_v53 }
0x10a7   :  { %3843 = vmatmul.mubr.msk.bf16.vlgmr.msra.gmra.mrb[44].mxu1 %vm75_vm1, %v4761_v55 }
0x10a8   :  { %3848 = vmatprep.mubr.msk.bf16.mxu1 %vm4303_vm0, %v4302_v1 }
0x117a   :  { %v1756_v57 = vpop.f32.mrb[44].mxu1 }
0x117b   :  { %v3844_v58 = vpop.f32.mrb[45].mxu1  ;;  %v1757_v13 = vadd.f32 %v3492_v56, %v1756_v57 }
0x117c   :  { %v1759_v59 = vpop.f32.mrb[46].mxu1 }
0x117d   :  { %v1760_v60 = vadd.f32 %v3492_v56, %v1759_v59  ;;  %v3845_v61 = vpop.f32.mrb[47].mxu1 }
0x117f   :  { %v4770_v62 = vpack.c.bf16 %v1760_v60, %v1757_v13 }
0x1181   :  { %1822 = vrot.lane.b32.xlu0 %v4770_v62, %s4307_s21  ;;  %1771 = vrot.lane.b32.xlu1 %v4770_v62, %s4305_s19 }
0x1185   :  { %1924 = vrot.lane.b32.xlu0 %v4770_v62, %s4309_s23  ;;  %1873 = vrot.lane.b32.xlu1 %v4770_v62, %s4304_s18 }
0x1189   :  { %1922 = vrot.lane.b32.xlu0 %v4770_v62, %s4310_s24  ;;  %1820 = vrot.lane.b32.xlu1 %v4770_v62, %s4306_s20 }
0x118d   :  { %1871 = vrot.lane.b32.xlu1 %v4770_v62, %s4308_s22 }
0x11f3   :  { %v1823_v63 = vpop.permute.xlu0 %1822  ;;  %v1772_v0 = vpop.permute.xlu1 %1771 }
0x11f4   :  { %v1828_v2 = vsel %vm129_vm2, %v1823_v63, 0  ;;  %v1777_v3 = vsel %vm129_vm2, %v1772_v0, 0 }
0x11f5   :  { %3847 = vmatpush3.bf16.xpose.msra.mxu1 %v1777_v3  ;;  %3853 = vmatpush3.bf16.xpose.msra.mxu0 %v1828_v2 }
0x11f6   :  { %3858 = vmatprep.subr.bf16.mxu1 %v4302_v1  ;;  %3864 = vmatprep.subr.bf16.mxu0 %v4302_v1 }
0x11f7   :  { %v1874_v4 = vpop.permute.xlu1 %1873  ;;  %v1925_v6 = vpop.permute.xlu0 %1924 }
0x11f8   :  { %v1930_v8 = vsel %vm129_vm2, %v1925_v6, 0  ;;  %v1879_v9 = vsel %vm129_vm2, %v1874_v4, 0 }
0x11fb   :  { %v1821_v7 = vpop.permute.xlu1 %1820  ;;  %v1923_v10 = vpop.permute.xlu0 %1922 }
0x11fc   :  { %3849 = vmatmul.mubr.msk.bf16.vlgmr.msra.gmra.mrb[48].mxu1 %vm129_vm2, %v4770_v62  ;;  %3855 = vmatmul.mubr.msk.bf16.vlgmr.msra.gmra.mrb[48].mxu0 %vm129_vm2, %v1821_v7 }
0x11fd   :  { %3859 = vmatpush3.bf16.xpose.msra.mxu1 %v1879_v9  ;;  %3865 = vmatpush3.bf16.xpose.msra.mxu0 %v1930_v8 }
0x11fe   :  { %3860 = vmatprep.mubr.msk.bf16.mxu1 %vm4303_vm0, %v4302_v1  ;;  %3866 = vmatprep.mubr.msk.bf16.mxu0 %vm4303_vm0, %v4302_v1 }
0x11ff   :  { %3870 = vmatprep.subr.bf16.mxu1 %v4302_v1  ;;  %3876 = vmatprep.subr.bf16.mxu0 %v4302_v1  ;;  %v1872_v11 = vpop.permute.xlu1 %1871 }
0x1204   :  { %3861 = vmatmul.mubr.msk.bf16.vlgmr.msra.gmra.mrb[52].mxu1 %vm129_vm2, %v1872_v11  ;;  %3867 = vmatmul.mubr.msk.bf16.vlgmr.msra.gmra.mrb[52].mxu0 %vm129_vm2, %v1923_v10 }
0x1205   :  { %3872 = vmatprep.mubr.msk.bf16.mxu1 %vm4303_vm0, %v4302_v1  ;;  %3878 = vmatprep.mubr.msk.bf16.mxu0 %vm4303_vm0, %v4302_v1 }
0x12cf   :  { %v1813_v12 = vpop.f32.mrb[48].mxu1  ;;  %v1864_v14 = vpop.f32.mrb[48].mxu0 }
0x12d0   :  { %v1973_v16 = vadd.f32 %v4262_v15, %v1813_v12  ;;  %v3850_v17 = vpop.f32.mrb[49].mxu1  ;;  %v3856_v18 = vpop.f32.mrb[49].mxu0  ;;  %v1975_v29 = vadd.f32 %v4265_v28, %v1864_v14 }
0x12d1   :  { %v1816_v19 = vpop.f32.mrb[50].mxu1  ;;  %v1867_v20 = vpop.f32.mrb[50].mxu0 }
0x12d2   :  { %v1974_v22 = vadd.f32 %v4263_v21, %v1816_v19  ;;  %v1976_v24 = vadd.f32 %v4264_v23, %v1867_v20  ;;  %v3851_v25 = vpop.f32.mrb[51].mxu1  ;;  %v3857_v26 = vpop.f32.mrb[51].mxu0  ;;  %v1981_v27 = vsel %vm338_vm3, %v1973_v16, -inf  ;;  %v1987_v38 = vsel %vm338_vm3, %v1975_v29, -inf }
0x12d3   :  { %1982 = vmax.xlane.f32.xlu1 %v1981_v27 }
0x12d4   :  { %v1984_v42 = vsel %vm338_vm3, %v1974_v22, -inf  ;;  %v1990_v30 = vsel %vm338_vm3, %v1976_v24, -inf }
0x12d5   :  { %1985 = vmax.xlane.f32.xlu0 %v1984_v42 }
0x12d7   :  { %v1966_v31 = vpop.f32.mrb[52].mxu0  ;;  %1991 = vmax.xlane.f32.xlu1 %v1990_v30  ;;  %v1915_v32 = vpop.f32.mrb[52].mxu1 }
0x12d8   :  { %v1977_v35 = vadd.f32 %v4266_v34, %v1915_v32  ;;  %v3862_v36 = vpop.f32.mrb[53].mxu1  ;;  %v3868_v37 = vpop.f32.mrb[53].mxu0  ;;  %v1979_v33 = vadd.f32 %v4268_v46, %v1966_v31 }
0x12d9   :  { %v1969_v39 = vpop.f32.mrb[54].mxu0  ;;  %1988 = vmax.xlane.f32.xlu0 %v1987_v38  ;;  %v1918_v40 = vpop.f32.mrb[54].mxu1 }
0x12da   :  { %v1978_v43 = vadd.f32 %v4267_v41, %v1918_v40  ;;  %v3863_v44 = vpop.f32.mrb[55].mxu1  ;;  %v3869_v45 = vpop.f32.mrb[55].mxu0  ;;  %v1980_v47 = vadd.f32 %v4269_v5, %v1969_v39  ;;  %v1993_v48 = vsel %vm338_vm3, %v1977_v35, -inf  ;;  %v1999_v50 = vsel %vm338_vm3, %v1979_v33, -inf }
0x12dc   :  { %v1996_v49 = vsel %vm338_vm3, %v1978_v43, -inf  ;;  %v2002_v51 = vsel %vm338_vm3, %v1980_v47, -inf }
0x12dd   :  { %1994 = vmax.xlane.f32.xlu0 %v1993_v48  ;;  %1997 = vmax.xlane.f32.xlu1 %v1996_v49 }
0x12e1   :  { %2000 = vmax.xlane.f32.xlu0 %v1999_v50  ;;  %2003 = vmax.xlane.f32.xlu1 %v2002_v51 }
0x12f2   :  { %2120 = vrot.lane.b32.xlu1 %v4770_v62, %s4311_s26 }
0x12f7   :  { %2073 = vrot.lane.b32.xlu0 %v4770_v62, %s4312_s27 }
0x1360   :  { %v1983_v52 = vpop.xlane.xlu1 %1982 }
0x1361   :  { %v2005_v56 = vsub.f32 %v1973_v16, %v1983_v52 }
0x1362   :  { %v1986_v57 = vpop.xlane.xlu0 %1985 }
0x1363   :  { %v2013_v58 = vmul.f32 1.442695, %v2005_v56  ;;  %v2006_v59 = vsub.f32 %v1974_v22, %v1986_v57 }
0x1364   :  { %v1992_v13 = vpop.xlane.xlu1 %1991 }
0x1365   :  { %4186 = vpow2.f32 %v2013_v58  ;;  %v2015_v60 = vmul.f32 1.442695, %v2006_v59  ;;  %v2008_v61 = vsub.f32 %v1976_v24, %v1992_v13 }
0x1366   :  { %v1989_v63 = vpop.xlane.xlu0 %1988 }
0x1367   :  { %4188 = vpow2.f32 %v2015_v60  ;;  %v2019_v0 = vmul.f32 1.442695, %v2008_v61  ;;  %v2007_v2 = vsub.f32 %v1975_v29, %v1989_v63 }
0x1369   :  { %4190 = vpow2.f32 %v2019_v0  ;;  %v2017_v3 = vmul.f32 1.442695, %v2007_v2 }
0x136a   :  { %v1995_v4 = vpop.xlane.xlu0 %1994  ;;  %v1998_v6 = vpop.xlane.xlu1 %1997 }
0x136b   :  { %4192 = vpow2.f32 %v2017_v3  ;;  %v2009_v7 = vsub.f32 %v1977_v35, %v1995_v4  ;;  %v2010_v8 = vsub.f32 %v1978_v43, %v1998_v6 }
0x136d   :  { %v2021_v9 = vmul.f32 1.442695, %v2009_v7  ;;  %v2023_v10 = vmul.f32 1.442695, %v2010_v8  ;;  %v4096_v8 = vld [vmem:[%s5136_s3 + $0x20] sm:$0xff]  }
0x136e   :  { %v2001_v11 = vpop.xlane.xlu0 %2000  ;;  %v2004_v12 = vpop.xlane.xlu1 %2003 }
0x136f   :  { %v4187_v14 = vpop.eup %4186  ;;  %4194 = vpow2.f32 %v2021_v9  ;;  %v2011_v15 = vsub.f32 %v1979_v33, %v2001_v11  ;;  %v2012_v16 = vsub.f32 %v1980_v47, %v2004_v12  ;;  %v4097_v12 = vld [vmem:[%s5136_s3 + $0x28] sm:$0xff]  }
0x1370   :  { %4196 = vpow2.f32 %v2023_v10  ;;  %v2029_v17 = vsel %vm338_vm3, %v4187_v14, 0.0 }
0x1371   :  { %v4189_v18 = vpop.eup %4188  ;;  %v2025_v19 = vmul.f32 1.442695, %v2011_v15  ;;  %v2027_v20 = vmul.f32 1.442695, %v2012_v16  ;;  %2030 = vadd.xlane.f32.xlu0 %v2029_v17 }
0x1372   :  { %v2074_v21 = vpop.permute.xlu0 %2073  ;;  %v2121_v22 = vpop.permute.xlu1 %2120  ;;  %v2032_v23 = vsel %vm338_vm3, %v4189_v18, 0.0 }
0x1373   :  { %v4191_v24 = vpop.eup %4190  ;;  %4198 = vpow2.f32 %v2025_v19  ;;  %3871 = vmatpush3.bf16.msra.mxu1 %v2074_v21  ;;  %2033 = vadd.xlane.f32.xlu1 %v2032_v23 }
0x1374   :  { %4200 = vpow2.f32 %v2027_v20  ;;  %3877 = vmatpush3.bf16.msra.mxu0 %v2121_v22  ;;  %3882 = vmatprep.subr.bf16.mxu1 %v4302_v1  ;;  %v2038_v27 = vsel %vm338_vm3, %v4191_v24, 0.0 }
0x1375   :  { %v4193_v25 = vpop.eup %4192  ;;  %3888 = vmatprep.subr.bf16.mxu0 %v4302_v1 }
0x1376   :  { %v2035_v26 = vsel %vm338_vm3, %v4193_v25, 0.0 }
0x1377   :  { %2036 = vadd.xlane.f32.xlu0 %v2035_v26  ;;  %2039 = vadd.xlane.f32.xlu1 %v2038_v27 }
0x1379   :  { %v4195_v28 = vpop.eup %4194 }
0x137a   :  { %v4197_v29 = vpop.eup %4196  ;;  %v2041_v42 = vsel %vm338_vm3, %v4195_v28, 0.0 }
0x137b   :  { %2042 = vadd.xlane.f32.xlu0 %v2041_v42  ;;  %v2044_v30 = vsel %vm338_vm3, %v4197_v29, 0.0 }
0x137c   :  { %2045 = vadd.xlane.f32.xlu1 %v2044_v30 }
0x137d   :  { %v4199_v31 = vpop.eup %4198 }
0x137e   :  { %v4201_v32 = vpop.eup %4200  ;;  %v2047_v34 = vsel %vm338_vm3, %v4199_v31, 0.0 }
0x137f   :  { %2048 = vadd.xlane.f32.xlu0 %v2047_v34  ;;  %v2050_v35 = vsel %vm338_vm3, %v4201_v32, 0.0 }
0x1380   :  { %2051 = vadd.xlane.f32.xlu1 %v2050_v35 }
0x1391   :  { %2167 = vrot.lane.b32.xlu1 %v4770_v62, %s4313_s28 }
0x1395   :  { %2214 = vrot.lane.b32.xlu0 %v4770_v62, %s4314_s29 }
0x13fe   :  { %v2031_v36 = vpop.xlane.xlu0 %2030 }
0x13ff   :  { %4202 = vrcp.f32 %v2031_v36 }
0x1400   :  { %v2034_v37 = vpop.xlane.xlu1 %2033 }
0x1401   :  { %4204 = vrcp.f32 %v2034_v37 }
0x1404   :  { %v2037_v38 = vpop.xlane.xlu0 %2036  ;;  %v2040_v39 = vpop.xlane.xlu1 %2039 }
0x1405   :  { %4206 = vrcp.f32 %v2037_v38 }
0x1406   :  { %4208 = vrcp.f32 %v2040_v39 }
0x1408   :  { %v2043_v40 = vpop.xlane.xlu0 %2042 }
0x1409   :  { %v4203_v41 = vpop.eup %4202  ;;  %4210 = vrcp.f32 %v2043_v40  ;;  %v2046_v43 = vpop.xlane.xlu1 %2045 }
0x140a   :  { %4212 = vrcp.f32 %v2046_v43  ;;  %v2061_v45 = vmul.f32 %v4203_v41, %v4187_v14 }
0x140b   :  { %v4205_v44 = vpop.eup %4204 }
0x140c   :  { %v2062_v46 = vmul.f32 %v4205_v44, %v4189_v18  ;;  %v2049_v33 = vpop.xlane.xlu0 %2048  ;;  %v3508_v44 = vld [vmem:[%s5139_s6 + $0xd] ss:$0 sm:$0xff] }
0x140d   :  { %4214 = vrcp.f32 %v2049_v33  ;;  %v2052_v5 = vpop.xlane.xlu1 %2051 }
0x140e   :  { %4216 = vrcp.f32 %v2052_v5  ;;  %v2069_v62 = vpack.c.bf16 %v2062_v46, %v2061_v45 }
0x140f   :  { %v4207_v47 = vpop.eup %4206 }
0x1410   :  { %v4209_v48 = vpop.eup %4208  ;;  %v2063_v49 = vmul.f32 %v4207_v47, %v4193_v25  ;;  %3873 = vmatmul.mubr.msk.bf16.vlgmr.msra.gmra.mrb[56].mxu1 %vm338_vm3, %v2069_v62  ;;  %v2215_v13 = vpop.permute.xlu0 %2214 }
0x1411   :  { %v2064_v50 = vmul.f32 %v4209_v48, %v4191_v24  ;;  %v2168_v51 = vpop.permute.xlu1 %2167  ;;  %3884 = vmatprep.mubr.msk.bf16.mxu1 %vm4303_vm0, %v4302_v1 }
0x1412   :  { %3883 = vmatpush3.bf16.msra.mxu1 %v2168_v51 }
0x1413   :  { %v4211_v52 = vpop.eup %4210  ;;  %v2070_v56 = vpack.c.bf16 %v2064_v50, %v2063_v49  ;;  %3894 = vmatprep.subr.bf16.mxu1 %v4302_v1 }
0x1414   :  { %v4213_v57 = vpop.eup %4212  ;;  %v2065_v58 = vmul.f32 %v4211_v52, %v4195_v28  ;;  %v4098_v52 = vld [vmem:[%s5135_s2 + $0x30] sm:$0xff]  }
0x1415   :  { %v2066_v59 = vmul.f32 %v4213_v57, %v4197_v29  ;;  %3879 = vmatmul.mubr.msk.bf16.vlgmr.msra.gmra.mrb[56].mxu0 %vm338_vm3, %v2070_v56 }
0x1416   :  { %3889 = vmatpush3.bf16.msra.mxu0 %v2215_v13  ;;  %3890 = vmatprep.mubr.msk.bf16.mxu0 %vm4303_vm0, %v4302_v1 }
0x1417   :  { %v4215_v60 = vpop.eup %4214  ;;  %v2071_v61 = vpack.c.bf16 %v2066_v59, %v2065_v58  ;;  %3902 = vmatprep.subr.bf16.mxu0 %v4302_v1 }
0x1418   :  { %v4217_v63 = vpop.eup %4216  ;;  %v2067_v0 = vmul.f32 %v4215_v60, %v4199_v31 }
0x1419   :  { %v2068_v2 = vmul.f32 %v4217_v63, %v4201_v32  ;;  %3885 = vmatmul.mubr.msk.bf16.vlgmr.msra.gmra.mrb[60].mxu1 %vm338_vm3, %v2071_v61 }
0x141a   :  { %3898 = vmatprep.mubr.msk.bf16.mxu1 %vm4303_vm0, %v4302_v1  ;;  %3895 = vmatpush3.bf16.msra.mxu1 %v4096_v8 }
0x141b   :  { %v2072_v3 = vpack.c.bf16 %v2068_v2, %v2067_v0  ;;  %3896 = vmatprep.subr.bf16.mxu1 %v4302_v1 }
0x141d   :  { %3891 = vmatmul.mubr.msk.bf16.vlgmr.msra.gmra.mrb[60].mxu0 %vm338_vm3, %v2072_v3  ;;  %v3518_v3 = vld [vmem:[%s5139_s6 + $0xe] ss:$0 sm:$0xff] }
0x141e   :  { %3906 = vmatprep.mubr.msk.bf16.mxu0 %vm4303_vm0, %v4302_v1  ;;  %3897 = vmatpush3.bf16.msra.mxu1 %v4097_v12 }
0x141f   :  { %3910 = vmatprep.subr.bf16.mxu1 %v4302_v1  ;;  %3903 = vmatpush3.bf16.msra.mxu0 %v4098_v52 }
0x1420   :  { %3904 = vmatprep.subr.bf16.mxu0 %v4302_v1 }
0x14e3   :  { %v2113_v4 = vpop.f32.mrb[56].mxu1 }
0x14e4   :  { %v3874_v6 = vpop.f32.mrb[57].mxu1 }
0x14e5   :  { %v2116_v7 = vpop.f32.mrb[58].mxu1 }
0x14e6   :  { %v3875_v9 = vpop.f32.mrb[59].mxu1 }
0x14e8   :  { %v2160_v10 = vpop.f32.mrb[56].mxu0 }
0x14e9   :  { %v3880_v11 = vpop.f32.mrb[57].mxu0 }
0x14ea   :  { %v2163_v14 = vpop.f32.mrb[58].mxu0 }
0x14eb   :  { %v4050_v15 = vpack.i.bf16 %v2163_v14, %v2160_v10  ;;  %v3881_v16 = vpop.f32.mrb[59].mxu0 }
0x14ec   :  { %v2207_v17 = vpop.f32.mrb[60].mxu1 }
0x14ed   :  { %4051 = vrot.lane.b32.xlu1 %v4050_v15, %s4315_s13  ;;  %v3886_v18 = vpop.f32.mrb[61].mxu1  ;;  %v3512_v15 = vld [vmem:[%s5139_s6 + $0x12] ss:$0 sm:$0xff] }
0x14ee   :  { %v2210_v19 = vpop.f32.mrb[62].mxu1 }
0x14ef   :  { %v4055_v20 = vpack.i.bf16 %v2210_v19, %v2207_v17  ;;  %v3887_v21 = vpop.f32.mrb[63].mxu1  ;;  %v3513_v19 = vld [vmem:[%s5139_s6 + $0x13] ss:$0 sm:$0xff] }
0x14f0   :  { %v2254_v22 = vpop.f32.mrb[60].mxu0 }
0x14f1   :  { %v3892_v23 = vpop.f32.mrb[61].mxu0  ;;  %4056 = vrot.lane.b32.xlu0 %v4055_v20, %s4316_s14 }
0x14f2   :  { %v2257_v24 = vpop.f32.mrb[62].mxu0 }
0x14f3   :  { %v4060_v25 = vpack.i.bf16 %v2257_v24, %v2254_v22  ;;  %v3893_v26 = vpop.f32.mrb[63].mxu0 }
0x14f5   :  { %4061 = vrot.lane.b32.xlu1 %v4060_v25, %s4317_s15 }
0x155f   :  { %v4052_v27 = vpop.permute.xlu1 %4051 }
0x1560   :  { %v4054_v29 = vunpack.i.h.bf16 %v4052_v27  ;;  %v4053_v42 = vunpack.i.l.bf16 %v4052_v27 }
0x1562   :  { %v2285_v34 = vsel %vm129_vm2, %v2113_v4, %v4053_v42  ;;  %v2286_v35 = vsel %vm129_vm2, %v2116_v7, %v4054_v29 }
0x1563   :  { %v4057_v28 = vpop.permute.xlu0 %4056 }
0x1564   :  { %v4059_v30 = vunpack.i.h.bf16 %v4057_v28  ;;  %v4058_v31 = vunpack.i.l.bf16 %v4057_v28 }
0x1566   :  { %v2288_v38 = vsel %vm338_vm3, %v2286_v35, %v4059_v30  ;;  %v2287_v39 = vsel %vm338_vm3, %v2285_v34, %v4058_v31 }
0x1567   :  { %v4062_v32 = vpop.permute.xlu1 %4061 }
0x1568   :  { %v4064_v36 = vunpack.i.h.bf16 %v4062_v32  ;;  %v4063_v37 = vunpack.i.l.bf16 %v4062_v32 }
0x156a   :  { %v2289_v40 = vsel %vm647_vm4, %v2287_v39, %v4063_v37  ;;  %v2290_v41 = vsel %vm647_vm4, %v2288_v38, %v4064_v36 }
0x156b   :  { %v2291_v43 = vpack.c.bf16 %v2290_v41, %v2289_v40 }
0x156d   :  { %3899 = vmatmul.mubr.msk.bf16.vlgmr.msra.gmra.mrb[64].mxu1 %vm75_vm1, %v2291_v43 }
0x156e   :  { %3914 = vmatprep.mubr.msk.bf16.mxu1 %vm4303_vm0, %v4302_v1 }
0x1640   :  { %v2345_v45 = vpop.f32.mrb[64].mxu1 }
0x1641   :  { %v2346_v46 = vadd.f32 %v3508_v44, %v2345_v45  ;;  %v3900_v33 = vpop.f32.mrb[65].mxu1 }
0x1642   :  { %v2348_v5 = vpop.f32.mrb[66].mxu1 }
0x1643   :  { %v2352_v62 = vadd.f32 %v2346_v46, %v4755_v53  ;;  %v2349_v47 = vadd.f32 %v3508_v44, %v2348_v5  ;;  %v3901_v48 = vpop.f32.mrb[67].mxu1  ;;  %v4099_v53 = vld [vmem:[%s5135_s2 + $0x38] sm:$0xff]  }
0x1644   :  { %3905 = vmatpush3.bf16.msra.mxu0 %v4099_v53 }
0x1645   :  { %v2353_v49 = vadd.f32 %v2349_v47, %v4757_v54  ;;  %v2356_v50 = vsel %vm75_vm1, %v2352_v62, 0.0  ;;  %3918 = vmatprep.subr.bf16.mxu0 %v4302_v1  ;;  %v4270_v47 = vld [vmem:[%s5133_s0 + $0x40] sm:$0xff] }
0x1646   :  { %2357 = vadd.xlane.f32.xlu0 %v2356_v50 }
0x1647   :  { %v2359_v51 = vsel %vm75_vm1, %v2353_v49, 0.0 }
0x1648   :  { %2360 = vadd.xlane.f32.xlu1 %v2359_v51  ;;  %v4271_v51 = vld [vmem:[%s5133_s0 + $0x48] sm:$0xff] }
0x1659   :  { %2461 = vrot.lane.b32.xlu1 %v4098_v52, %s4305_s19 }
0x165d   :  { %2468 = vrot.lane.b32.xlu1 %v3518_v3, %s4305_s19 }
0x16d3   :  { %v2358_v54 = vpop.xlane.xlu0 %2357 }
0x16d4   :  { %v2362_v56 = vmul.f32 0.03125, %v2358_v54 }
0x16d5   :  { %v2361_v57 = vpop.xlane.xlu1 %2360 }
0x16d6   :  { %v2364_v58 = vsub.f32 %v2352_v62, %v2362_v56  ;;  %v2363_v59 = vmul.f32 0.03125, %v2361_v57 }
0x16d8   :  { %v2365_v13 = vsub.f32 %v2353_v49, %v2363_v59  ;;  %v2366_v60 = vmul.f32 %v2364_v58, %v2364_v58 }
0x16d9   :  { %v2462_v2 = vpop.permute.xlu1 %2461 }
0x16da   :  { %v2368_v61 = vsel %vm75_vm1, %v2366_v60, 0.0  ;;  %v2367_v63 = vmul.f32 %v2365_v13, %v2365_v13  ;;  %3911 = vmatpush3.bf16.msra.mxu1 %v2462_v2 }
0x16db   :  { %2369 = vadd.xlane.f32.xlu0 %v2368_v61  ;;  %3912 = vmatprep.subr.bf16.mxu1 %v4302_v1  ;;  %v4273_v61 = vld [vmem:[%s5133_s0 + $0x58] sm:$0xff] }
0x16dc   :  { %v2371_v0 = vsel %vm75_vm1, %v2367_v63, 0.0 }
0x16dd   :  { %v2469_v23 = vpop.permute.xlu1 %2468 }
0x16df   :  { %2372 = vadd.xlane.f32.xlu0 %v2371_v0 }
0x16f5   :  { %2463 = vrot.lane.b32.xlu0 %v4099_v53, %s4305_s19 }
0x1768   :  { %v2370_v4 = vpop.xlane.xlu0 %2369 }
0x1769   :  { %v2374_v6 = vmul.f32 0.03125, %v2370_v4  ;;  %v4274_v4 = vld [vmem:[%s5133_s0 + $0x60] sm:$0xff] }
0x176b   :  { %v2376_v7 = vadd.f32 1e-05, %v2374_v6 }
0x176c   :  { %v2373_v8 = vpop.xlane.xlu0 %2372 }
0x176d   :  { %4218 = vrsqrt.f32 %v2376_v7  ;;  %v2375_v9 = vmul.f32 0.03125, %v2373_v8 }
0x176f   :  { %v2377_v10 = vadd.f32 1e-05, %v2375_v9 }
0x1770   :  { %v2464_v11 = vpop.permute.xlu0 %2463 }
0x1771   :  { %4220 = vrsqrt.f32 %v2377_v10  ;;  %3913 = vmatpush3.bf16.msra.mxu1 %v2464_v11  ;;  %v4275_v10 = vld [vmem:[%s5133_s0 + $0x68] sm:$0xff] }
0x1772   :  { %3924 = vmatprep.subr.bf16.mxu1 %v4302_v1 }
0x1774   :  { %3915 = vmatmul.mubr.msk.bf16.vlgmr.msra.gmra.mrb[68].mxu1 %vm75_vm1, %v4761_v55 }
0x1775   :  { %3926 = vmatprep.mubr.msk.bf16.mxu1 %vm4303_vm0, %v4302_v1 }
0x1777   :  { %v4219_v12 = vpop.eup %4218 }
0x1778   :  { %v2380_v14 = vmul.f32 %v4219_v12, %v2364_v58  ;;  %v4272_v58 = vld [vmem:[%s5133_s0 + $0x50] sm:$0xff] }
0x177a   :  { %v2386_v17 = vmul.f32 %v3512_v15, %v2380_v14 }
0x177b   :  { %v4221_v16 = vpop.eup %4220 }
0x177c   :  { %v2381_v18 = vmul.f32 %v4221_v16, %v2365_v13  ;;  %v4926_v21 = vadd.f32 %v3513_v19, %v2386_v17  ;;  %v4276_v16 = vld [vmem:[%s5133_s0 + $0x70] sm:$0xff] }
0x177e   :  { %v2387_v20 = vmul.f32 %v3512_v15, %v2381_v18 }
0x1780   :  { %v4928_v55 = vadd.f32 %v3513_v19, %v2387_v20 }
0x1782   :  { %v2394_v22 = vpack.c.bf16 %v4928_v55, %v4926_v21 }
0x1784   :  { %3907 = vmatmul.mubr.msk.bf16.vlgmr.msra.gmra.mrb[64].mxu0 %vm75_vm1, %v2394_v22  ;;  %v4277_v22 = vld [vmem:[%s5133_s0 + $0x78] sm:$0xff] }
0x1785   :  { %3920 = vmatprep.mubr.msk.bf16.mxu0 %vm4303_vm0, %v4302_v1 }
0x1847   :  { %v2505_v24 = vpop.f32.mrb[68].mxu1 }
0x1848   :  { %v3916_v25 = vpop.f32.mrb[69].mxu1  ;;  %v2506_v27 = vadd.f32 %v2505_v24, %v2469_v23 }
0x1849   :  { %v2508_v26 = vpop.f32.mrb[70].mxu1 }
0x184a   :  { %v2509_v28 = vadd.f32 %v2508_v26, %v2469_v23  ;;  %v3917_v29 = vpop.f32.mrb[71].mxu1 }
0x184c   :  { %v4935_v42 = vpack.c.bf16 %v2509_v28, %v2506_v27 }
0x184e   :  { %2622 = vrot.lane.b32.xlu0 %v4935_v42, %s4308_s22  ;;  %2571 = vrot.lane.b32.xlu1 %v4935_v42, %s4306_s20  ;;  %v2524_v30 = vsel %vm129_vm2, %v4935_v42, 0 }
0x184f   :  { %3919 = vmatpush3.bf16.xpose.msra.mxu0 %v2524_v30 }
0x1850   :  { %3930 = vmatprep.subr.bf16.mxu0 %v4302_v1 }
0x1852   :  { %2673 = vrot.lane.b32.xlu0 %v4935_v42, %s4310_s24 }
0x1857   :  { %v2454_v31 = vpop.f32.mrb[64].mxu0 }
0x1858   :  { %v3908_v32 = vpop.f32.mrb[65].mxu0  ;;  %v2455_v35 = vadd.f32 %v3518_v3, %v2454_v31 }
0x1859   :  { %v2457_v34 = vpop.f32.mrb[66].mxu0 }
0x185a   :  { %v2458_v36 = vadd.f32 %v3518_v3, %v2457_v34  ;;  %v3909_v37 = vpop.f32.mrb[67].mxu0 }
0x185c   :  { %v2518_v38 = vpack.c.bf16 %v2458_v36, %v2455_v35 }
0x185e   :  { %2671 = vrot.lane.b32.xlu0 %v2518_v38, %s4310_s24  ;;  %2568 = vrot.lane.b32.xlu1 %v2518_v38, %s4306_s20 }
0x185f   :  { %3921 = vmatmul.mubr.msk.bf16.vlgmr.msra.gmra.mrb[68].mxu0 %vm129_vm2, %v2518_v38 }
0x1860   :  { %3932 = vmatprep.mubr.msk.bf16.mxu0 %vm4303_vm0, %v4302_v1 }
0x1862   :  { %2620 = vrot.lane.b32.xlu1 %v2518_v38, %s4308_s22  ;;  %s4318_s22 = smov [#allocation2]  }
0x1863   :  { %s3412_s24 = sshll.u32 %s4318_s22, 4  ;;  %s3413_s24 = int_to_ptr.vmem [resolvable:$true] %s3412_s24 }
0x1864   :  { %p4283_p1 = scmp.lt.s32.totalorder %s3413_s24, %s3413_s24 }
0x18c0   :  { %v2623_v39 = vpop.permute.xlu0 %2622  ;;  %v2572_v40 = vpop.permute.xlu1 %2571 }
0x18c1   :  { %v2628_v41 = vsel %vm129_vm2, %v2623_v39, 0  ;;  %v2577_v43 = vsel %vm129_vm2, %v2572_v40, 0 }
0x18c2   :  { %3925 = vmatpush3.bf16.xpose.msra.mxu1 %v2577_v43  ;;  %3931 = vmatpush3.bf16.xpose.msra.mxu0 %v2628_v41 }
0x18c3   :  { %3936 = vmatprep.subr.bf16.mxu1 %v4302_v1  ;;  %3942 = vmatprep.subr.bf16.mxu0 %v4302_v1 }
0x18c4   :  { %v2674_v44 = vpop.permute.xlu0 %2673 }
0x18c5   :  { %v2679_v46 = vsel %vm129_vm2, %v2674_v44, 0 }
0x18d0   :  { %v2569_v45 = vpop.permute.xlu1 %2568  ;;  %v2672_v5 = vpop.permute.xlu0 %2671 }
0x18d1   :  { %3927 = vmatmul.mubr.msk.bf16.vlgmr.msra.gmra.mrb[72].mxu1 %vm129_vm2, %v2569_v45 }
0x18d2   :  { %3937 = vmatpush3.bf16.xpose.msra.mxu1 %v2679_v46  ;;  %3938 = vmatprep.mubr.msk.bf16.mxu1 %vm4303_vm0, %v4302_v1 }
0x18d3   :  { %3948 = vmatprep.subr.bf16.mxu1 %v4302_v1 }
0x18d4   :  { %v2621_v33 = vpop.permute.xlu1 %2620 }
0x18d5   :  { %3933 = vmatmul.mubr.msk.bf16.vlgmr.msra.gmra.mrb[72].mxu0 %vm129_vm2, %v2621_v33 }
0x18d6   :  { %3944 = vmatprep.mubr.msk.bf16.mxu0 %vm4303_vm0, %v4302_v1 }
0x18d9   :  { %3939 = vmatmul.mubr.msk.bf16.vlgmr.msra.gmra.mrb[76].mxu1 %vm129_vm2, %v2672_v5 }
0x18da   :  { %3950 = vmatprep.mubr.msk.bf16.mxu1 %vm4303_vm0, %v4302_v1 }
0x1932   :  { %v2560_v62 = vpop.f32.mrb[68].mxu0 }
0x1933   :  { %v2722_v48 = vadd.f32 %v4270_v47, %v2560_v62  ;;  %v3922_v49 = vpop.f32.mrb[69].mxu0 }
0x1934   :  { %v2563_v50 = vpop.f32.mrb[70].mxu0 }
0x1935   :  { %v2723_v52 = vadd.f32 %v4271_v51, %v2563_v50  ;;  %v3923_v53 = vpop.f32.mrb[71].mxu0  ;;  %v2730_v54 = vsel %vm338_vm3, %v2722_v48, -inf }
0x1936   :  { %2731 = vmax.xlane.f32.xlu1 %v2730_v54 }
0x1937   :  { %v2733_v56 = vsel %vm338_vm3, %v2723_v52, -inf }
0x1938   :  { %2734 = vmax.xlane.f32.xlu0 %v2733_v56 }
0x19a4   :  { %v2613_v57 = vpop.f32.mrb[72].mxu1 }
0x19a5   :  { %v2724_v59 = vadd.f32 %v4272_v58, %v2613_v57  ;;  %v3928_v13 = vpop.f32.mrb[73].mxu1 }
0x19a6   :  { %v2616_v60 = vpop.f32.mrb[74].mxu1 }
0x19a7   :  { %v2725_v63 = vadd.f32 %v4273_v61, %v2616_v60  ;;  %v3929_v0 = vpop.f32.mrb[75].mxu1  ;;  %v2736_v2 = vsel %vm338_vm3, %v2724_v59, -inf }
0x19a8   :  { %v2664_v3 = vpop.f32.mrb[72].mxu0  ;;  %2737 = vmax.xlane.f32.xlu0 %v2736_v2 }
0x19a9   :  { %v2726_v6 = vadd.f32 %v4274_v4, %v2664_v3  ;;  %v3934_v7 = vpop.f32.mrb[73].mxu0  ;;  %v2739_v8 = vsel %vm338_vm3, %v2725_v63, -inf }
0x19aa   :  { %v2667_v9 = vpop.f32.mrb[74].mxu0  ;;  %2740 = vmax.xlane.f32.xlu1 %v2739_v8 }
0x19ab   :  { %v2727_v11 = vadd.f32 %v4275_v10, %v2667_v9  ;;  %v3935_v12 = vpop.f32.mrb[75].mxu0  ;;  %v2742_v14 = vsel %vm338_vm3, %v2726_v6, -inf }
0x19ac   :  { %2743 = vmax.xlane.f32.xlu0 %v2742_v14  ;;  %v2715_v15 = vpop.f32.mrb[76].mxu1 }
0x19ad   :  { %v2728_v17 = vadd.f32 %v4276_v16, %v2715_v15  ;;  %v3940_v18 = vpop.f32.mrb[77].mxu1  ;;  %v2745_v19 = vsel %vm338_vm3, %v2727_v11, -inf }
0x19ae   :  { %2746 = vmax.xlane.f32.xlu1 %v2745_v19  ;;  %v2718_v20 = vpop.f32.mrb[78].mxu1 }
0x19af   :  { %v2729_v23 = vadd.f32 %v4277_v22, %v2718_v20  ;;  %v3941_v24 = vpop.f32.mrb[79].mxu1  ;;  %v2748_v25 = vsel %vm338_vm3, %v2728_v17, -inf }
0x19b0   :  { %2749 = vmax.xlane.f32.xlu0 %v2748_v25 }
0x19b1   :  { %v2751_v26 = vsel %vm338_vm3, %v2729_v23, -inf }
0x19b2   :  { %2752 = vmax.xlane.f32.xlu1 %v2751_v26 }
0x19c3   :  { %2869 = vrot.lane.b32.xlu1 %v4935_v42, %s4307_s21  ;;  %v2732_v27 = vpop.xlane.xlu1 %2731 }
0x19c4   :  { %v2754_v29 = vsub.f32 %v2722_v48, %v2732_v27 }
0x19c5   :  { %v2735_v28 = vpop.xlane.xlu0 %2734 }
0x19c6   :  { %2822 = vrot.lane.b32.xlu0 %v4935_v42, %s4305_s19  ;;  %v2755_v30 = vsub.f32 %v2723_v52, %v2735_v28  ;;  %v2762_v31 = vmul.f32 1.442695, %v2754_v29 }
0x19c8   :  { %v2764_v32 = vmul.f32 1.442695, %v2755_v30  ;;  %4222 = vpow2.f32 %v2762_v31 }
0x19ca   :  { %4224 = vpow2.f32 %v2764_v32 }
0x19d2   :  { %v4223_v34 = vpop.eup %4222 }
0x19d3   :  { %v2778_v36 = vsel %vm338_vm3, %v4223_v34, 0.0 }
0x19d4   :  { %v4225_v35 = vpop.eup %4224 }
0x19d5   :  { %v2781_v37 = vsel %vm338_vm3, %v4225_v35, 0.0 }
0x19e5   :  { %2779 = vadd.xlane.f32.xlu0 %v2778_v36 }
0x19e7   :  { %2782 = vadd.xlane.f32.xlu1 %v2781_v37 }
0x1a35   :  { %v2738_v38 = vpop.xlane.xlu0 %2737 }
0x1a36   :  { %v2756_v39 = vsub.f32 %v2724_v59, %v2738_v38 }
0x1a37   :  { %v2741_v40 = vpop.xlane.xlu1 %2740 }
0x1a38   :  { %v2766_v41 = vmul.f32 1.442695, %v2756_v39  ;;  %v2757_v43 = vsub.f32 %v2725_v63, %v2741_v40 }
0x1a39   :  { %v2744_v44 = vpop.xlane.xlu0 %2743 }
0x1a3a   :  { %4226 = vpow2.f32 %v2766_v41  ;;  %v2768_v45 = vmul.f32 1.442695, %v2757_v43  ;;  %v2758_v46 = vsub.f32 %v2726_v6, %v2744_v44  ;;  %v4100_v44 = vld [vmem:[%s5136_s3 + $0x30] sm:$0xff]  }
0x1a3b   :  { %v2747_v33 = vpop.xlane.xlu1 %2746 }
0x1a3c   :  { %4228 = vpow2.f32 %v2768_v45  ;;  %v2770_v5 = vmul.f32 1.442695, %v2758_v46  ;;  %v2759_v62 = vsub.f32 %v2727_v11, %v2747_v33  ;;  %v4101_v33 = vld [vmem:[%s5136_s3 + $0x38] sm:$0xff]  }
0x1a3d   :  { %v2750_v47 = vpop.xlane.xlu0 %2749 }
0x1a3e   :  { %4230 = vpow2.f32 %v2770_v5  ;;  %v2772_v48 = vmul.f32 1.442695, %v2759_v62  ;;  %v2760_v49 = vsub.f32 %v2728_v17, %v2750_v47 }
0x1a3f   :  { %v2753_v50 = vpop.xlane.xlu1 %2752 }
0x1a40   :  { %4232 = vpow2.f32 %v2772_v48  ;;  %v2774_v51 = vmul.f32 1.442695, %v2760_v49  ;;  %v2761_v52 = vsub.f32 %v2729_v23, %v2753_v50 }
0x1a41   :  { %v2823_v53 = vpop.permute.xlu0 %2822 }
0x1a42   :  { %4234 = vpow2.f32 %v2774_v51  ;;  %v2776_v54 = vmul.f32 1.442695, %v2761_v52  ;;  %3943 = vmatpush3.bf16.msra.mxu0 %v2823_v53 }
0x1a43   :  { %v2870_v56 = vpop.permute.xlu1 %2869  ;;  %3954 = vmatprep.subr.bf16.mxu0 %v4302_v1 }
0x1a44   :  { %v4227_v57 = vpop.eup %4226  ;;  %4236 = vpow2.f32 %v2776_v54  ;;  %3949 = vmatpush3.bf16.msra.mxu1 %v2870_v56 }
0x1a45   :  { %v2784_v58 = vsel %vm338_vm3, %v4227_v57, 0.0  ;;  %3960 = vmatprep.subr.bf16.mxu1 %v4302_v1 }
0x1a46   :  { %v4229_v59 = vpop.eup %4228  ;;  %2785 = vadd.xlane.f32.xlu0 %v2784_v58 }
0x1a47   :  { %v2787_v13 = vsel %vm338_vm3, %v4229_v59, 0.0 }
0x1a48   :  { %v4231_v60 = vpop.eup %4230  ;;  %2788 = vadd.xlane.f32.xlu1 %v2787_v13 }
0x1a49   :  { %v2790_v61 = vsel %vm338_vm3, %v4231_v60, 0.0 }
0x1a4a   :  { %v4233_v63 = vpop.eup %4232  ;;  %2791 = vadd.xlane.f32.xlu0 %v2790_v61 }
0x1a4b   :  { %v2793_v0 = vsel %vm338_vm3, %v4233_v63, 0.0 }
0x1a4c   :  { %v4235_v2 = vpop.eup %4234  ;;  %2794 = vadd.xlane.f32.xlu1 %v2793_v0 }
0x1a4d   :  { %v2796_v3 = vsel %vm338_vm3, %v4235_v2, 0.0 }
0x1a4e   :  { %v4237_v4 = vpop.eup %4236  ;;  %2797 = vadd.xlane.f32.xlu0 %v2796_v3 }
0x1a4f   :  { %v2799_v6 = vsel %vm338_vm3, %v4237_v4, 0.0 }
0x1a50   :  { %2800 = vadd.xlane.f32.xlu1 %v2799_v6 }
0x1a61   :  { %2916 = vrot.lane.b32.xlu1 %v4935_v42, %s4304_s18 }
0x1a64   :  { %2963 = vrot.lane.b32.xlu0 %v4935_v42, %s4309_s23 }
0x1a72   :  { %v2780_v7 = vpop.xlane.xlu0 %2779 }
0x1a73   :  { %4238 = vrcp.f32 %v2780_v7 }
0x1a74   :  { %v2783_v8 = vpop.xlane.xlu1 %2782 }
0x1a75   :  { %4240 = vrcp.f32 %v2783_v8 }
0x1a7d   :  { %v4239_v9 = vpop.eup %4238 }
0x1a7e   :  { %v2810_v11 = vmul.f32 %v4239_v9, %v4223_v34 }
0x1a7f   :  { %v4241_v10 = vpop.eup %4240 }
0x1a80   :  { %v2811_v12 = vmul.f32 %v4241_v10, %v4225_v35 }
0x1a82   :  { %v2818_v14 = vpack.c.bf16 %v2811_v12, %v2810_v11 }
0x1a84   :  { %3945 = vmatmul.mubr.msk.bf16.vlgmr.msra.gmra.mrb[76].mxu0 %vm338_vm3, %v2818_v14  ;;  %v3535_v14 = vld [vmem:[%s5139_s6 + $0xf] ss:$0 sm:$0xff] }
0x1a85   :  { %3956 = vmatprep.mubr.msk.bf16.mxu0 %vm4303_vm0, %v4302_v1 }
0x1ad3   :  { %v2786_v15 = vpop.xlane.xlu0 %2785 }
0x1ad4   :  { %4242 = vrcp.f32 %v2786_v15 }
0x1ad5   :  { %v2789_v16 = vpop.xlane.xlu1 %2788 }
0x1ad6   :  { %4244 = vrcp.f32 %v2789_v16 }
0x1ad7   :  { %v2792_v17 = vpop.xlane.xlu0 %2791 }
0x1ad8   :  { %4246 = vrcp.f32 %v2792_v17 }
0x1ad9   :  { %v2795_v42 = vpop.xlane.xlu1 %2794 }
0x1ada   :  { %4248 = vrcp.f32 %v2795_v42 }
0x1adb   :  { %v2798_v18 = vpop.xlane.xlu0 %2797 }
0x1adc   :  { %4250 = vrcp.f32 %v2798_v18 }
0x1add   :  { %v2801_v19 = vpop.xlane.xlu1 %2800 }
0x1ade   :  { %v4243_v20 = vpop.eup %4242  ;;  %4252 = vrcp.f32 %v2801_v19 }
0x1adf   :  { %v2812_v23 = vmul.f32 %v4243_v20, %v4227_v57  ;;  %v2964_v31 = vpop.permute.xlu0 %2963 }
0x1ae0   :  { %v4245_v22 = vpop.eup %4244 }
0x1ae1   :  { %v2813_v24 = vmul.f32 %v4245_v22, %v4229_v59  ;;  %v2917_v25 = vpop.permute.xlu1 %2916 }
0x1ae2   :  { %v4247_v26 = vpop.eup %4246  ;;  %3955 = vmatpush3.bf16.msra.mxu0 %v2917_v25 }
0x1ae3   :  { %v2819_v27 = vpack.c.bf16 %v2813_v24, %v2812_v23  ;;  %3966 = vmatprep.subr.bf16.mxu0 %v4302_v1  ;;  %v2814_v29 = vmul.f32 %v4247_v26, %v4231_v60 }
0x1ae4   :  { %v4249_v28 = vpop.eup %4248 }
0x1ae5   :  { %v2815_v30 = vmul.f32 %v4249_v28, %v4233_v63  ;;  %3951 = vmatmul.mubr.msk.bf16.vlgmr.msra.gmra.mrb[80].mxu1 %vm338_vm3, %v2819_v27 }
0x1ae6   :  { %v4251_v32 = vpop.eup %4250  ;;  %3961 = vmatpush3.bf16.msra.mxu1 %v2964_v31  ;;  %3962 = vmatprep.mubr.msk.bf16.mxu1 %vm4303_vm0, %v4302_v1 }
0x1ae7   :  { %v2820_v34 = vpack.c.bf16 %v2815_v30, %v2814_v29  ;;  %3974 = vmatprep.subr.bf16.mxu1 %v4302_v1  ;;  %v2816_v36 = vmul.f32 %v4251_v32, %v4235_v2 }
0x1ae8   :  { %v4253_v35 = vpop.eup %4252 }
0x1ae9   :  { %v2817_v37 = vmul.f32 %v4253_v35, %v4237_v4  ;;  %3957 = vmatmul.mubr.msk.bf16.vlgmr.msra.gmra.mrb[80].mxu0 %vm338_vm3, %v2820_v34  ;;  %v4103_v35 = vld [vmem:[%s5137_s4 + $0x18] sm:$0xff]  }
0x1aea   :  { %3970 = vmatprep.mubr.msk.bf16.mxu0 %vm4303_vm0, %v4302_v1  ;;  %3967 = vmatpush3.bf16.msra.mxu0 %v4100_v44 }
0x1aeb   :  { %v2821_v38 = vpack.c.bf16 %v2817_v37, %v2816_v36  ;;  %3968 = vmatprep.subr.bf16.mxu0 %v4302_v1  ;;  %v4104_v36 = vld [vmem:[%s5138_s5 + $0x20] sm:$0xff]   ;;  %v4105_v37 = vld [vmem:[%s5138_s5 + $0x28] sm:$0xff]  }
0x1aed   :  { %3963 = vmatmul.mubr.msk.bf16.vlgmr.msra.gmra.mrb[84].mxu1 %vm338_vm3, %v2821_v38 }
0x1aee   :  { %3978 = vmatprep.mubr.msk.bf16.mxu1 %vm4303_vm0, %v4302_v1  ;;  %3969 = vmatpush3.bf16.msra.mxu0 %v4101_v33  ;;  %v3539_v33 = vld [vmem:[%s5139_s6 + $0x14] ss:$0 sm:$0xff] }
0x1aef   :  { %3982 = vmatprep.subr.bf16.mxu0 %v4302_v1 }
0x1b57   :  { %v2862_v39 = vpop.f32.mrb[76].mxu0 }
0x1b58   :  { %v3946_v40 = vpop.f32.mrb[77].mxu0 }
0x1b59   :  { %v2865_v41 = vpop.f32.mrb[78].mxu0 }
0x1b5a   :  { %v3947_v43 = vpop.f32.mrb[79].mxu0 }
0x1bb8   :  { %v2909_v45 = vpop.f32.mrb[80].mxu1 }
0x1bb9   :  { %v3952_v46 = vpop.f32.mrb[81].mxu1 }
0x1bba   :  { %v2912_v5 = vpop.f32.mrb[82].mxu1 }
0x1bbb   :  { %v4065_v62 = vpack.i.bf16 %v2912_v5, %v2909_v45  ;;  %v3953_v47 = vpop.f32.mrb[83].mxu1 }
0x1bbc   :  { %v2956_v48 = vpop.f32.mrb[80].mxu0 }
0x1bbd   :  { %v3958_v49 = vpop.f32.mrb[81].mxu0  ;;  %4066 = vrot.lane.b32.xlu1 %v4065_v62, %s4315_s13 }
0x1bbe   :  { %v2959_v50 = vpop.f32.mrb[82].mxu0 }
0x1bbf   :  { %v4070_v51 = vpack.i.bf16 %v2959_v50, %v2956_v48  ;;  %v3959_v52 = vpop.f32.mrb[83].mxu0  ;;  %v3540_v48 = vld [vmem:[%s5139_s6 + $0x15] ss:$0 sm:$0xff] }
0x1bc0   :  { %v3003_v53 = vpop.f32.mrb[84].mxu1 }
0x1bc1   :  { %4071 = vrot.lane.b32.xlu0 %v4070_v51, %s4316_s14  ;;  %v3964_v54 = vpop.f32.mrb[85].mxu1 }
0x1bc2   :  { %v3006_v56 = vpop.f32.mrb[86].mxu1  ;;  %v4107_v54 = vld [vmem:[%s5138_s5 + $0x38] sm:$0xff]  }
0x1bc3   :  { %v4075_v57 = vpack.i.bf16 %v3006_v56, %v3003_v53  ;;  %v3965_v58 = vpop.f32.mrb[87].mxu1  ;;  %v4106_v53 = vld [vmem:[%s5138_s5 + $0x30] sm:$0xff]  }
0x1bc4   :  { %v3545_v56 = vld [vmem:[%s5139_s6 + $0x10] ss:$0 sm:$0xff] }
0x1bc5   :  { %4076 = vrot.lane.b32.xlu1 %v4075_v57, %s4317_s15 }
0x1c2f   :  { %v4067_v59 = vpop.permute.xlu1 %4066 }
0x1c30   :  { %v4069_v60 = vunpack.i.h.bf16 %v4067_v59  ;;  %v4068_v61 = vunpack.i.l.bf16 %v4067_v59 }
0x1c32   :  { %v3035_v3 = vsel %vm129_vm2, %v2865_v41, %v4069_v60  ;;  %v3034_v4 = vsel %vm129_vm2, %v2862_v39, %v4068_v61 }
0x1c33   :  { %v4072_v13 = vpop.permute.xlu0 %4071 }
0x1c34   :  { %v4074_v63 = vunpack.i.h.bf16 %v4072_v13  ;;  %v4073_v0 = vunpack.i.l.bf16 %v4072_v13 }
0x1c36   :  { %v3036_v8 = vsel %vm338_vm3, %v3034_v4, %v4073_v0  ;;  %v3037_v9 = vsel %vm338_vm3, %v3035_v3, %v4074_v63  ;;  %v3557_v3 = vld [vmem:[%s5139_s6 + $0x11] ss:$0 sm:$0xff] }
0x1c37   :  { %v4077_v2 = vpop.permute.xlu1 %4076 }
0x1c38   :  { %v4079_v6 = vunpack.i.h.bf16 %v4077_v2  ;;  %v4078_v7 = vunpack.i.l.bf16 %v4077_v2 }
0x1c3a   :  { %v3039_v10 = vsel %vm647_vm4, %v3037_v9, %v4079_v6  ;;  %v3038_v11 = vsel %vm647_vm4, %v3036_v8, %v4078_v7 }
0x1c3b   :  { %v3040_v12 = vpack.c.bf16 %v3039_v10, %v3038_v11 }
0x1c3d   :  { %3971 = vmatmul.mubr.msk.bf16.vlgmr.msra.gmra.mrb[84].mxu0 %vm75_vm1, %v3040_v12 }
0x1c3e   :  { %3990 = vmatprep.mubr.msk.bf16.mxu0 %vm4303_vm0, %v4302_v1  ;;  %3983 = vmatpush3.bf16.msra.mxu0 %v4104_v36 }
0x1c3f   :  { %3984 = vmatprep.subr.bf16.mxu0 %v4302_v1 }
0x1c42   :  { %3985 = vmatpush3.bf16.msra.mxu0 %v4105_v37 }
0x1c43   :  { %3986 = vmatprep.subr.bf16.mxu0 %v4302_v1 }
0x1c46   :  { %3987 = vmatpush3.bf16.msra.mxu0 %v4106_v53 }
0x1c47   :  { %3988 = vmatprep.subr.bf16.mxu0 %v4302_v1 }
0x1c4a   :  { %3989 = vmatpush3.bf16.msra.mxu0 %v4107_v54 }
0x1d10   :  { %v3094_v15 = vpop.f32.mrb[84].mxu0 }
0x1d11   :  { %v3095_v16 = vadd.f32 %v3535_v14, %v3094_v15  ;;  %v3972_v17 = vpop.f32.mrb[85].mxu0 }
0x1d12   :  { %v3097_v42 = vpop.f32.mrb[86].mxu0 }
0x1d13   :  { %v3101_v18 = vadd.f32 %v3095_v16, %v4926_v21  ;;  %v3098_v19 = vadd.f32 %v3535_v14, %v3097_v42  ;;  %v3973_v20 = vpop.f32.mrb[87].mxu0 }
0x1d15   :  { %v3102_v22 = vadd.f32 %v3098_v19, %v4928_v55  ;;  %v3105_v23 = vsel %vm75_vm1, %v3101_v18, 0.0  ;;  %v4102_v55 = vld [vmem:[%s5137_s4 + $0x10] sm:$0xff]  }
0x1d16   :  { %3106 = vadd.xlane.f32.xlu0 %v3105_v23  ;;  %3975 = vmatpush3.bf16.msra.mxu1 %v4102_v55  ;;  %v3563_v55 = vld [vmem:[%s5139_s6 + $0x16] ss:$0 sm:$0xff] }
0x1d17   :  { %v3108_v24 = vsel %vm75_vm1, %v3102_v22, 0.0  ;;  %3976 = vmatprep.subr.bf16.mxu1 %v4302_v1 }
0x1d18   :  { %3109 = vadd.xlane.f32.xlu1 %v3108_v24 }
0x1d1a   :  { %3977 = vmatpush3.bf16.msra.mxu1 %v4103_v35 }
0x1d1b   :  { %3994 = vmatprep.subr.bf16.mxu1 %v4302_v1 }
0x1da3   :  { %v3107_v25 = vpop.xlane.xlu0 %3106 }
0x1da4   :  { %v3111_v26 = vmul.f32 0.03125, %v3107_v25 }
0x1da5   :  { %v3110_v27 = vpop.xlane.xlu1 %3109 }
0x1da6   :  { %v3113_v28 = vsub.f32 %v3101_v18, %v3111_v26  ;;  %v3112_v29 = vmul.f32 0.03125, %v3110_v27  ;;  %v4108_v26 = vld [vmem:[%s5140_s7] sm:$0xff]   ;;  %v4109_v27 = vld [vmem:[%s5140_s7 + $0x8] sm:$0xff]  }
0x1da8   :  { %v3114_v30 = vsub.f32 %v3102_v22, %v3112_v29  ;;  %v3115_v31 = vmul.f32 %v3113_v28, %v3113_v28 }
0x1daa   :  { %v3117_v32 = vsel %vm75_vm1, %v3115_v31, 0.0  ;;  %v3116_v21 = vmul.f32 %v3114_v30, %v3114_v30 }
0x1dab   :  { %3118 = vadd.xlane.f32.xlu0 %v3117_v32 }
0x1dac   :  { %v3120_v34 = vsel %vm75_vm1, %v3116_v21, 0.0 }
0x1daf   :  { %3121 = vadd.xlane.f32.xlu0 %v3120_v34 }
0x1e38   :  { %v3119_v38 = vpop.xlane.xlu0 %3118 }
0x1e39   :  { %v3123_v39 = vmul.f32 0.03125, %v3119_v38 }
0x1e3b   :  { %v3125_v40 = vadd.f32 1e-05, %v3123_v39 }
0x1e3c   :  { %v3122_v41 = vpop.xlane.xlu0 %3121 }
0x1e3d   :  { %4254 = vrsqrt.f32 %v3125_v40  ;;  %v3124_v43 = vmul.f32 0.03125, %v3122_v41 }
0x1e3f   :  { %v3126_v44 = vadd.f32 1e-05, %v3124_v43 }
0x1e41   :  { %4256 = vrsqrt.f32 %v3126_v44  ;;  %v3565_v44 = vld [vmem:[%s5141_s8] ss:$0 sm:$0xff] }
0x1e47   :  { %v4255_v45 = vpop.eup %4254 }
0x1e48   :  { %v3129_v46 = vmul.f32 %v4255_v45, %v3113_v28 }
0x1e4a   :  { %v3135_v62 = vmul.f32 %v3539_v33, %v3129_v46 }
0x1e4b   :  { %v4257_v5 = vpop.eup %4256 }
0x1e4c   :  { %v3130_v47 = vmul.f32 %v4257_v5, %v3114_v30  ;;  %v3141_v50 = vadd.f32 %v3540_v48, %v3135_v62 }
0x1e4e   :  { %v3136_v49 = vmul.f32 %v3539_v33, %v3130_v47 }
0x1e50   :  { %v3142_v51 = vadd.f32 %v3540_v48, %v3136_v49 }
0x1e52   :  { %v3143_v52 = vpack.c.bf16 %v3142_v51, %v3141_v50 }
0x1e54   :  { %3979 = vmatmul.mubr.msk.bf16.vlgmr.msra.gmra.mrb[88].mxu1 %vm75_vm1, %v3143_v52 }
0x1e55   :  { %3998 = vmatprep.mubr.msk.bf16.mxu1 %vm4303_vm0, %v4302_v1  ;;  %3995 = vmatpush3.bf16.msra.mxu1 %v4108_v26 }
0x1e56   :  { %3996 = vmatprep.subr.bf16.mxu1 %v4302_v1  ;;  %v3564_v1 = vld [vmem:[%s5139_s6 + $0x17] ss:$0 sm:$0xff]  ;;  %s4278_s6 = scalar_lea.vmem %s3413_s24, 256 }
0x1e57   :  { %p4279_p0 = scmp.ne.s32.totalorder %s3413_s24, %s4278_s6  ;;  %p4284_p2 = scmp.lt.s32.totalorder %s4278_s6, %s4278_s6 }
0x1e59   :  { %3997 = vmatpush3.bf16.msra.mxu1 %v4109_v27  ;;  %p4285_p3 = por %p4284_p2, %p4283_p1 }
0x1e5b   :  { %p4286_p4 = pnand %p4285_p3, %p4279_p0 }
0x1f27   :  { %v3203_v57 = vpop.f32.mrb[88].mxu1 }
0x1f28   :  { %v3204_v58 = vadd.f32 %v3545_v56, %v3203_v57  ;;  %v3980_v59 = vpop.f32.mrb[89].mxu1 }
0x1f29   :  { %v3206_v13 = vpop.f32.mrb[90].mxu1 }
0x1f2a   :  { %v3207_v60 = vadd.f32 %v3545_v56, %v3206_v13  ;;  %v3981_v61 = vpop.f32.mrb[91].mxu1  ;;  %v3210_v63 = vmax.f32 %v3204_v58, 0.0 }
0x1f2c   :  { %v3211_v0 = vmax.f32 %v3207_v60, 0.0 }
0x1f2e   :  { %v3212_v2 = vpack.c.bf16 %v3211_v0, %v3210_v63 }
0x1f30   :  { %3991 = vmatmul.mubr.msk.bf16.vlgmr.msra.gmra.mrb[88].mxu0 %vm1609_vm5, %v3212_v2 }
0x2003   :  { %v3288_v4 = vpop.f32.mrb[88].mxu0 }
0x2004   :  { %v3289_v6 = vadd.f32 %v3557_v3, %v3288_v4  ;;  %v3992_v7 = vpop.f32.mrb[89].mxu0 }
0x2005   :  { %v3291_v8 = vpop.f32.mrb[90].mxu0 }
0x2006   :  { %v3295_v9 = vadd.f32 %v3289_v6, %v3141_v50  ;;  %v3292_v10 = vadd.f32 %v3557_v3, %v3291_v8  ;;  %v3993_v11 = vpop.f32.mrb[91].mxu0 }
0x2008   :  { %v3296_v12 = vadd.f32 %v3292_v10, %v3142_v51  ;;  %v3299_v14 = vsel %vm75_vm1, %v3295_v9, 0.0 }
0x2009   :  { %3300 = vadd.xlane.f32.xlu1 %v3299_v14 }
0x200a   :  { %v3302_v15 = vsel %vm75_vm1, %v3296_v12, 0.0 }
0x200b   :  { %3303 = vadd.xlane.f32.xlu0 %v3302_v15 }
0x2096   :  { %v3301_v16 = vpop.xlane.xlu1 %3300 }
0x2097   :  { %v3305_v17 = vmul.f32 0.03125, %v3301_v16 }
0x2098   :  { %v3304_v42 = vpop.xlane.xlu0 %3303 }
0x2099   :  { %v3307_v18 = vsub.f32 %v3295_v9, %v3305_v17  ;;  %v3306_v19 = vmul.f32 0.03125, %v3304_v42 }
0x209b   :  { %v3308_v20 = vsub.f32 %v3296_v12, %v3306_v19  ;;  %v3309_v22 = vmul.f32 %v3307_v18, %v3307_v18 }
0x209d   :  { %v3311_v23 = vsel %vm75_vm1, %v3309_v22, 0.0  ;;  %v3310_v24 = vmul.f32 %v3308_v20, %v3308_v20 }
0x209e   :  { %3312 = vadd.xlane.f32.xlu1 %v3311_v23 }
0x209f   :  { %v3314_v25 = vsel %vm75_vm1, %v3310_v24, 0.0 }
0x20a0   :  { %3315 = vadd.xlane.f32.xlu0 %v3314_v25 }
0x212b   :  { %v3313_v28 = vpop.xlane.xlu1 %3312 }
0x212c   :  { %v3317_v29 = vmul.f32 0.03125, %v3313_v28 }
0x212d   :  { %v3316_v30 = vpop.xlane.xlu0 %3315 }
0x212e   :  { %v3319_v31 = vadd.f32 1e-05, %v3317_v29  ;;  %v3318_v32 = vmul.f32 0.03125, %v3316_v30 }
0x2130   :  { %4258 = vrsqrt.f32 %v3319_v31  ;;  %v3320_v21 = vadd.f32 1e-05, %v3318_v32 }
0x2132   :  { %4260 = vrsqrt.f32 %v3320_v21 }
0x213a   :  { %v4259_v34 = vpop.eup %4258 }
0x213b   :  { %v3323_v35 = vmul.f32 %v4259_v34, %v3307_v18 }
0x213c   :  { %v4261_v36 = vpop.eup %4260 }
0x213d   :  { %v3329_v37 = vmul.f32 %v3563_v55, %v3323_v35  ;;  %v3324_v38 = vmul.f32 %v4261_v36, %v3308_v20 }
0x213f   :  { %v3330_v39 = vmul.f32 %v3563_v55, %v3324_v38  ;;  %v3335_v40 = vadd.f32 %v3564_v1, %v3329_v37 }
0x2141   :  { %v3336_v41 = vadd.f32 %v3564_v1, %v3330_v39 }
0x2143   :  { %v3337_v43 = vpack.c.bf16 %v3336_v41, %v3335_v40 }
0x2145   :  { %3999 = vmatmul.mubr.msk.bf16.vlgmr.msra.gmra.mrb[92].mxu1 %vm75_vm1, %v3337_v43 }
0x2218   :  { %v3398_v45 = vpop.f32.mrb[92].mxu1 }
0x2219   :  { %v3399_v46 = vadd.f32 %v3565_v44, %v3398_v45  ;;  %v4000_v33 = vpop.f32.mrb[93].mxu1 }
0x221a   :  { %v3401_v5 = vpop.f32.mrb[94].mxu1 }
0x221b   :  { %3405 = vst [vmem:[#allocation2] sm:$0xff] %v3399_v46  ;;  %v3402_v62 = vadd.f32 %v3565_v44, %v3401_v5  ;;  %v4001_v47 = vpop.f32.mrb[95].mxu1 }
0x221d   :  { %3406 = vst [vmem:[#allocation2 + $0x8] sm:$0xff] %v3402_v62 }
0x221e   :  { %4289 = shalt.err (!%p4286_p4)
}
0x221f   :  { %s4290_s16 = scalar_lea.hbm %s5142_s9, 256 }
0x2220   :  { %p4291_p5 = scmp.ne.s32.totalorder %s5142_s9, %s4290_s16  ;;  %p4294_p6 = scmp.lt.u32.totalorder %s4290_s16, %s5142_s9 }
0x2222   :  { %p4296_p7 = pnand %p4294_p6, %p4291_p5 }
0x2224   :  { %4299 = shalt.err (!%p4296_p7)
}
0x2225   :  { %s4319_s30 = smov 128  }
0x2226   :  { %3418 = dma.vmem_to_hbm [thread:$0]  %s3413_s24, 256, %s5142_s9, [#allocation3], %s4319_s30, %s4319_s30, %s4315_s13  }
0x2227   :  { %4300 = dma.done.wait [#allocation3], 256  }
0x2228   :  { %4301 = vsyncadd [#allocation3], 4294967040 }
0x2229   :  { %3422 = vsyncpa [#allocation3], 1 }

</bundles_post_ra>
